<compile_context>
chip_gen: v6e
topology: v6e:2x2x1
jax: 0.10.0
libtpu: 0.0.40
codegen_flags: <defaults>
</compile_context>

<pallas_src>
import jax
import jax.numpy as jnp
from jax import lax
from jax.experimental import pallas as pl
from jax.experimental.pallas import tpu as pltpu


def _pick_tile(n, candidates, min_steps=1):
    for t in candidates:
        if n % t == 0 and n // t >= min_steps:
            return t
    return n


# ---------------------------------------------------------------------------
# Kernel A: conv2 (3 GEMMs, K=96) + 2x2 max-pool + bias + ReLU, T images/step
# ---------------------------------------------------------------------------
def _conv2_relu_pool_kernel(z_ref, w_ref, b_ref, o_ref):
    """z_ref : (T, 2, 26, 16, 96) bf16,  z[t,dw,h,j,kw*32+c] = relu(conv1)[h, 2j+dw+kw, c]
       w_ref : (3, 96, 64) bf16,         w[kh, kw*32+c, o]   = conv2_w[o, c, kh, kw]
       b_ref : (1, 64) f32
       o_ref : (T, 12, 12, 64) bf16 pooled NHWC activations."""
    T = z_ref.shape[0]
    acc = None
    # 3 accumulating GEMMs (one per kh tap), M = T*768, K = 96, N = 64.
    # Each LHS is a contiguous slice + leading-dim merge (tile-aligned, cheap).
    for kh in range(3):
        lhs = z_ref[:, :, kh:kh + 24, :, :].reshape(T * 768, 96)
        part = jnp.dot(lhs, w_ref[kh], preferred_element_type=jnp.float32)
        acc = part if acc is None else acc + part

    # Rows are ordered ((t, dw, oh, j)); 2x2 max-pool:
    #   width  pairs = the two parity (dw) halves,
    #   height pairs = the two 16-row halves of each 32-row group.
    acc = acc.reshape(T, 2, 12, 32, 64)
    acc = jnp.maximum(acc[:, 0], acc[:, 1])                   # pool over width parity
    acc = jnp.maximum(acc[:, :, :16, :], acc[:, :, 16:, :])   # pool over height pair
    # Drop the zero-padded j=12..15 columns, then bias + ReLU (post-pool).
    out = jnp.maximum(acc[:, :, :12, :] + b_ref[0], 0.0)      # (T, 12, 12, 64)
    o_ref[...] = out.astype(o_ref.dtype)


def conv2_relu_pool(z, w2z, b2):
    B = z.shape[0]
    T = _pick_tile(B, (8, 4, 2, 1), min_steps=2)   # >=2 steps so both v7x TCs get work
    cost = pl.CostEstimate(
        flops=int(B * 3 * 2 * 768 * 96 * 64),
        transcendentals=0,
        bytes_accessed=int(z.size * 2 + w2z.size * 2 + b2.size * 4 + B * 9216 * 2),
    )
    return pl.pallas_call(
        _conv2_relu_pool_kernel,
        out_shape=jax.ShapeDtypeStruct((B, 12, 12, 64), jnp.bfloat16),
        grid_spec=pltpu.PrefetchScalarGridSpec(
            num_scalar_prefetch=0,
            grid=(B // T,),
            in_specs=[
                pl.BlockSpec((T, 2, 26, 16, 96), lambda i: (i, 0, 0, 0, 0)),
                pl.BlockSpec((3, 96, 64), lambda i: (0, 0, 0)),   # resident weights
                pl.BlockSpec((1, 64), lambda i: (0, 0)),
            ],
            out_specs=pl.BlockSpec((T, 12, 12, 64), lambda i: (i, 0, 0, 0)),
        ),
        compiler_params=pltpu.CompilerParams(
            dimension_semantics=("parallel",),
            vmem_limit_bytes=48 * 1024 * 1024),
        cost_estimate=cost,
    )(z, w2z, b2)


# ---------------------------------------------------------------------------
# Kernel B: fc1 + ReLU + fc2 + log_softmax, tiled over batch, weights resident
# ---------------------------------------------------------------------------
def _fc_head_kernel(x_ref, w1_ref, w2_ref, o_ref):
    h = jnp.dot(x_ref[...], w1_ref[...], preferred_element_type=jnp.float32)
    h = jnp.maximum(h, 0.0).astype(jnp.bfloat16)
    y = jnp.dot(h, w2_ref[...], preferred_element_type=jnp.float32)
    m = jnp.max(y, axis=-1, keepdims=True)
    lse = m + jnp.log(jnp.sum(jnp.exp(y - m), axis=-1, keepdims=True))
    o_ref[...] = y - lse


def fc_head(feats, w1p, w2p):
    B, K = feats.shape
    N1, N2 = w1p.shape[1], w2p.shape[1]
    # Larger batch tiles (<=256) to amortize per-step cost; fall back to full B
    # for tiny/odd batches (keeps the (8,128) block-shape rule satisfied).
    tm = _pick_tile(B, (256, 128, 64, 32, 16, 8), min_steps=1)
    cost = pl.CostEstimate(
        flops=int(2 * B * (K * N1 + N1 * N2)),
        transcendentals=int(B * (N2 + 1)),
        bytes_accessed=int(feats.size * 2 + w1p.size * 2 + w2p.size * 2 + B * N2 * 4),
    )
    return pl.pallas_call(
        _fc_head_kernel,
        out_shape=jax.ShapeDtypeStruct((B, N2), jnp.float32),
        grid_spec=pltpu.PrefetchScalarGridSpec(
            num_scalar_prefetch=0,
            grid=(B // tm,),
            in_specs=[
                pl.BlockSpec((tm, K), lambda i: (i, 0)),
                pl.BlockSpec((K, N1), lambda i: (0, 0)),   # resident across M grid
                pl.BlockSpec((N1, N2), lambda i: (0, 0)),  # resident across M grid
            ],
            out_specs=pl.BlockSpec((tm, N2), lambda i: (i, 0)),
        ),
        compiler_params=pltpu.CompilerParams(
            dimension_semantics=("parallel",),
            vmem_limit_bytes=32 * 1024 * 1024),
        cost_estimate=cost,
    )(feats, w1p, w2p)


# ---------------------------------------------------------------------------
# One-time parameter preparation (layout permutations + bf16 casts)
# ---------------------------------------------------------------------------
def prepare_params(params):
    bf16 = jnp.bfloat16
    # conv2: (o, c, kh, kw) -> (kh, kw*32+c, o) to match the kw-folded K layout.
    w2z = params["conv2_w"].astype(jnp.float32).transpose(2, 3, 1, 0)
    w2z = w2z.reshape(3, 96, 64).astype(bf16)
    # fc1: reorder K so it matches the (ph, pw, c) NHWC-pooled flatten order.
    w1p = params["fc1_w"].astype(jnp.float32).reshape(128, 64, 12, 12)
    w1p = w1p.transpose(2, 3, 1, 0).reshape(9216, 128).astype(bf16)
    w2p = params["fc2_w"].astype(jnp.float32).T.astype(bf16)            # (128, 10)
    return {
        "conv1_w": params["conv1_w"].astype(jnp.float32),
        "conv1_b": params["conv1_b"].astype(jnp.float32),
        "conv2_w": w2z,
        "conv2_b": params["conv2_b"].reshape(1, 64).astype(jnp.float32),
        "fc1_w": w1p,
        "fc2_w": w2p,
    }


# ---------------------------------------------------------------------------
# SillyNet forward
# ---------------------------------------------------------------------------
def silly_net_forward(x, prep):
    B = x.shape[0]
    # conv1 + bias + ReLU (XLA glue, <2% of FLOPs), output NHWC (B, 26, 26, 32).
    y1 = lax.conv_general_dilated(
        x.astype(jnp.float32), prep["conv1_w"],
        window_strides=(1, 1), padding="VALID",
        dimension_numbers=("NCHW", "OIHW", "NHWC"))
    # Cast to bf16 BEFORE the relayout so the transpose/pad moves half the bytes.
    y1 = jnp.maximum(y1 + prep["conv1_b"], 0.0).astype(jnp.bfloat16)

    # Fold the 3 kw taps into the channel axis (partial im2col, 96 lanes), then
    # parity-split the output-column axis and pad 12->16 so the kernel's
    # slice+merge reshapes stay tile-aligned.  z[b,dw,h,j,kw*32+c] = y1[b,h,2j+dw+kw,c].
    taps = [y1[:, :, kw:kw + 24, :] for kw in range(3)]
    z = jnp.concatenate(taps, axis=-1)                          # (B, 26, 24, 96)
    z = z.reshape(B, 26, 12, 2, 96).transpose(0, 3, 1, 2, 4)    # (B, 2, 26, 12, 96)
    z = jnp.pad(z, ((0, 0), (0, 0), (0, 0), (0, 4), (0, 0)))    # (B, 2, 26, 16, 96)

    # conv2 + 2x2 max-pool + bias + ReLU (fused Pallas kernel, T images/step).
    pooled = conv2_relu_pool(z, prep["conv2_w"], prep["conv2_b"])   # (B,12,12,64)

    # dropout1: identity at inference; the flatten is a free row-major HBM view
    # and fc1's weight is pre-permuted to the (ph, pw, c) ordering.
    feats = pooled.reshape(B, 12 * 12 * 64)

    # fc1 + ReLU + (dropout2: identity) + fc2 + log_softmax (fused Pallas kernel).
    return fc_head(feats, prep["fc1_w"], prep["fc2_w"])             # (B, 10)


def init_params(key):
    ks = jax.random.split(key, 6)
    f32 = jnp.float32
    return {
        "conv1_w": jax.random.normal(ks[0], (32, 1, 3, 3), f32) * (1.0 / 3.0),
        "conv1_b": jax.random.normal(ks[1], (32,), f32) * 0.1,
        "conv2_w": jax.random.normal(ks[2], (64, 32, 3, 3), f32) * (1.0 / 17.0),
        "conv2_b": jax.random.normal(ks[3], (64,), f32) * 0.1,
        "fc1_w": jax.random.normal(ks[4], (128, 9216), f32) * 0.01,
        "fc2_w": jax.random.normal(ks[5], (10, 128), f32) * 0.08,
    }


if __name__ == "__main__":
    key = jax.random.PRNGKey(0)
    pkey, xkey = jax.random.split(key)
    params = init_params(pkey)
    prep = prepare_params(params)

    # MNIST-shaped input: fc1 in_features=9216 => 28x28 single-channel images.
    B = 2
    x = jax.random.normal(xkey, (B, 1, 28, 28), jnp.float32)

    fwd = jax.jit(silly_net_forward)
    out = jax.block_until_ready(fwd(x, prep))

    assert out.shape == (B, 10), out.shape
    # log_softmax rows must (approximately) exponentiate-and-sum to 1.
    row_sums = jnp.exp(out).sum(axis=1)
    assert jnp.allclose(row_sums, 1.0, atol=1e-3), row_sums
    print("KERNEL_OK")
</pallas_src>

<mosaic_0001>
module attributes {stable_mosaic.version = 11 : i64} {
  func.func @_conv2_relu_pool_kernel(%arg0: i32, %arg1: memref<1x2x26x16x96xbf16, #tpu.memory_space<vmem>>, %arg2: memref<3x96x64xbf16, #tpu.memory_space<vmem>>, %arg3: memref<1x64xf32, #tpu.memory_space<vmem>>, %arg4: memref<1x12x12x64xbf16, #tpu.memory_space<vmem>>) attributes {dimension_semantics = [#tpu.dimension_semantics<parallel>], iteration_bounds = array<i64: 2>, scalar_prefetch = 0 : i64, scratch_operands = 0 : i64, tpu.core_type = #tpu.core_type<tc>, window_params = [{transform_indices = @transform_0, window_bounds = array<i64: 1, 2, 26, 16, 96>}, {pipeline_mode = #tpu.pipeline_mode<synchronous>, transform_indices = @transform_1, window_bounds = array<i64: 3, 96, 64>}, {pipeline_mode = #tpu.pipeline_mode<synchronous>, transform_indices = @transform_2, window_bounds = array<i64: 1, 64>}, {transform_indices = @transform_3, window_bounds = array<i64: 1, 12, 12, 64>}]} {
    %c0 = arith.constant 0 : index
    %c0_0 = arith.constant 0 : index
    %c0_1 = arith.constant 0 : index
    %c0_2 = arith.constant 0 : index
    %c0_3 = arith.constant 0 : index
    %0 = vector.load %arg1[%c0, %c0_0, %c0_1, %c0_2, %c0_3] : memref<1x2x26x16x96xbf16, #tpu.memory_space<vmem>>, vector<1x2x24x16x96xbf16>
    %1 = vector.shape_cast %0 : vector<1x2x24x16x96xbf16> to vector<768x96xbf16>
    %c0_4 = arith.constant 0 : index
    %c0_5 = arith.constant 0 : index
    %c0_6 = arith.constant 0 : index
    %2 = vector.load %arg2[%c0_4, %c0_5, %c0_6] : memref<3x96x64xbf16, #tpu.memory_space<vmem>>, vector<1x96x64xbf16>
    %3 = vector.shape_cast %2 : vector<1x96x64xbf16> to vector<96x64xbf16>
    %cst = arith.constant dense<0.000000e+00> : vector<768x64xf32>
    %4 = tpu.matmul %1, %3, %cst {dimension_numbers = #tpu.dot_dimension_numbers<[1], [0], [0], [1], [0, 0, 1, 1], [], []>} : vector<768x96xbf16>, vector<96x64xbf16>, vector<768x64xf32> -> vector<768x64xf32>
    %c0_7 = arith.constant 0 : index
    %c0_8 = arith.constant 0 : index
    %c1 = arith.constant 1 : index
    %c0_9 = arith.constant 0 : index
    %c0_10 = arith.constant 0 : index
    %5 = vector.load %arg1[%c0_7, %c0_8, %c1, %c0_9, %c0_10] : memref<1x2x26x16x96xbf16, #tpu.memory_space<vmem>>, vector<1x2x24x16x96xbf16>
    %6 = vector.shape_cast %5 : vector<1x2x24x16x96xbf16> to vector<768x96xbf16>
    %c1_11 = arith.constant 1 : index
    %c0_12 = arith.constant 0 : index
    %c0_13 = arith.constant 0 : index
    %7 = vector.load %arg2[%c1_11, %c0_12, %c0_13] : memref<3x96x64xbf16, #tpu.memory_space<vmem>>, vector<1x96x64xbf16>
    %8 = vector.shape_cast %7 : vector<1x96x64xbf16> to vector<96x64xbf16>
    %cst_14 = arith.constant dense<0.000000e+00> : vector<768x64xf32>
    %9 = tpu.matmul %6, %8, %cst_14 {dimension_numbers = #tpu.dot_dimension_numbers<[1], [0], [0], [1], [0, 0, 1, 1], [], []>} : vector<768x96xbf16>, vector<96x64xbf16>, vector<768x64xf32> -> vector<768x64xf32>
    %10 = arith.addf %4, %9 : vector<768x64xf32>
    %c0_15 = arith.constant 0 : index
    %c0_16 = arith.constant 0 : index
    %c2 = arith.constant 2 : index
    %c0_17 = arith.constant 0 : index
    %c0_18 = arith.constant 0 : index
    %11 = vector.load %arg1[%c0_15, %c0_16, %c2, %c0_17, %c0_18] : memref<1x2x26x16x96xbf16, #tpu.memory_space<vmem>>, vector<1x2x24x16x96xbf16>
    %12 = vector.shape_cast %11 : vector<1x2x24x16x96xbf16> to vector<768x96xbf16>
    %c2_19 = arith.constant 2 : index
    %c0_20 = arith.constant 0 : index
    %c0_21 = arith.constant 0 : index
    %13 = vector.load %arg2[%c2_19, %c0_20, %c0_21] : memref<3x96x64xbf16, #tpu.memory_space<vmem>>, vector<1x96x64xbf16>
    %14 = vector.shape_cast %13 : vector<1x96x64xbf16> to vector<96x64xbf16>
    %cst_22 = arith.constant dense<0.000000e+00> : vector<768x64xf32>
    %15 = tpu.matmul %12, %14, %cst_22 {dimension_numbers = #tpu.dot_dimension_numbers<[1], [0], [0], [1], [0, 0, 1, 1], [], []>} : vector<768x96xbf16>, vector<96x64xbf16>, vector<768x64xf32> -> vector<768x64xf32>
    %16 = arith.addf %10, %15 : vector<768x64xf32>
    %17 = vector.shape_cast %16 : vector<768x64xf32> to vector<1x2x12x32x64xf32>
    %18 = vector.extract_strided_slice %17 {offsets = [0, 0, 0, 0, 0], sizes = [1, 1, 12, 32, 64], strides = [1, 1, 1, 1, 1]} : vector<1x2x12x32x64xf32> to vector<1x1x12x32x64xf32>
    %19 = vector.shape_cast %18 : vector<1x1x12x32x64xf32> to vector<1x12x32x64xf32>
    %20 = vector.extract_strided_slice %17 {offsets = [0, 1, 0, 0, 0], sizes = [1, 1, 12, 32, 64], strides = [1, 1, 1, 1, 1]} : vector<1x2x12x32x64xf32> to vector<1x1x12x32x64xf32>
    %21 = vector.shape_cast %20 : vector<1x1x12x32x64xf32> to vector<1x12x32x64xf32>
    %22 = arith.maximumf %19, %21 : vector<1x12x32x64xf32>
    %23 = vector.extract_strided_slice %22 {offsets = [0, 0, 0, 0], sizes = [1, 12, 16, 64], strides = [1, 1, 1, 1]} : vector<1x12x32x64xf32> to vector<1x12x16x64xf32>
    %24 = vector.extract_strided_slice %22 {offsets = [0, 0, 16, 0], sizes = [1, 12, 16, 64], strides = [1, 1, 1, 1]} : vector<1x12x32x64xf32> to vector<1x12x16x64xf32>
    %25 = arith.maximumf %23, %24 : vector<1x12x16x64xf32>
    %26 = vector.extract_strided_slice %25 {offsets = [0, 0, 0, 0], sizes = [1, 12, 12, 64], strides = [1, 1, 1, 1]} : vector<1x12x16x64xf32> to vector<1x12x12x64xf32>
    %c0_23 = arith.constant 0 : index
    %c0_24 = arith.constant 0 : index
    %27 = vector.load %arg3[%c0_23, %c0_24] : memref<1x64xf32, #tpu.memory_space<vmem>>, vector<1x64xf32>
    %28 = vector.shape_cast %27 : vector<1x64xf32> to vector<64xf32>
    %29 = vector.shape_cast %28 : vector<64xf32> to vector<1x1x1x64xf32>
    %30 = vector.broadcast %29 : vector<1x1x1x64xf32> to vector<1x12x12x64xf32>
    %31 = arith.addf %26, %30 : vector<1x12x12x64xf32>
    %cst_25 = arith.constant 0.000000e+00 : f32
    %32 = vector.broadcast %cst_25 : f32 to vector<1x12x12x64xf32>
    %33 = arith.maximumf %31, %32 : vector<1x12x12x64xf32>
    %34 = arith.truncf %33 : vector<1x12x12x64xf32> to vector<1x12x12x64xbf16>
    %c0_26 = arith.constant 0 : index
    %c0_27 = arith.constant 0 : index
    %c0_28 = arith.constant 0 : index
    %c0_29 = arith.constant 0 : index
    %35 = vector.load %arg4[%c0_26, %c0_27, %c0_28, %c0_29] : memref<1x12x12x64xbf16, #tpu.memory_space<vmem>>, vector<1x12x12x64xbf16>
    tpu.vector_store %arg4[%c0_26, %c0_27, %c0_28, %c0_29], %34 {strides = array<i32>} : memref<1x12x12x64xbf16, #tpu.memory_space<vmem>>, vector<1x12x12x64xbf16>,
    return
  }
  func.func @transform_0(%arg0: i32) -> (i32, i32, i32, i32, i32) {
    %c0_i32 = arith.constant 0 : i32
    %c0_i32_0 = arith.constant 0 : i32
    %c0_i32_1 = arith.constant 0 : i32
    %c0_i32_2 = arith.constant 0 : i32
    %c0_i32_3 = arith.constant 0 : i32
    return %arg0, %c0_i32, %c0_i32_0, %c0_i32_1, %c0_i32_2 : i32, i32, i32, i32, i32
  }
  func.func @transform_1(%arg0: i32) -> (i32, i32, i32) {
    %c0_i32 = arith.constant 0 : i32
    %c0_i32_0 = arith.constant 0 : i32
    %c0_i32_1 = arith.constant 0 : i32
    %c0_i32_2 = arith.constant 0 : i32
    return %c0_i32, %c0_i32_0, %c0_i32_1 : i32, i32, i32
  }
  func.func @transform_2(%arg0: i32) -> (i32, i32) {
    %c0_i32 = arith.constant 0 : i32
    %c0_i32_0 = arith.constant 0 : i32
    %c0_i32_1 = arith.constant 0 : i32
    return %c0_i32, %c0_i32_0 : i32, i32
  }
  func.func @transform_3(%arg0: i32) -> (i32, i32, i32, i32) {
    %c0_i32 = arith.constant 0 : i32
    %c0_i32_0 = arith.constant 0 : i32
    %c0_i32_1 = arith.constant 0 : i32
    %c0_i32_2 = arith.constant 0 : i32
    return %arg0, %c0_i32, %c0_i32_0, %c0_i32_1 : i32, i32, i32, i32
  }
}

module attributes {stable_mosaic.version = 11 : i64} {
  func.func @_fc_head_kernel(%arg0: i32, %arg1: memref<2x9216xbf16, #tpu.memory_space<vmem>>, %arg2: memref<9216x128xbf16, #tpu.memory_space<vmem>>, %arg3: memref<128x10xbf16, #tpu.memory_space<vmem>>, %arg4: memref<2x10xf32, #tpu.memory_space<vmem>>) attributes {dimension_semantics = [#tpu.dimension_semantics<parallel>], iteration_bounds = array<i64: 1>, scalar_prefetch = 0 : i64, scratch_operands = 0 : i64, tpu.core_type = #tpu.core_type<tc>, window_params = [{transform_indices = @transform_0, window_bounds = array<i64: 2, 9216>}, {pipeline_mode = #tpu.pipeline_mode<synchronous>, transform_indices = @transform_1, window_bounds = array<i64: 9216, 128>}, {pipeline_mode = #tpu.pipeline_mode<synchronous>, transform_indices = @transform_2, window_bounds = array<i64: 128, 10>}, {transform_indices = @transform_3, window_bounds = array<i64: 2, 10>}]} {
    %c0 = arith.constant 0 : index
    %c0_0 = arith.constant 0 : index
    %0 = vector.load %arg1[%c0, %c0_0] : memref<2x9216xbf16, #tpu.memory_space<vmem>>, vector<2x9216xbf16>
    %c0_1 = arith.constant 0 : index
    %c0_2 = arith.constant 0 : index
    %1 = vector.load %arg2[%c0_1, %c0_2] : memref<9216x128xbf16, #tpu.memory_space<vmem>>, vector<9216x128xbf16>
    %cst = arith.constant dense<0.000000e+00> : vector<2x128xf32>
    %2 = tpu.matmul %0, %1, %cst {dimension_numbers = #tpu.dot_dimension_numbers<[1], [0], [0], [1], [0, 0, 1, 1], [], []>} : vector<2x9216xbf16>, vector<9216x128xbf16>, vector<2x128xf32> -> vector<2x128xf32>
    %cst_3 = arith.constant 0.000000e+00 : f32
    %3 = vector.broadcast %cst_3 : f32 to vector<2x128xf32>
    %4 = arith.maximumf %2, %3 : vector<2x128xf32>
    %5 = arith.truncf %4 : vector<2x128xf32> to vector<2x128xbf16>
    %c0_4 = arith.constant 0 : index
    %c0_5 = arith.constant 0 : index
    %6 = vector.load %arg3[%c0_4, %c0_5] : memref<128x10xbf16, #tpu.memory_space<vmem>>, vector<128x10xbf16>
    %cst_6 = arith.constant dense<0.000000e+00> : vector<2x10xf32>
    %7 = tpu.matmul %5, %6, %cst_6 {dimension_numbers = #tpu.dot_dimension_numbers<[1], [0], [0], [1], [0, 0, 1, 1], [], []>} : vector<2x128xbf16>, vector<128x10xbf16>, vector<2x10xf32> -> vector<2x10xf32>
    %cst_7 = arith.constant dense<0xFF800000> : vector<2xf32>
    %8 = vector.multi_reduction <maximumf>, %7, %cst_7 [1] : vector<2x10xf32> to vector<2xf32>
    %9 = vector.shape_cast %8 : vector<2xf32> to vector<2x1xf32>
    %10 = vector.broadcast %9 : vector<2x1xf32> to vector<2x10xf32>
    %11 = arith.subf %7, %10 : vector<2x10xf32>
    %12 = math.exp %11 : vector<2x10xf32>
    %cst_8 = arith.constant dense<0.000000e+00> : vector<2xf32>
    %13 = vector.multi_reduction <add>, %12, %cst_8 [1] : vector<2x10xf32> to vector<2xf32>
    %14 = vector.shape_cast %13 : vector<2xf32> to vector<2x1xf32>
    %15 = math.log %14 : vector<2x1xf32>
    %16 = arith.addf %9, %15 : vector<2x1xf32>
    %17 = vector.broadcast %16 : vector<2x1xf32> to vector<2x10xf32>
    %18 = arith.subf %7, %17 : vector<2x10xf32>
    %c0_9 = arith.constant 0 : index
    %c0_10 = arith.constant 0 : index
    %19 = vector.load %arg4[%c0_9, %c0_10] : memref<2x10xf32, #tpu.memory_space<vmem>>, vector<2x10xf32>
    tpu.vector_store %arg4[%c0_9, %c0_10], %18 {strides = array<i32>} : memref<2x10xf32, #tpu.memory_space<vmem>>, vector<2x10xf32>,
    return
  }
  func.func @transform_0(%arg0: i32) -> (i32, i32) {
    %c0_i32 = arith.constant 0 : i32
    %c0_i32_0 = arith.constant 0 : i32
    return %arg0, %c0_i32 : i32, i32
  }
  func.func @transform_1(%arg0: i32) -> (i32, i32) {
    %c0_i32 = arith.constant 0 : i32
    %c0_i32_0 = arith.constant 0 : i32
    %c0_i32_1 = arith.constant 0 : i32
    return %c0_i32, %c0_i32_0 : i32, i32
  }
  func.func @transform_2(%arg0: i32) -> (i32, i32) {
    %c0_i32 = arith.constant 0 : i32
    %c0_i32_0 = arith.constant 0 : i32
    %c0_i32_1 = arith.constant 0 : i32
    return %c0_i32, %c0_i32_0 : i32, i32
  }
  func.func @transform_3(%arg0: i32) -> (i32, i32) {
    %c0_i32 = arith.constant 0 : i32
    %c0_i32_0 = arith.constant 0 : i32
    return %arg0, %c0_i32 : i32, i32
  }
}

</mosaic_0001>

<bundles_post_ra>
// kernel: silly_net_forward.2
= control target key start
LH: loop header
LB: loop body
LE: loop exit
PB: predicated region body
PF: predicated region fallthrough
CT: control target
= control target key end

     0   :  { %s4690_s12 = smov 0   ;;  %s5566_s0 = inlined_call_operand.vmem [shape: bf16[2,2,26,16,96], index: 0, kind: input, shape index: {}]   ;;  %s5567_s1 = inlined_call_operand.vmem [shape: bf16[3,96,64], index: 1, kind: input, shape index: {}]   ;;  %s5568_s2 = inlined_call_operand.vmem [shape: f32[1,64], index: 2, kind: input, shape index: {}]   ;;  %s5569_s3 = inlined_call_operand.vmem [shape: bf16[2,12,12,64], index: 3, kind: output, shape index: {}]  }
   0x1 LB: > { %s3412_s13 = sadd.s32 4294967295, %s4668_s12   ;;  %p3416_p0 = scmp.ge.s32.totalorder %s4668_s12, 1  ;;  %s4668_s12 = sphi %s4690_s12, %s13_s12  }
   0x2   : > { %p137_p1 = scmp.lt.s32.totalorder %s4668_s12, 3 }
   0x4   : > { %p138_p2 = pnand %p3416_p0, %p137_p1 }
   0x6   : > { %141 = sbr.rel (%p138_p2) target bundleno = 530 (0x212), region = 32 }
   0xb   : > { %v4500_v0 = vld [vmem:[%s5567_s1 + $0x58] sm:$0xff]   ;;  %p161_p3 = scmp.lt.s32.totalorder %s3412_s13, 1  ;;  %v4501_v1 = vld [vmem:[%s5567_s1 + $0x50] sm:$0xff]   ;;  %v4502_v2 = vld [vmem:[%s5567_s1 + $0x48] sm:$0xff]   ;;  %vm666_vm0 = vcmask 785408   ;;  %vm3331_vm1 = vcmask 519168  }
   0xc   : > { %4154 = vmatprep.subr.bf16.mxu0 %v4500_v0  ;;  %4478 = vmatprep.subr.bf16.mxu1 %v4500_v0  ;;  %v4503_v3 = vld [vmem:[%s5567_s1 + $0x40] sm:$0xff]   ;;  %v4504_v6 = vld [vmem:[%s5567_s1 + $0x38] sm:$0xff]   ;;  %v4505_v7 = vld [vmem:[%s5567_s1 + $0x30] sm:$0xff]   ;;  %vm3333_vm2 = vcmask 517120  }
   0xd   : > { %s5679_s13 = smov (!%p161_p3, %s3412_s13), 1  ;;  %4155 = vmatpush3.bf16.msra.mxu0 %v4500_v0  ;;  %4484 = vmatpush3.bf16.msra.mxu1 %v4500_v0  ;;  %v4510_v8 = vld [vmem:[%s5567_s1 + $0x28] sm:$0xff]   ;;  %v4520_v14 = vld [vmem:[%s5567_s1 + $0x20] sm:$0xff]   ;;  %v4530_v20 = vld [vmem:[%s5567_s1 + $0x18] sm:$0xff]  }
   0xe   : > { %4156 = vmatprep.subr.bf16.mxu0 %v4501_v1  ;;  %4479 = vmatprep.subr.bf16.mxu1 %v4501_v1  ;;  %s4490_s20 = smul.u32 416, %s5679_s13  ;;  %v4511_v10 = vld [vmem:[%s5567_s1 + $0x88] sm:$0xff]   ;;  %v4521_v15 = vld [vmem:[%s5567_s1 + $0x80] sm:$0xff]   ;;  %v4531_v21 = vld [vmem:[%s5567_s1 + $0x78] sm:$0xff]  }
   0xf   : > { %v4540_v26 = vld [vmem:[%s5567_s1 + $0x10] sm:$0xff]   ;;  %v4550_v32 = vld [vmem:[%s5567_s1 + $0x8] sm:$0xff]   ;;  %v4560_v40 = vld [vmem:[%s5567_s1] sm:$0xff]   ;;  %s4491_s4 = smul.u32 96, %s5679_s13 }
  0x10   : > { %s4716_s25 = scalar_lea.vmem %s5566_s0, %s4490_s20  ;;  %v4541_v27 = vld [vmem:[%s5567_s1 + $0x70] sm:$0xff]   ;;  %v4551_v33 = vld [vmem:[%s5567_s1 + $0x68] sm:$0xff]   ;;  %v4561_v41 = vld [vmem:[%s5567_s1 + $0x60] sm:$0xff]  }
  0x11   : > { %4157 = vmatpush3.bf16.msra.mxu0 %v4501_v1  ;;  %4485 = vmatpush3.bf16.msra.mxu1 %v4501_v1  ;;  %v4506_v4 = vld [vmem:[%s4716_s25 + $0x8] sm:$0xff]   ;;  %v4507_v5 = vld [vmem:[%s4716_s25 + $0xd8] sm:$0xff]   ;;  %v4508_v9 = vld [vmem:[%s4716_s25 + $0x10] sm:$0xff]   ;;  %s5404_s13 = scalar_lea.vmem %s5569_s3, %s4491_s4 }
  0x12   : > { %4158 = vmatprep.subr.bf16.mxu0 %v4502_v2  ;;  %4480 = vmatprep.subr.bf16.mxu1 %v4502_v2  ;;  %v4509_v11 = vld [vmem:[%s4716_s25 + $0xe0] sm:$0xff]   ;;  %v4512_v12 = vld [vmem:[%s4716_s25 + $0x18] sm:$0xff]   ;;  %v4513_v13 = vld [vmem:[%s4716_s25 + $0xe8] sm:$0xff]  }
  0x13   : > { %4166 = vmatprep.mubr.msk.bf16.mxu0 %vm666_vm0, %v4506_v4  ;;  %4214 = vmatprep.mubr.msk.bf16.mxu1 %vm666_vm0, %v4507_v5  ;;  %v4514_v16 = vld [vmem:[%s4716_s25 + $0x20] sm:$0xff]   ;;  %v4515_v17 = vld [vmem:[%s4716_s25 + $0xf0] sm:$0xff]   ;;  %v4516_v18 = vld [vmem:[%s4716_s25 + $0x28] sm:$0xff]  }
  0x14   : > { %v4517_v19 = vld [vmem:[%s4716_s25 + $0xf8] sm:$0xff]   ;;  %v4518_v22 = vld [vmem:[%s4716_s25 + $0x30] sm:$0xff]   ;;  %v4519_v23 = vld [vmem:[%s4716_s25 + $0x100] sm:$0xff]  }
  0x15   : > { %4159 = vmatpush3.bf16.msra.mxu0 %v4502_v2  ;;  %4486 = vmatpush3.bf16.msra.mxu1 %v4502_v2  ;;  %v4522_v24 = vld [vmem:[%s4716_s25 + $0x38] sm:$0xff]   ;;  %v4523_v25 = vld [vmem:[%s4716_s25 + $0x108] sm:$0xff]   ;;  %v4524_v28 = vld [vmem:[%s4716_s25 + $0x40] sm:$0xff]  }
  0x16   : > { %4160 = vmatprep.subr.bf16.mxu0 %v4503_v3  ;;  %4481 = vmatprep.subr.bf16.mxu1 %v4503_v3  ;;  %v4525_v29 = vld [vmem:[%s4716_s25 + $0x110] sm:$0xff]   ;;  %v4526_v30 = vld [vmem:[%s4716_s25 + $0x48] sm:$0xff]   ;;  %v4527_v31 = vld [vmem:[%s4716_s25 + $0x118] sm:$0xff]  }
  0x17   : > { %v4528_v34 = vld [vmem:[%s4716_s25 + $0x50] sm:$0xff]   ;;  %v4529_v35 = vld [vmem:[%s4716_s25 + $0x120] sm:$0xff]   ;;  %v4532_v36 = vld [vmem:[%s4716_s25 + $0x58] sm:$0xff]  }
  0x18   : > { %v4533_v37 = vld [vmem:[%s4716_s25 + $0x128] sm:$0xff]   ;;  %v4534_v38 = vld [vmem:[%s4716_s25 + $0x60] sm:$0xff]   ;;  %v4535_v39 = vld [vmem:[%s4716_s25 + $0x130] sm:$0xff]  }
  0x19   : > { %4161 = vmatpush3.bf16.msra.mxu0 %v4503_v3  ;;  %4487 = vmatpush3.bf16.msra.mxu1 %v4503_v3  ;;  %v4536_v42 = vld [vmem:[%s4716_s25 + $0x68] sm:$0xff]   ;;  %v4537_v43 = vld [vmem:[%s4716_s25 + $0x138] sm:$0xff]   ;;  %v4538_v44 = vld [vmem:[%s4716_s25 + $0x70] sm:$0xff]  }
  0x1a   : > { %4162 = vmatprep.subr.bf16.mxu0 %v4504_v6  ;;  %4482 = vmatprep.subr.bf16.mxu1 %v4504_v6  ;;  %v4539_v45 = vld [vmem:[%s4716_s25 + $0x140] sm:$0xff]   ;;  %v4542_v46 = vld [vmem:[%s4716_s25 + $0x78] sm:$0xff]   ;;  %v4543_v47 = vld [vmem:[%s4716_s25 + $0x148] sm:$0xff]  }
  0x1b   : > { %v4544_v48 = vld [vmem:[%s4716_s25 + $0x80] sm:$0xff]   ;;  %v4545_v49 = vld [vmem:[%s4716_s25 + $0x150] sm:$0xff]   ;;  %v4546_v50 = vld [vmem:[%s4716_s25 + $0x88] sm:$0xff]  }
  0x1c   : > { %v4547_v51 = vld [vmem:[%s4716_s25 + $0x158] sm:$0xff]   ;;  %v4548_v52 = vld [vmem:[%s4716_s25 + $0x90] sm:$0xff]   ;;  %v4549_v53 = vld [vmem:[%s4716_s25 + $0x160] sm:$0xff]  }
  0x1d   : > { %4163 = vmatpush3.bf16.msra.mxu0 %v4504_v6  ;;  %4488 = vmatpush3.bf16.msra.mxu1 %v4504_v6  ;;  %v4552_v54 = vld [vmem:[%s4716_s25 + $0x98] sm:$0xff]   ;;  %v4553_v55 = vld [vmem:[%s4716_s25 + $0x168] sm:$0xff]   ;;  %v4554_v56 = vld [vmem:[%s4716_s25 + $0xa0] sm:$0xff]  }
  0x1e   : > { %4164 = vmatprep.subr.bf16.mxu0 %v4505_v7  ;;  %4483 = vmatprep.subr.bf16.mxu1 %v4505_v7  ;;  %v4555_v57 = vld [vmem:[%s4716_s25 + $0x170] sm:$0xff]   ;;  %v4556_v58 = vld [vmem:[%s4716_s25 + $0xa8] sm:$0xff]   ;;  %v4557_v59 = vld [vmem:[%s4716_s25 + $0x178] sm:$0xff]  }
  0x1f   : > { %v4558_v60 = vld [vmem:[%s4716_s25 + $0xb0] sm:$0xff]   ;;  %v4559_v61 = vld [vmem:[%s4716_s25 + $0x180] sm:$0xff]   ;;  %v4562_v62 = vld [vmem:[%s4716_s25 + $0xb8] sm:$0xff]  }
  0x20   : > { %v4563_v63 = vld [vmem:[%s4716_s25 + $0x188] sm:$0xff]   ;;  %v4564_v0 = vld [vmem:[%s4716_s25 + $0xc0] sm:$0xff]   ;;  %v4565_v1 = vld [vmem:[%s4716_s25 + $0x190] sm:$0xff]  }
  0x21   : > { %4165 = vmatpush3.bf16.msra.mxu0 %v4505_v7  ;;  %4489 = vmatpush3.bf16.msra.mxu1 %v4505_v7  ;;  %v4566_v2 = vld [vmem:[%s4716_s25] sm:$0xff]   ;;  %v4567_v3 = vld [vmem:[%s4716_s25 + $0x10] sm:$0xff]   ;;  %v4568_v4 = vld [vmem:[%s4716_s25 + $0x8] sm:$0xff]  }
  0x22   : > { %4262 = vmatprep.subr.bf16.mxu1 %v4510_v8  ;;  %4370 = vmatprep.subr.bf16.mxu0 %v4511_v10  ;;  %v4569_v5 = vld [vmem:[%s4716_s25 + $0x18] sm:$0xff]   ;;  %v4570_v6 = vld [vmem:[%s4716_s25 + $0x10] sm:$0xff]   ;;  %v4571_v7 = vld [vmem:[%s4716_s25 + $0x20] sm:$0xff]  }
  0x24   : > { %4167 = vmatmul.mubr.msk.bf16.vlgmr.msra.gmra.mxu0 %vm666_vm0, %v4508_v9  ;;  %4215 = vmatmul.mubr.msk.bf16.vlgmr.msra.gmra.mxu1 %vm666_vm0, %v4509_v11  ;;  %v4573_v9 = vld [vmem:[%s4716_s25 + $0x28] sm:$0xff]   ;;  %v4575_v11 = vld [vmem:[%s4716_s25 + $0x30] sm:$0xff]  }
  0x25   : > { %4263 = vmatpush3.bf16.msra.mxu1 %v4510_v8  ;;  %4371 = vmatpush3.bf16.msra.mxu0 %v4511_v10  ;;  %v4572_v8 = vld [vmem:[%s4716_s25 + $0x18] sm:$0xff]   ;;  %v4574_v10 = vld [vmem:[%s4716_s25 + $0x20] sm:$0xff]  }
  0x26   : > { %4170 = vmatprep.mubr.msk.bf16.mxu0 %vm666_vm0, %v4512_v12  ;;  %4218 = vmatprep.mubr.msk.bf16.mxu1 %vm666_vm0, %v4513_v13  ;;  %v4576_v12 = vld [vmem:[%s4716_s25 + $0x28] sm:$0xff]   ;;  %v4577_v13 = vld [vmem:[%s4716_s25 + $0x38] sm:$0xff]  }
  0x27   : > { %4264 = vmatprep.subr.bf16.mxu1 %v4520_v14  ;;  %4372 = vmatprep.subr.bf16.mxu0 %v4521_v15 }
  0x29   : > { %4265 = vmatpush3.bf16.msra.mxu1 %v4520_v14  ;;  %4373 = vmatpush3.bf16.msra.mxu0 %v4521_v15  ;;  %v4578_v14 = vld [vmem:[%s4716_s25 + $0x30] sm:$0xff]   ;;  %v4579_v15 = vld [vmem:[%s4716_s25 + $0x40] sm:$0xff]  }
  0x2a   : > { %4266 = vmatprep.subr.bf16.mxu1 %v4530_v20  ;;  %4374 = vmatprep.subr.bf16.mxu0 %v4531_v21 }
  0x2c   : > { %4171 = vmatmul.mubr.msk.bf16.gmra.mxu0 %vm666_vm0, %v4514_v16  ;;  %4219 = vmatmul.mubr.msk.bf16.gmra.mxu1 %vm666_vm0, %v4515_v17  ;;  %v4580_v16 = vld [vmem:[%s4716_s25 + $0x38] sm:$0xff]   ;;  %v4581_v17 = vld [vmem:[%s4716_s25 + $0x48] sm:$0xff]  }
  0x2d   : > { %4174 = vmatprep.mubr.msk.bf16.mxu0 %vm666_vm0, %v4516_v18  ;;  %4222 = vmatprep.mubr.msk.bf16.mxu1 %vm666_vm0, %v4517_v19  ;;  %v4582_v18 = vld [vmem:[%s4716_s25 + $0x40] sm:$0xff]   ;;  %v4583_v19 = vld [vmem:[%s4716_s25 + $0x50] sm:$0xff]  }
  0x2e   : > { %4267 = vmatpush3.bf16.msra.mxu1 %v4530_v20  ;;  %4375 = vmatpush3.bf16.msra.mxu0 %v4531_v21  ;;  %v4584_v20 = vld [vmem:[%s4716_s25 + $0x48] sm:$0xff]   ;;  %v4585_v21 = vld [vmem:[%s4716_s25 + $0x58] sm:$0xff]  }
  0x2f   : > { %4268 = vmatprep.subr.bf16.mxu1 %v4540_v26  ;;  %4376 = vmatprep.subr.bf16.mxu0 %v4541_v27 }
  0x32   : > { %4269 = vmatpush3.bf16.msra.mxu1 %v4540_v26  ;;  %4377 = vmatpush3.bf16.msra.mxu0 %v4541_v27  ;;  %v4590_v26 = vld [vmem:[%s4716_s25 + $0x60] sm:$0xff]   ;;  %v4591_v27 = vld [vmem:[%s4716_s25 + $0x70] sm:$0xff]  }
  0x33   : > { %4270 = vmatprep.subr.bf16.mxu1 %v4550_v32  ;;  %4378 = vmatprep.subr.bf16.mxu0 %v4551_v33 }
  0x34   : > { %4175 = vmatmul.mubr.msk.bf16.gmra.mxu0 %vm666_vm0, %v4518_v22  ;;  %4223 = vmatmul.mubr.msk.bf16.gmra.mxu1 %vm666_vm0, %v4519_v23  ;;  %v4586_v22 = vld [vmem:[%s4716_s25 + $0x50] sm:$0xff]   ;;  %v4587_v23 = vld [vmem:[%s4716_s25 + $0x60] sm:$0xff]  }
  0x35   : > { %4178 = vmatprep.mubr.msk.bf16.mxu0 %vm666_vm0, %v4522_v24  ;;  %4226 = vmatprep.mubr.msk.bf16.mxu1 %vm666_vm0, %v4523_v25  ;;  %v4588_v24 = vld [vmem:[%s4716_s25 + $0x58] sm:$0xff]   ;;  %v4589_v25 = vld [vmem:[%s4716_s25 + $0x68] sm:$0xff]  }
  0x36   : > { %4271 = vmatpush3.bf16.msra.mxu1 %v4550_v32  ;;  %4379 = vmatpush3.bf16.msra.mxu0 %v4551_v33  ;;  %v4596_v32 = vld [vmem:[%s4716_s25 + $0x78] sm:$0xff]   ;;  %v4597_v33 = vld [vmem:[%s4716_s25 + $0x88] sm:$0xff]  }
  0x37   : > { %4272 = vmatprep.subr.bf16.mxu1 %v4560_v40  ;;  %4380 = vmatprep.subr.bf16.mxu0 %v4561_v41 }
  0x3a   : > { %4273 = vmatpush3.bf16.msra.mxu1 %v4560_v40  ;;  %4381 = vmatpush3.bf16.msra.mxu0 %v4561_v41  ;;  %v4604_v40 = vld [vmem:[%s4716_s25 + $0x98] sm:$0xff]   ;;  %v4605_v41 = vld [vmem:[%s4716_s25 + $0xa8] sm:$0xff]  }
  0x3c   : > { %4179 = vmatmul.mubr.msk.bf16.gmra.mxu0 %vm666_vm0, %v4524_v28  ;;  %4227 = vmatmul.mubr.msk.bf16.gmra.mxu1 %vm666_vm0, %v4525_v29  ;;  %v4592_v28 = vld [vmem:[%s4716_s25 + $0x68] sm:$0xff]   ;;  %v4593_v29 = vld [vmem:[%s4716_s25 + $0x78] sm:$0xff]  }
  0x3d   : > { %4182 = vmatprep.mubr.msk.bf16.mxu0 %vm666_vm0, %v4526_v30  ;;  %4230 = vmatprep.mubr.msk.bf16.mxu1 %vm666_vm0, %v4527_v31  ;;  %v4594_v30 = vld [vmem:[%s4716_s25 + $0x70] sm:$0xff]   ;;  %v4595_v31 = vld [vmem:[%s4716_s25 + $0x80] sm:$0xff]  }
  0x44   : > { %4183 = vmatmul.mubr.msk.bf16.gmra.mxu0 %vm666_vm0, %v4528_v34  ;;  %4231 = vmatmul.mubr.msk.bf16.gmra.mxu1 %vm666_vm0, %v4529_v35  ;;  %v4598_v34 = vld [vmem:[%s4716_s25 + $0x80] sm:$0xff]   ;;  %v4599_v35 = vld [vmem:[%s4716_s25 + $0x90] sm:$0xff]  }
  0x45   : > { %4186 = vmatprep.mubr.msk.bf16.mxu0 %vm666_vm0, %v4532_v36  ;;  %4234 = vmatprep.mubr.msk.bf16.mxu1 %vm666_vm0, %v4533_v37  ;;  %v4600_v36 = vld [vmem:[%s4716_s25 + $0x88] sm:$0xff]   ;;  %v4601_v37 = vld [vmem:[%s4716_s25 + $0x98] sm:$0xff]  }
  0x4c   : > { %4187 = vmatmul.mubr.msk.bf16.gmra.mxu0 %vm666_vm0, %v4534_v38  ;;  %4235 = vmatmul.mubr.msk.bf16.gmra.mxu1 %vm666_vm0, %v4535_v39  ;;  %v4602_v38 = vld [vmem:[%s4716_s25 + $0x90] sm:$0xff]   ;;  %v4603_v39 = vld [vmem:[%s4716_s25 + $0xa0] sm:$0xff]  }
  0x4d   : > { %4190 = vmatprep.mubr.msk.bf16.mxu0 %vm666_vm0, %v4536_v42  ;;  %4238 = vmatprep.mubr.msk.bf16.mxu1 %vm666_vm0, %v4537_v43  ;;  %v4606_v42 = vld [vmem:[%s4716_s25 + $0xa0] sm:$0xff]   ;;  %v4607_v43 = vld [vmem:[%s4716_s25 + $0xb0] sm:$0xff]  }
  0x54   : > { %4191 = vmatmul.mubr.msk.bf16.gmra.mxu0 %vm666_vm0, %v4538_v44  ;;  %4239 = vmatmul.mubr.msk.bf16.gmra.mxu1 %vm666_vm0, %v4539_v45  ;;  %v4608_v44 = vld [vmem:[%s4716_s25 + $0xa8] sm:$0xff]   ;;  %v4609_v45 = vld [vmem:[%s4716_s25 + $0xb8] sm:$0xff]  }
  0x55   : > { %4194 = vmatprep.mubr.msk.bf16.mxu0 %vm666_vm0, %v4542_v46  ;;  %4242 = vmatprep.mubr.msk.bf16.mxu1 %vm666_vm0, %v4543_v47  ;;  %v4610_v46 = vld [vmem:[%s4716_s25 + $0xb0] sm:$0xff]   ;;  %v4611_v47 = vld [vmem:[%s4716_s25 + $0xc0] sm:$0xff]  }
  0x5c   : > { %4195 = vmatmul.mubr.msk.bf16.gmra.mxu0 %vm666_vm0, %v4544_v48  ;;  %4243 = vmatmul.mubr.msk.bf16.gmra.mxu1 %vm666_vm0, %v4545_v49  ;;  %v4612_v48 = vld [vmem:[%s4716_s25 + $0xb8] sm:$0xff]   ;;  %v4613_v49 = vld [vmem:[%s4716_s25 + $0xc8] sm:$0xff]  }
  0x5d   : > { %4198 = vmatprep.mubr.msk.bf16.mxu0 %vm666_vm0, %v4546_v50  ;;  %4246 = vmatprep.mubr.msk.bf16.mxu1 %vm666_vm0, %v4547_v51  ;;  %v4614_v50 = vld [vmem:[%s4716_s25 + $0xd0] sm:$0xff]   ;;  %v4615_v51 = vld [vmem:[%s4716_s25 + $0xe0] sm:$0xff]  }
  0x64   : > { %4199 = vmatmul.mubr.msk.bf16.gmra.mxu0 %vm666_vm0, %v4548_v52  ;;  %4247 = vmatmul.mubr.msk.bf16.gmra.mxu1 %vm666_vm0, %v4549_v53  ;;  %v4616_v52 = vld [vmem:[%s4716_s25 + $0xd8] sm:$0xff]   ;;  %v4617_v53 = vld [vmem:[%s4716_s25 + $0xe8] sm:$0xff]  }
  0x65   : > { %4202 = vmatprep.mubr.msk.bf16.mxu0 %vm666_vm0, %v4552_v54  ;;  %4250 = vmatprep.mubr.msk.bf16.mxu1 %vm666_vm0, %v4553_v55  ;;  %v4618_v54 = vld [vmem:[%s4716_s25 + $0xe0] sm:$0xff]   ;;  %v4619_v55 = vld [vmem:[%s4716_s25 + $0xf0] sm:$0xff]  }
  0x6c   : > { %4203 = vmatmul.mubr.msk.bf16.gmra.mxu0 %vm666_vm0, %v4554_v56  ;;  %4251 = vmatmul.mubr.msk.bf16.gmra.mxu1 %vm666_vm0, %v4555_v57 }
  0x6d   : > { %4206 = vmatprep.mubr.msk.bf16.mxu0 %vm666_vm0, %v4556_v58  ;;  %4254 = vmatprep.mubr.msk.bf16.mxu1 %vm666_vm0, %v4557_v59 }
  0x74   : > { %4207 = vmatmul.mubr.msk.bf16.gmra.mxu0 %vm666_vm0, %v4558_v60  ;;  %4255 = vmatmul.mubr.msk.bf16.gmra.mxu1 %vm666_vm0, %v4559_v61 }
  0x75   : > { %4210 = vmatprep.mubr.msk.bf16.mxu0 %vm666_vm0, %v4562_v62  ;;  %4258 = vmatprep.mubr.msk.bf16.mxu1 %vm666_vm0, %v4563_v63  ;;  %v4620_v62 = vld [vmem:[%s4716_s25 + $0xe8] sm:$0xff]   ;;  %v4621_v63 = vld [vmem:[%s4716_s25 + $0xf8] sm:$0xff]  }
  0x7c   : > { %4211 = vmatmul.mubr.msk.bf16.gmra.mxu0 %vm666_vm0, %v4564_v0  ;;  %4259 = vmatmul.mubr.msk.bf16.gmra.mxu1 %vm666_vm0, %v4565_v1  ;;  %v4622_v0 = vld [vmem:[%s4716_s25 + $0xf0] sm:$0xff]   ;;  %v4623_v1 = vld [vmem:[%s4716_s25 + $0x100] sm:$0xff]  }
  0x7d   : > { %4274 = vmatprep.mubr.msk.bf16.mxu1 %vm666_vm0, %v4566_v2  ;;  %4382 = vmatprep.mubr.msk.bf16.mxu0 %vm666_vm0, %v4567_v3 }
  0x84   : > { %4275 = vmatmul.mubr.msk.bf16.vlgmr.msra.gmra.mxu1 %vm666_vm0, %v4568_v4  ;;  %4383 = vmatmul.mubr.msk.bf16.vlgmr.msra.gmra.mxu0 %vm666_vm0, %v4569_v5 }
  0x85   : > { %4278 = vmatprep.mubr.msk.bf16.mxu1 %vm666_vm0, %v4570_v6  ;;  %4386 = vmatprep.mubr.msk.bf16.mxu0 %vm666_vm0, %v4571_v7 }
  0x8c   : > { %4279 = vmatmul.mubr.msk.bf16.gmra.mxu1 %vm666_vm0, %v4572_v8  ;;  %4387 = vmatmul.mubr.msk.bf16.gmra.mxu0 %vm666_vm0, %v4573_v9 }
  0x8d   : > { %4282 = vmatprep.mubr.msk.bf16.mxu1 %vm666_vm0, %v4574_v10  ;;  %4390 = vmatprep.mubr.msk.bf16.mxu0 %vm666_vm0, %v4575_v11  ;;  %v4624_v10 = vld [vmem:[%s4716_s25 + $0xf8] sm:$0xff]   ;;  %v4625_v11 = vld [vmem:[%s4716_s25 + $0x108] sm:$0xff]  }
  0x94   : > { %4283 = vmatmul.mubr.msk.bf16.gmra.mxu1 %vm666_vm0, %v4576_v12  ;;  %4391 = vmatmul.mubr.msk.bf16.gmra.mxu0 %vm666_vm0, %v4577_v13  ;;  %v4626_v12 = vld [vmem:[%s4716_s25 + $0x100] sm:$0xff]   ;;  %v4627_v13 = vld [vmem:[%s4716_s25 + $0x110] sm:$0xff]  }
  0x95   : > { %4286 = vmatprep.mubr.msk.bf16.mxu1 %vm666_vm0, %v4578_v14  ;;  %4394 = vmatprep.mubr.msk.bf16.mxu0 %vm666_vm0, %v4579_v15 }
  0x9c   : > { %4287 = vmatmul.mubr.msk.bf16.gmra.mxu1 %vm666_vm0, %v4580_v16  ;;  %4395 = vmatmul.mubr.msk.bf16.gmra.mxu0 %vm666_vm0, %v4581_v17 }
  0x9d   : > { %4290 = vmatprep.mubr.msk.bf16.mxu1 %vm666_vm0, %v4582_v18  ;;  %4398 = vmatprep.mubr.msk.bf16.mxu0 %vm666_vm0, %v4583_v19 }
  0xa4   : > { %4291 = vmatmul.mubr.msk.bf16.gmra.mxu1 %vm666_vm0, %v4584_v20  ;;  %4399 = vmatmul.mubr.msk.bf16.gmra.mxu0 %vm666_vm0, %v4585_v21 }
  0xa5   : > { %4294 = vmatprep.mubr.msk.bf16.mxu1 %vm666_vm0, %v4586_v22  ;;  %4402 = vmatprep.mubr.msk.bf16.mxu0 %vm666_vm0, %v4587_v23  ;;  %v4628_v22 = vld [vmem:[%s4716_s25 + $0x108] sm:$0xff]   ;;  %v4629_v23 = vld [vmem:[%s4716_s25 + $0x118] sm:$0xff]  }
  0xac   : > { %4295 = vmatmul.mubr.msk.bf16.gmra.mxu1 %vm666_vm0, %v4588_v24  ;;  %4403 = vmatmul.mubr.msk.bf16.gmra.mxu0 %vm666_vm0, %v4589_v25  ;;  %v4630_v24 = vld [vmem:[%s4716_s25 + $0x110] sm:$0xff]   ;;  %v4631_v25 = vld [vmem:[%s4716_s25 + $0x120] sm:$0xff]  }
  0xad   : > { %4298 = vmatprep.mubr.msk.bf16.mxu1 %vm666_vm0, %v4590_v26  ;;  %4406 = vmatprep.mubr.msk.bf16.mxu0 %vm666_vm0, %v4591_v27 }
  0xb4   : > { %4299 = vmatmul.mubr.msk.bf16.gmra.mxu1 %vm666_vm0, %v4592_v28  ;;  %4407 = vmatmul.mubr.msk.bf16.gmra.mxu0 %vm666_vm0, %v4593_v29 }
  0xb5   : > { %4302 = vmatprep.mubr.msk.bf16.mxu1 %vm666_vm0, %v4594_v30  ;;  %4410 = vmatprep.mubr.msk.bf16.mxu0 %vm666_vm0, %v4595_v31 }
  0xbc   : > { %4303 = vmatmul.mubr.msk.bf16.gmra.mxu1 %vm666_vm0, %v4596_v32  ;;  %4411 = vmatmul.mubr.msk.bf16.gmra.mxu0 %vm666_vm0, %v4597_v33 }
  0xbd   : > { %4306 = vmatprep.mubr.msk.bf16.mxu1 %vm666_vm0, %v4598_v34  ;;  %4414 = vmatprep.mubr.msk.bf16.mxu0 %vm666_vm0, %v4599_v35  ;;  %v4632_v34 = vld [vmem:[%s4716_s25 + $0x118] sm:$0xff]   ;;  %v4633_v35 = vld [vmem:[%s4716_s25 + $0x128] sm:$0xff]  }
  0xc4   : > { %4307 = vmatmul.mubr.msk.bf16.gmra.mxu1 %vm666_vm0, %v4600_v36  ;;  %4415 = vmatmul.mubr.msk.bf16.gmra.mxu0 %vm666_vm0, %v4601_v37  ;;  %v4634_v36 = vld [vmem:[%s4716_s25 + $0x120] sm:$0xff]   ;;  %v4635_v37 = vld [vmem:[%s4716_s25 + $0x130] sm:$0xff]  }
  0xc5   : > { %4310 = vmatprep.mubr.msk.bf16.mxu1 %vm666_vm0, %v4602_v38  ;;  %4418 = vmatprep.mubr.msk.bf16.mxu0 %vm666_vm0, %v4603_v39 }
  0xcc   : > { %4311 = vmatmul.mubr.msk.bf16.gmra.mxu1 %vm666_vm0, %v4604_v40  ;;  %4419 = vmatmul.mubr.msk.bf16.gmra.mxu0 %vm666_vm0, %v4605_v41 }
  0xcd   : > { %4314 = vmatprep.mubr.msk.bf16.mxu1 %vm666_vm0, %v4606_v42  ;;  %4422 = vmatprep.mubr.msk.bf16.mxu0 %vm666_vm0, %v4607_v43 }
  0xd4   : > { %4315 = vmatmul.mubr.msk.bf16.gmra.mxu1 %vm666_vm0, %v4608_v44  ;;  %4423 = vmatmul.mubr.msk.bf16.gmra.mxu0 %vm666_vm0, %v4609_v45 }
  0xd5   : > { %4318 = vmatprep.mubr.msk.bf16.mxu1 %vm666_vm0, %v4610_v46  ;;  %4426 = vmatprep.mubr.msk.bf16.mxu0 %vm666_vm0, %v4611_v47  ;;  %v4636_v46 = vld [vmem:[%s4716_s25 + $0x128] sm:$0xff]   ;;  %v4637_v47 = vld [vmem:[%s4716_s25 + $0x138] sm:$0xff]  }
  0xdc   : > { %4319 = vmatmul.mubr.msk.bf16.gmra.mxu1 %vm666_vm0, %v4612_v48  ;;  %4427 = vmatmul.mubr.msk.bf16.gmra.mxu0 %vm666_vm0, %v4613_v49  ;;  %v4638_v48 = vld [vmem:[%s4716_s25 + $0x130] sm:$0xff]   ;;  %v4639_v49 = vld [vmem:[%s4716_s25 + $0x140] sm:$0xff]  }
  0xdd   : > { %4322 = vmatprep.mubr.msk.bf16.mxu1 %vm666_vm0, %v4614_v50  ;;  %4430 = vmatprep.mubr.msk.bf16.mxu0 %vm666_vm0, %v4615_v51 }
  0xe4   : > { %v4960_v56 = vpop.f32.mrf.mxu0  ;;  %v4962_v57 = vpop.f32.mrf.mxu1  ;;  %4323 = vmatmul.mubr.msk.bf16.gmra.mxu1 %vm666_vm0, %v4616_v52  ;;  %4431 = vmatmul.mubr.msk.bf16.gmra.mxu0 %vm666_vm0, %v4617_v53 }
  0xe5   : > { %5570 = vst [vmem:[#allocation2_spill] sm:$0xff] %v4962_v57  ;;  %4326 = vmatprep.mubr.msk.bf16.mxu1 %vm666_vm0, %v4618_v54  ;;  %4434 = vmatprep.mubr.msk.bf16.mxu0 %vm666_vm0, %v4619_v55 }
  0xe6   : > { %v4968_v58 = vpop.f32.mrf.mxu0  ;;  %v4970_v59 = vpop.f32.mrf.mxu1 }
  0xe7   : > { %5571 = vst [vmem:[#allocation3_spill] sm:$0xff] %v4970_v59 }
  0xe8   : > { %v4972_v60 = vpop.f32.mrf.mxu0  ;;  %v4974_v61 = vpop.f32.mrf.mxu1 }
  0xe9   : > { %5572 = vst [vmem:[#allocation4_spill] sm:$0xff] %v4974_v61 }
  0xea   : > { %v4980_v2 = vpop.f32.mrf.mxu0  ;;  %v4982_v3 = vpop.f32.mrf.mxu1 }
  0xeb   : > { %5573 = vst [vmem:[#allocation5_spill] sm:$0xff] %v4982_v3 }
  0xec   : > { %v4984_v4 = vpop.f32.mrf.mxu0  ;;  %v4986_v5 = vpop.f32.mrf.mxu1  ;;  %4327 = vmatmul.mubr.msk.bf16.gmra.mxu1 %vm666_vm0, %v4620_v62  ;;  %4435 = vmatmul.mubr.msk.bf16.gmra.mxu0 %vm666_vm0, %v4621_v63 }
  0xed   : > { %5574 = vst [vmem:[#allocation6_spill] sm:$0xff] %v4986_v5  ;;  %4330 = vmatprep.mubr.msk.bf16.mxu1 %vm666_vm0, %v4622_v0  ;;  %4438 = vmatprep.mubr.msk.bf16.mxu0 %vm666_vm0, %v4623_v1  ;;  %v4640_v0 = vld [vmem:[%s4716_s25 + $0x138] sm:$0xff]   ;;  %v4641_v1 = vld [vmem:[%s4716_s25 + $0x148] sm:$0xff]  }
  0xee   : > { %v4992_v6 = vpop.f32.mrf.mxu0  ;;  %v4994_v7 = vpop.f32.mrf.mxu1 }
  0xef   : > { %5575 = vst [vmem:[#allocation7_spill] sm:$0xff] %v4994_v7 }
  0xf0   : > { %v4996_v8 = vpop.f32.mrf.mxu0  ;;  %v4998_v9 = vpop.f32.mrf.mxu1 }
  0xf1   : > { %5576 = vst [vmem:[#allocation8_spill] sm:$0xff] %v4998_v9 }
  0xf2   : > { %v5004_v14 = vpop.f32.mrf.mxu0  ;;  %v5006_v15 = vpop.f32.mrf.mxu1 }
  0xf3   : > { %5577 = vst [vmem:[#allocation9_spill] sm:$0xff] %v5006_v15 }
  0xf4   : > { %v5008_v16 = vpop.f32.mrf.mxu0  ;;  %v5010_v17 = vpop.f32.mrf.mxu1  ;;  %4331 = vmatmul.mubr.msk.bf16.gmra.mxu1 %vm666_vm0, %v4624_v10  ;;  %4439 = vmatmul.mubr.msk.bf16.gmra.mxu0 %vm666_vm0, %v4625_v11  ;;  %v4642_v10 = vld [vmem:[%s4716_s25 + $0x140] sm:$0xff]   ;;  %v4643_v11 = vld [vmem:[%s4716_s25 + $0x150] sm:$0xff]  }
  0xf5   : > { %5578 = vst [vmem:[#allocation10_spill] sm:$0xff] %v5010_v17  ;;  %4334 = vmatprep.mubr.msk.bf16.mxu1 %vm666_vm0, %v4626_v12  ;;  %4442 = vmatprep.mubr.msk.bf16.mxu0 %vm666_vm0, %v4627_v13 }
  0xf6   : > { %v5016_v18 = vpop.f32.mrf.mxu0  ;;  %v5018_v19 = vpop.f32.mrf.mxu1 }
  0xf7   : > { %5579 = vst [vmem:[#allocation11_spill] sm:$0xff] %v5018_v19 }
  0xf8   : > { %v5020_v20 = vpop.f32.mrf.mxu0  ;;  %v5022_v21 = vpop.f32.mrf.mxu1 }
  0xf9   : > { %5580 = vst [vmem:[#allocation12_spill] sm:$0xff] %v5022_v21 }
  0xfa   : > { %v5028_v26 = vpop.f32.mrf.mxu0  ;;  %v5030_v27 = vpop.f32.mrf.mxu1 }
  0xfb   : > { %5581 = vst [vmem:[#allocation13_spill] sm:$0xff] %v5030_v27 }
  0xfc   : > { %v5032_v28 = vpop.f32.mrf.mxu0  ;;  %v5034_v29 = vpop.f32.mrf.mxu1  ;;  %4335 = vmatmul.mubr.msk.bf16.gmra.mxu1 %vm666_vm0, %v4628_v22  ;;  %4443 = vmatmul.mubr.msk.bf16.gmra.mxu0 %vm666_vm0, %v4629_v23 }
  0xfd   : > { %5582 = vst [vmem:[#allocation14_spill] sm:$0xff] %v5034_v29  ;;  %4338 = vmatprep.mubr.msk.bf16.mxu1 %vm666_vm0, %v4630_v24  ;;  %4446 = vmatprep.mubr.msk.bf16.mxu0 %vm666_vm0, %v4631_v25  ;;  %v4661_v29 = vld [vmem:[%s4716_s25 + $0x198] sm:$0xff]  }
  0xfe   : > { %v5040_v30 = vpop.f32.mrf.mxu0  ;;  %v5042_v31 = vpop.f32.mrf.mxu1 }
  0xff   : > { %5583 = vst [vmem:[#allocation15_spill] sm:$0xff] %v5042_v31 }
 0x100   : > { %v5044_v32 = vpop.f32.mrf.mxu0  ;;  %v5046_v33 = vpop.f32.mrf.mxu1 }
 0x101   : > { %5584 = vst [vmem:[#allocation16_spill] sm:$0xff] %v5046_v33 }
 0x102   : > { %v5052_v38 = vpop.f32.mrf.mxu0  ;;  %v5054_v39 = vpop.f32.mrf.mxu1 }
 0x103   : > { %5585 = vst [vmem:[#allocation17_spill] sm:$0xff] %v5054_v39 }
 0x104   : > { %v5056_v40 = vpop.f32.mrf.mxu0  ;;  %v5058_v41 = vpop.f32.mrf.mxu1  ;;  %4339 = vmatmul.mubr.msk.bf16.gmra.mxu1 %vm666_vm0, %v4632_v34  ;;  %4447 = vmatmul.mubr.msk.bf16.gmra.mxu0 %vm666_vm0, %v4633_v35 }
 0x105   : > { %5586 = vst [vmem:[#allocation18_spill] sm:$0xff] %v5058_v41  ;;  %4342 = vmatprep.mubr.msk.bf16.mxu1 %vm666_vm0, %v4634_v36  ;;  %4450 = vmatprep.mubr.msk.bf16.mxu0 %vm666_vm0, %v4635_v37  ;;  %v4644_v36 = vld [vmem:[%s4716_s25 + $0x148] sm:$0xff]   ;;  %v4645_v37 = vld [vmem:[%s4716_s25 + $0x158] sm:$0xff]  }
 0x106   : > { %v5064_v42 = vpop.f32.mrf.mxu0  ;;  %v5066_v43 = vpop.f32.mrf.mxu1  ;;  %v4657_v41 = vld [vmem:[%s4716_s25 + $0x188] sm:$0xff]  }
 0x107   : > { %5587 = vst [vmem:[#allocation19_spill] sm:$0xff] %v5066_v43 }
 0x108   : > { %v5068_v44 = vpop.f32.mrf.mxu0  ;;  %v5070_v45 = vpop.f32.mrf.mxu1 }
 0x109   : > { %5588 = vst [vmem:[#allocation20_spill] sm:$0xff] %v5070_v45 }
 0x10a   : > { %v5076_v50 = vpop.f32.mrf.mxu0  ;;  %v5078_v51 = vpop.f32.mrf.mxu1 }
 0x10b   : > { %5589 = vst [vmem:[#allocation21_spill] sm:$0xff] %v5078_v51 }
 0x10c   : > { %v5080_v52 = vpop.f32.mrf.mxu0  ;;  %v5082_v53 = vpop.f32.mrf.mxu1  ;;  %4343 = vmatmul.mubr.msk.bf16.gmra.mxu1 %vm666_vm0, %v4636_v46  ;;  %4451 = vmatmul.mubr.msk.bf16.gmra.mxu0 %vm666_vm0, %v4637_v47  ;;  %v4646_v46 = vld [vmem:[%s4716_s25 + $0x150] sm:$0xff]   ;;  %v4647_v47 = vld [vmem:[%s4716_s25 + $0x160] sm:$0xff]  }
 0x10d   : > { %5590 = vst [vmem:[#allocation22_spill] sm:$0xff] %v5082_v53  ;;  %4346 = vmatprep.mubr.msk.bf16.mxu1 %vm666_vm0, %v4638_v48  ;;  %4454 = vmatprep.mubr.msk.bf16.mxu0 %vm666_vm0, %v4639_v49  ;;  %v4653_v53 = vld [vmem:[%s4716_s25 + $0x178] sm:$0xff]  }
 0x10e   : > { %v5088_v54 = vpop.f32.mrf.mxu0  ;;  %v5090_v55 = vpop.f32.mrf.mxu1 }
 0x10f   : > { %5591 = vst [vmem:[#allocation23_spill] sm:$0xff] %v5090_v55 }
 0x110   : > { %v5092_v62 = vpop.f32.mrf.mxu0  ;;  %v5094_v63 = vpop.f32.mrf.mxu1 }
 0x111   : > { %5592 = vst [vmem:[#allocation24_spill] sm:$0xff] %v5094_v63 }
 0x112   : > { %v5100_v12 = vpop.f32.mrf.mxu0  ;;  %v5102_v13 = vpop.f32.mrf.mxu1 }
 0x113   : > { %5593 = vst [vmem:[#allocation25_spill] sm:$0xff] %v5102_v13 }
 0x114   : > { %v5104_v22 = vpop.f32.mrf.mxu0  ;;  %v5106_v23 = vpop.f32.mrf.mxu1  ;;  %4347 = vmatmul.mubr.msk.bf16.gmra.mxu1 %vm666_vm0, %v4640_v0  ;;  %4455 = vmatmul.mubr.msk.bf16.gmra.mxu0 %vm666_vm0, %v4641_v1 }
 0x115   : > { %5594 = vst [vmem:[#allocation26_spill] sm:$0xff] %v5106_v23  ;;  %4350 = vmatprep.mubr.msk.bf16.mxu1 %vm666_vm0, %v4642_v10  ;;  %4458 = vmatprep.mubr.msk.bf16.mxu0 %vm666_vm0, %v4643_v11  ;;  %v4649_v23 = vld [vmem:[%s4716_s25 + $0x168] sm:$0xff]  }
 0x116   : > { %v5112_v24 = vpop.f32.mrf.mxu0  ;;  %v5114_v25 = vpop.f32.mrf.mxu1 }
 0x117   : > { %5595 = vst [vmem:[#allocation27_spill] sm:$0xff] %v5114_v25 }
 0x118   : > { %v5116_v34 = vpop.f32.mrf.mxu0  ;;  %v5118_v35 = vpop.f32.mrf.mxu1 }
 0x119   : > { %5596 = vst [vmem:[#allocation28_spill] sm:$0xff] %v5118_v35 }
 0x11a   : > { %v5124_v48 = vpop.f32.mrf.mxu0  ;;  %v5126_v49 = vpop.f32.mrf.mxu1 }
 0x11b   : > { %5597 = vst [vmem:[#allocation29_spill] sm:$0xff] %v5126_v49  ;;  %v4648_v49 = vld [vmem:[%s4716_s25 + $0x158] sm:$0xff]  }
 0x11c   : > { %v5128_v0 = vpop.f32.mrf.mxu0  ;;  %v5130_v1 = vpop.f32.mrf.mxu1  ;;  %4351 = vmatmul.mubr.msk.bf16.gmra.mxu1 %vm666_vm0, %v4644_v36  ;;  %4459 = vmatmul.mubr.msk.bf16.gmra.mxu0 %vm666_vm0, %v4645_v37  ;;  %v4651_v36 = vld [vmem:[%s4716_s25 + $0x170] sm:$0xff]  }
 0x11d   : > { %5598 = vst [vmem:[#allocation30_spill] sm:$0xff] %v5130_v1  ;;  %4354 = vmatprep.mubr.msk.bf16.mxu1 %vm666_vm0, %v4646_v46  ;;  %4462 = vmatprep.mubr.msk.bf16.mxu0 %vm666_vm0, %v4647_v47  ;;  %v4650_v1 = vld [vmem:[%s4716_s25 + $0x160] sm:$0xff]  }
 0x11e   : > { %v5136_v10 = vpop.f32.mrf.mxu0  ;;  %v5138_v11 = vpop.f32.mrf.mxu1 }
 0x11f   : > { %5599 = vst [vmem:[#allocation31_spill] sm:$0xff] %v5138_v11 }
 0x120   : > { %v5140_v35 = vpop.f32.mrf.mxu0  ;;  %v5142_v25 = vpop.f32.mrf.mxu1 }
 0x121   : > { %5600 = vst [vmem:[#allocation32_spill] sm:$0xff] %v5142_v25 }
 0x122   : > { %v5148_v37 = vpop.f32.mrf.mxu0  ;;  %v5150_v46 = vpop.f32.mrf.mxu1 }
 0x123   : > { %5601 = vst [vmem:[#allocation33_spill] sm:$0xff] %v5150_v46  ;;  %v4652_v46 = vld [vmem:[%s4716_s25 + $0x168] sm:$0xff]  }
 0x124   : > { %v5152_v47 = vpop.f32.mrf.mxu0  ;;  %v5154_v13 = vpop.f32.mrf.mxu1  ;;  %4355 = vmatmul.mubr.msk.bf16.gmra.mxu1 %vm666_vm0, %v4648_v49  ;;  %4463 = vmatmul.mubr.msk.bf16.gmra.mxu0 %vm666_vm0, %v4649_v23  ;;  %v4655_v49 = vld [vmem:[%s4716_s25 + $0x180] sm:$0xff]  }
 0x125   : > { %5602 = vst [vmem:[#allocation34_spill] sm:$0xff] %v5154_v13  ;;  %4358 = vmatprep.mubr.msk.bf16.mxu1 %vm666_vm0, %v4650_v1  ;;  %4466 = vmatprep.mubr.msk.bf16.mxu0 %vm666_vm0, %v4651_v36  ;;  %v4654_v13 = vld [vmem:[%s4716_s25 + $0x170] sm:$0xff]  }
 0x126   : > { %v5160_v25 = vpop.f32.mrf.mxu0  ;;  %v5162_v11 = vpop.f32.mrf.mxu1 }
 0x127   : > { %5603 = vst [vmem:[#allocation35_spill] sm:$0xff] %v5162_v11 }
 0x128   : > { %v5164_v63 = vpop.f32.mrf.mxu0  ;;  %v5166_v55 = vpop.f32.mrf.mxu1 }
 0x129   : > { %5604 = vst [vmem:[#allocation36_spill] sm:$0xff] %v5166_v55 }
 0x12a   : > { %v5172_v23 = vpop.f32.mrf.mxu0  ;;  %v5174_v1 = vpop.f32.mrf.mxu1 }
 0x12b   : > { %5605 = vst [vmem:[#allocation37_spill] sm:$0xff] %v5174_v1  ;;  %v4656_v1 = vld [vmem:[%s4716_s25 + $0x178] sm:$0xff]  }
 0x12c   : > { %v5176_v36 = vpop.f32.mrf.mxu0  ;;  %v5178_v51 = vpop.f32.mrf.mxu1  ;;  %4359 = vmatmul.mubr.msk.bf16.gmra.mxu1 %vm666_vm0, %v4652_v46  ;;  %4467 = vmatmul.mubr.msk.bf16.gmra.mxu0 %vm666_vm0, %v4653_v53  ;;  %v4659_v46 = vld [vmem:[%s4716_s25 + $0x190] sm:$0xff]  }
 0x12d   : > { %5606 = vst [vmem:[#allocation38_spill] sm:$0xff] %v5178_v51  ;;  %4362 = vmatprep.mubr.msk.bf16.mxu1 %vm666_vm0, %v4654_v13  ;;  %4470 = vmatprep.mubr.msk.bf16.mxu0 %vm666_vm0, %v4655_v49  ;;  %v4658_v51 = vld [vmem:[%s4716_s25 + $0x180] sm:$0xff]  }
 0x12e   : > { %v5184_v55 = vpop.f32.mrf.mxu0  ;;  %v5186_v11 = vpop.f32.mrf.mxu1 }
 0x12f   : > { %5607 = vst [vmem:[#allocation39_spill] sm:$0xff] %v5186_v11 }
 0x130   : > { %v5188_v45 = vpop.f32.mrf.mxu0  ;;  %v5190_v43 = vpop.f32.mrf.mxu1 }
 0x131   : > { %5608 = vst [vmem:[#allocation40_spill] sm:$0xff] %v5190_v43 }
 0x132   : > { %v5196_v39 = vpop.f32.mrf.mxu0  ;;  %v5198_v53 = vpop.f32.mrf.mxu1 }
 0x133   : > { %5609 = vst [vmem:[#allocation41_spill] sm:$0xff] %v5198_v53  ;;  %v4660_v53 = vld [vmem:[%s4716_s25 + $0x188] sm:$0xff]  }
 0x134   : > { %v5200_v13 = vpop.f32.mrf.mxu0  ;;  %v5202_v49 = vpop.f32.mrf.mxu1  ;;  %4363 = vmatmul.mubr.msk.bf16.gmra.mxu1 %vm666_vm0, %v4656_v1  ;;  %4471 = vmatmul.mubr.msk.bf16.gmra.mxu0 %vm666_vm0, %v4657_v41 }
 0x135   : > { %5610 = vst [vmem:[#allocation42_spill] sm:$0xff] %v5202_v49  ;;  %4366 = vmatprep.mubr.msk.bf16.mxu1 %vm666_vm0, %v4658_v51  ;;  %4474 = vmatprep.mubr.msk.bf16.mxu0 %vm666_vm0, %v4659_v46 }
 0x136   : > { %v5208_v43 = vpop.f32.mrf.mxu0  ;;  %v5210_v11 = vpop.f32.mrf.mxu1 }
 0x137   : > { %5611 = vst [vmem:[#allocation43_spill] sm:$0xff] %v5210_v11 }
 0x138   : > { %v5212_v33 = vpop.f32.mrf.mxu0  ;;  %v5214_v31 = vpop.f32.mrf.mxu1 }
 0x139   : > { %5612 = vst [vmem:[#allocation44_spill] sm:$0xff] %v5214_v31 }
 0x13a   : > { %v5218_v27 = vpop.f32.mrf.mxu0  ;;  %v5220_v49 = vpop.f32.mrf.mxu1 }
 0x13b   : > { %5613 = vst [vmem:[#allocation45_spill] sm:$0xff] %v5220_v49 }
 0x13c   : > { %v5222_v1 = vpop.f32.mrf.mxu0  ;;  %v5224_v41 = vpop.f32.mrf.mxu1  ;;  %4367 = vmatmul.mubr.msk.bf16.gmra.mxu1 %vm666_vm0, %v4660_v53  ;;  %4475 = vmatmul.mubr.msk.bf16.gmra.mxu0 %vm666_vm0, %v4661_v29 }
 0x13d   : > { %5614 = vst [vmem:[#allocation46_spill] sm:$0xff] %v5224_v41 }
 0x13e   : > { %v5228_v51 = vpop.f32.mrf.mxu0  ;;  %v5230_v46 = vpop.f32.mrf.mxu1 }
 0x13f   : > { %5615 = vst [vmem:[#allocation47_spill] sm:$0xff] %v5230_v46 }
 0x140   : > { %v5232_v11 = vpop.f32.mrf.mxu0  ;;  %v5234_v31 = vpop.f32.mrf.mxu1 }
 0x141   : > { %5616 = vst [vmem:[#allocation48_spill] sm:$0xff] %v5234_v31 }
 0x142   : > { %v5236_v21 = vpop.f32.mrf.mxu0  ;;  %v5238_v19 = vpop.f32.mrf.mxu1 }
 0x143   : > { %5617 = vst [vmem:[#allocation49_spill] sm:$0xff] %v5238_v19 }
 0x144   : > { %v4276_v49 = vpop.f32.mrf.mxu1  ;;  %v4384_v17 = vpop.f32.mrf.mxu0 }
 0x145   : > { %v1691_v41 = vadd.f32 %v4276_v49, %v4960_v56 }
 0x146   : > { %v1682_v15 = vpop.f32.mrf.mxu1  ;;  %v2629_v53 = vpop.f32.mrf.mxu0 }
 0x147   : > { %v5241_v9 = vadd.f32 %v4384_v17, %v1691_v41  ;;  %v1683_v29 = vadd.f32 %v1682_v15, %v4968_v58 }
 0x148   : > { %v4277_v7 = vpop.f32.mrf.mxu1  ;;  %v4385_v46 = vpop.f32.mrf.mxu0 }
 0x149   : > { %v5244_v5 = vadd.f32 %v2629_v53, %v1683_v29  ;;  %v1694_v31 = vadd.f32 %v4277_v7, %v4972_v60 }
 0x14a   : > { %v1685_v3 = vpop.f32.mrf.mxu1  ;;  %v2632_v61 = vpop.f32.mrf.mxu0 }
 0x14b   : > { %v5247_v59 = vadd.f32 %v4385_v46, %v1694_v31  ;;  %v1686_v19 = vadd.f32 %v1685_v3, %v4980_v2 }
 0x14c   : > { %v4280_v57 = vpop.f32.mrf.mxu1  ;;  %v4388_v56 = vpop.f32.mrf.mxu0 }
 0x14d   : > { %v5250_v49 = vadd.f32 %v2632_v61, %v1686_v19  ;;  %v1707_v17 = vadd.f32 %v4280_v57, %v4984_v4 }
 0x14e   : > { %v1698_v41 = vpop.f32.mrf.mxu1  ;;  %v2645_v58 = vpop.f32.mrf.mxu0 }
 0x14f   : > { %v5253_v15 = vadd.f32 %v4388_v56, %v1707_v17  ;;  %v1699_v53 = vadd.f32 %v1698_v41, %v4992_v6 }
 0x150   : > { %v4281_v29 = vpop.f32.mrf.mxu1  ;;  %v4389_v60 = vpop.f32.mrf.mxu0 }
 0x151   : > { %v5256_v7 = vadd.f32 %v2645_v58, %v1699_v53  ;;  %v1710_v31 = vadd.f32 %v4281_v29, %v4996_v8 }
 0x152   : > { %v1701_v46 = vpop.f32.mrf.mxu1  ;;  %v2648_v2 = vpop.f32.mrf.mxu0 }
 0x153   : > { %v5259_v3 = vadd.f32 %v4389_v60, %v1710_v31  ;;  %v1702_v61 = vadd.f32 %v1701_v46, %v5004_v14 }
 0x154   : > { %v4284_v19 = vpop.f32.mrf.mxu1  ;;  %v4392_v57 = vpop.f32.mrf.mxu0 }
 0x155   : > { %v5262_v4 = vadd.f32 %v2648_v2, %v1702_v61  ;;  %v1723_v56 = vadd.f32 %v4284_v19, %v5008_v16 }
 0x156   : > { %v1714_v17 = vpop.f32.mrf.mxu1  ;;  %v2661_v6 = vpop.f32.mrf.mxu0 }
 0x157   : > { %v5265_v41 = vadd.f32 %v4392_v57, %v1723_v56  ;;  %v1715_v58 = vadd.f32 %v1714_v17, %v5016_v18 }
 0x158   : > { %v4285_v53 = vpop.f32.mrf.mxu1  ;;  %v4393_v8 = vpop.f32.mrf.mxu0 }
 0x159   : > { %v5268_v29 = vadd.f32 %v2661_v6, %v1715_v58  ;;  %v1726_v60 = vadd.f32 %v4285_v53, %v5020_v20 }
 0x15a   : > { %v1717_v31 = vpop.f32.mrf.mxu1  ;;  %v2664_v14 = vpop.f32.mrf.mxu0 }
 0x15b   : > { %v5271_v46 = vadd.f32 %v4393_v8, %v1726_v60  ;;  %v1718_v2 = vadd.f32 %v1717_v31, %v5028_v26 }
 0x15c   : > { %v4288_v61 = vpop.f32.mrf.mxu1  ;;  %v4396_v16 = vpop.f32.mrf.mxu0 }
 0x15d   : > { %v5274_v19 = vadd.f32 %v2664_v14, %v1718_v2  ;;  %v1739_v57 = vadd.f32 %v4288_v61, %v5032_v28 }
 0x15e   : > { %v1730_v56 = vpop.f32.mrf.mxu1  ;;  %v2677_v18 = vpop.f32.mrf.mxu0 }
 0x15f   : > { %v5277_v17 = vadd.f32 %v4396_v16, %v1739_v57  ;;  %v1731_v6 = vadd.f32 %v1730_v56, %v5040_v30 }
 0x160   : > { %v4289_v58 = vpop.f32.mrf.mxu1  ;;  %v4397_v20 = vpop.f32.mrf.mxu0 }
 0x161   : > { %v5280_v53 = vadd.f32 %v2677_v18, %v1731_v6  ;;  %v1742_v8 = vadd.f32 %v4289_v58, %v5044_v32 }
 0x162   : > { %v1733_v60 = vpop.f32.mrf.mxu1  ;;  %v2680_v26 = vpop.f32.mrf.mxu0 }
 0x163   : > { %v5283_v31 = vadd.f32 %v4397_v20, %v1742_v8  ;;  %v1734_v14 = vadd.f32 %v1733_v60, %v5052_v38 }
 0x164   : > { %v4292_v2 = vpop.f32.mrf.mxu1  ;;  %v4400_v28 = vpop.f32.mrf.mxu0 }
 0x165   : > { %v5286_v61 = vadd.f32 %v2680_v26, %v1734_v14  ;;  %v1755_v16 = vadd.f32 %v4292_v2, %v5056_v40 }
 0x166   : > { %v1746_v57 = vpop.f32.mrf.mxu1  ;;  %v2693_v30 = vpop.f32.mrf.mxu0 }
 0x167   : > { %v5289_v56 = vadd.f32 %v4400_v28, %v1755_v16  ;;  %v1747_v18 = vadd.f32 %v1746_v57, %v5064_v42 }
 0x168   : > { %v4293_v6 = vpop.f32.mrf.mxu1  ;;  %v4401_v32 = vpop.f32.mrf.mxu0 }
 0x169   : > { %v5292_v58 = vadd.f32 %v2693_v30, %v1747_v18  ;;  %v1758_v20 = vadd.f32 %v4293_v6, %v5068_v44 }
 0x16a   : > { %v1749_v8 = vpop.f32.mrf.mxu1  ;;  %v2696_v38 = vpop.f32.mrf.mxu0 }
 0x16b   : > { %v5295_v60 = vadd.f32 %v4401_v32, %v1758_v20  ;;  %v1750_v26 = vadd.f32 %v1749_v8, %v5076_v50 }
 0x16c   : > { %v4296_v14 = vpop.f32.mrf.mxu1  ;;  %v4404_v40 = vpop.f32.mrf.mxu0 }
 0x16d   : > { %v5298_v2 = vadd.f32 %v2696_v38, %v1750_v26  ;;  %v1771_v28 = vadd.f32 %v4296_v14, %v5080_v52 }
 0x16e   : > { %v1762_v16 = vpop.f32.mrf.mxu1  ;;  %v2709_v42 = vpop.f32.mrf.mxu0 }
 0x16f   : > { %v5301_v57 = vadd.f32 %v4404_v40, %v1771_v28  ;;  %v1763_v30 = vadd.f32 %v1762_v16, %v5088_v54 }
 0x170   : > { %v4297_v18 = vpop.f32.mrf.mxu1  ;;  %v4405_v44 = vpop.f32.mrf.mxu0 }
 0x171   : > { %v5304_v6 = vadd.f32 %v2709_v42, %v1763_v30  ;;  %v1774_v32 = vadd.f32 %v4297_v18, %v5092_v62 }
 0x172   : > { %v1765_v20 = vpop.f32.mrf.mxu1  ;;  %v2712_v50 = vpop.f32.mrf.mxu0 }
 0x173   : > { %v5307_v8 = vadd.f32 %v4405_v44, %v1774_v32  ;;  %v1766_v38 = vadd.f32 %v1765_v20, %v5100_v12 }
 0x174   : > { %v4300_v26 = vpop.f32.mrf.mxu1  ;;  %v4408_v52 = vpop.f32.mrf.mxu0 }
 0x175   : > { %v5310_v14 = vadd.f32 %v2712_v50, %v1766_v38  ;;  %v1787_v40 = vadd.f32 %v4300_v26, %v5104_v22 }
 0x176   : > { %v1778_v28 = vpop.f32.mrf.mxu1  ;;  %v2725_v54 = vpop.f32.mrf.mxu0 }
 0x177   : > { %v5313_v16 = vadd.f32 %v4408_v52, %v1787_v40  ;;  %v1779_v42 = vadd.f32 %v1778_v28, %v5112_v24 }
 0x178   : > { %v4301_v30 = vpop.f32.mrf.mxu1  ;;  %v4409_v62 = vpop.f32.mrf.mxu0 }
 0x179   : > { %v5316_v18 = vadd.f32 %v2725_v54, %v1779_v42  ;;  %v1790_v44 = vadd.f32 %v4301_v30, %v5116_v34 }
 0x17a   : > { %v1781_v32 = vpop.f32.mrf.mxu1  ;;  %v2728_v12 = vpop.f32.mrf.mxu0 }
 0x17b   : > { %v5319_v20 = vadd.f32 %v4409_v62, %v1790_v44  ;;  %v1782_v50 = vadd.f32 %v1781_v32, %v5124_v48 }
 0x17c   : > { %v4304_v38 = vpop.f32.mrf.mxu1  ;;  %v4412_v22 = vpop.f32.mrf.mxu0 }
 0x17d   : > { %v5322_v26 = vadd.f32 %v2728_v12, %v1782_v50  ;;  %v1803_v52 = vadd.f32 %v4304_v38, %v5128_v0 }
 0x17e   : > { %v1794_v40 = vpop.f32.mrf.mxu1  ;;  %v2741_v24 = vpop.f32.mrf.mxu0 }
 0x17f   : > { %v5325_v28 = vadd.f32 %v4412_v22, %v1803_v52  ;;  %v1795_v54 = vadd.f32 %v1794_v40, %v5136_v10 }
 0x180   : > { %v4305_v42 = vpop.f32.mrf.mxu1  ;;  %v4413_v34 = vpop.f32.mrf.mxu0 }
 0x181   : > { %v5328_v30 = vadd.f32 %v2741_v24, %v1795_v54  ;;  %v1806_v62 = vadd.f32 %v4305_v42, %v5140_v35 }
 0x182   : > { %v1797_v44 = vpop.f32.mrf.mxu1  ;;  %v2744_v48 = vpop.f32.mrf.mxu0 }
 0x183   : > { %v5331_v32 = vadd.f32 %v4413_v34, %v1806_v62  ;;  %v1798_v12 = vadd.f32 %v1797_v44, %v5148_v37 }
 0x184   : > { %v4308_v50 = vpop.f32.mrf.mxu1  ;;  %v4416_v0 = vpop.f32.mrf.mxu0 }
 0x185   : > { %v5334_v38 = vadd.f32 %v2744_v48, %v1798_v12  ;;  %v1819_v22 = vadd.f32 %v4308_v50, %v5152_v47 }
 0x186   : > { %v1810_v52 = vpop.f32.mrf.mxu1  ;;  %v2757_v10 = vpop.f32.mrf.mxu0 }
 0x187   : > { %v5337_v40 = vadd.f32 %v4416_v0, %v1819_v22  ;;  %v1811_v24 = vadd.f32 %v1810_v52, %v5160_v25 }
 0x188   : > { %v4309_v54 = vpop.f32.mrf.mxu1  ;;  %v4417_v35 = vpop.f32.mrf.mxu0 }
 0x189   : > { %v5340_v42 = vadd.f32 %v2757_v10, %v1811_v24  ;;  %v1822_v34 = vadd.f32 %v4309_v54, %v5164_v63 }
 0x18a   : > { %v1813_v62 = vpop.f32.mrf.mxu1  ;;  %v2760_v37 = vpop.f32.mrf.mxu0 }
 0x18b   : > { %v5343_v44 = vadd.f32 %v4417_v35, %v1822_v34  ;;  %v1814_v48 = vadd.f32 %v1813_v62, %v5172_v23 }
 0x18c   : > { %v4312_v12 = vpop.f32.mrf.mxu1  ;;  %v4420_v47 = vpop.f32.mrf.mxu0 }
 0x18d   : > { %v5346_v50 = vadd.f32 %v2760_v37, %v1814_v48  ;;  %v1835_v0 = vadd.f32 %v4312_v12, %v5176_v36 }
 0x18e   : > { %v1826_v22 = vpop.f32.mrf.mxu1  ;;  %v2773_v25 = vpop.f32.mrf.mxu0 }
 0x18f   : > { %v5349_v52 = vadd.f32 %v4420_v47, %v1835_v0  ;;  %v1827_v10 = vadd.f32 %v1826_v22, %v5184_v55 }
 0x190   : > { %v4313_v24 = vpop.f32.mrf.mxu1  ;;  %v4421_v63 = vpop.f32.mrf.mxu0 }
 0x191   : > { %v5352_v54 = vadd.f32 %v2773_v25, %v1827_v10  ;;  %v1838_v35 = vadd.f32 %v4313_v24, %v5188_v45 }
 0x192   : > { %v1829_v34 = vpop.f32.mrf.mxu1  ;;  %v2776_v23 = vpop.f32.mrf.mxu0 }
 0x193   : > { %v5355_v62 = vadd.f32 %v4421_v63, %v1838_v35  ;;  %v1830_v37 = vadd.f32 %v1829_v34, %v5196_v39 }
 0x194   : > { %v4316_v48 = vpop.f32.mrf.mxu1  ;;  %v4424_v36 = vpop.f32.mrf.mxu0 }
 0x195   : > { %v5358_v12 = vadd.f32 %v2776_v23, %v1830_v37  ;;  %v1851_v47 = vadd.f32 %v4316_v48, %v5200_v13 }
 0x196   : > { %v1842_v0 = vpop.f32.mrf.mxu1  ;;  %v2789_v55 = vpop.f32.mrf.mxu0 }
 0x197   : > { %v5361_v22 = vadd.f32 %v4424_v36, %v1851_v47  ;;  %v1843_v25 = vadd.f32 %v1842_v0, %v5208_v43 }
 0x198   : > { %v4317_v10 = vpop.f32.mrf.mxu1  ;;  %v4425_v45 = vpop.f32.mrf.mxu0 }
 0x199   : > { %v5364_v24 = vadd.f32 %v2789_v55, %v1843_v25  ;;  %v1854_v63 = vadd.f32 %v4317_v10, %v5212_v33 }
 0x19a   : > { %v1845_v35 = vpop.f32.mrf.mxu1  ;;  %v2792_v39 = vpop.f32.mrf.mxu0 }
 0x19b   : > { %v5367_v34 = vadd.f32 %v4425_v45, %v1854_v63  ;;  %v1846_v23 = vadd.f32 %v1845_v35, %v5218_v27 }
 0x19c   : > { %v4320_v37 = vpop.f32.mrf.mxu1  ;;  %v4428_v13 = vpop.f32.mrf.mxu0 }
 0x19d   : > { %5618 = vst [vmem:[#allocation50_spill] sm:$0xff] %v5367_v34  ;;  %v5370_v48 = vadd.f32 %v2792_v39, %v1846_v23  ;;  %v1867_v36 = vadd.f32 %v4320_v37, %v5222_v1 }
 0x19e   : > { %v1858_v47 = vpop.f32.mrf.mxu1  ;;  %v2805_v43 = vpop.f32.mrf.mxu0 }
 0x19f   : > { %5619 = vst [vmem:[#allocation51_spill] sm:$0xff] %v5370_v48  ;;  %v5373_v0 = vadd.f32 %v4428_v13, %v1867_v36  ;;  %v1859_v55 = vadd.f32 %v1858_v47, %v5228_v51  ;;  %v5624_v13 = vld [vmem:[#allocation2_spill] sm:$0xff]  ;;  %v5625_v48 = vld [vmem:[#allocation3_spill] sm:$0xff] }
 0x1a0   : > { %v4321_v25 = vpop.f32.mrf.mxu1  ;;  %v4429_v33 = vpop.f32.mrf.mxu0 }
 0x1a1   : > { %5620 = vst [vmem:[#allocation52_spill] sm:$0xff] %v5373_v0  ;;  %v5376_v10 = vadd.f32 %v2805_v43, %v1859_v55  ;;  %v1870_v45 = vadd.f32 %v4321_v25, %v5232_v11 }
 0x1a2   : > { %v1861_v63 = vpop.f32.mrf.mxu1  ;;  %v2808_v27 = vpop.f32.mrf.mxu0 }
 0x1a3   : > { %5621 = vst [vmem:[#allocation53_spill] sm:$0xff] %v5376_v10  ;;  %v5379_v35 = vadd.f32 %v4429_v33, %v1870_v45  ;;  %v1862_v39 = vadd.f32 %v1861_v63, %v5236_v21  ;;  %v5626_v10 = vld [vmem:[#allocation4_spill] sm:$0xff] }
 0x1a4   : > { %v4324_v23 = vpop.f32.mrf.mxu1  ;;  %v4432_v1 = vpop.f32.mrf.mxu0 }
 0x1a5   : > { %5622 = vst [vmem:[#allocation54_spill] sm:$0xff] %v5379_v35  ;;  %v5382_v37 = vadd.f32 %v2808_v27, %v1862_v39  ;;  %v1883_v36 = vadd.f32 %v4324_v23, %v5624_v13  ;;  %v5627_v39 = vld [vmem:[#allocation5_spill] sm:$0xff] }
 0x1a6   : > { %v1874_v0 = vpop.f32.mrf.mxu1  ;;  %v2821_v51 = vpop.f32.mrf.mxu0 }
 0x1a7   : > { %5623 = vst [vmem:[#allocation55_spill] sm:$0xff] %v5382_v37  ;;  %v3062_v47 = vadd.f32 %v4432_v1, %v1883_v36  ;;  %v1875_v43 = vadd.f32 %v1874_v0, %v5625_v48  ;;  %v5393_v1 = vld [vmem:[%s5568_s2] ss:$0 sm:$0xff] }
 0x1a8   : > { %v4325_v55 = vpop.f32.mrf.mxu1  ;;  %v4433_v11 = vpop.f32.mrf.mxu0 }
 0x1a9   : > { %v3060_v25 = vadd.f32 %v2821_v51, %v1875_v43  ;;  %v1886_v33 = vadd.f32 %v4325_v55, %v5626_v10  ;;  %v3110_v21 = vmax.f32 %v5241_v9, %v3062_v47  ;;  %v5628_v51 = vld [vmem:[#allocation6_spill] sm:$0xff] }
 0x1aa   : > { %v1877_v45 = vpop.f32.mrf.mxu1  ;;  %v2824_v35 = vpop.f32.mrf.mxu0 }
 0x1ab   : > { %v3108_v63 = vmax.f32 %v5244_v5, %v3060_v25  ;;  %v3063_v27 = vadd.f32 %v4433_v11, %v1886_v33  ;;  %v1878_v23 = vadd.f32 %v1877_v45, %v5627_v39  ;;  %v5629_v25 = vld [vmem:[#allocation7_spill] sm:$0xff] }
 0x1ac   : > { %v4328_v48 = vpop.f32.mrf.mxu1  ;;  %v4436_v0 = vpop.f32.mrf.mxu0 }
 0x1ad   : > { %v3156_v13 = vmax.f32 %v3108_v63, %v3110_v21  ;;  %v3061_v36 = vadd.f32 %v2824_v35, %v1878_v23  ;;  %v1899_v10 = vadd.f32 %v4328_v48, %v5628_v51  ;;  %v3111_v43 = vmax.f32 %v5247_v59, %v3063_v27  ;;  %v5630_v35 = vld [vmem:[#allocation8_spill] sm:$0xff] }
 0x1ae   : > { %v1890_v9 = vpop.f32.mrf.mxu1  ;;  %v2837_v47 = vpop.f32.mrf.mxu0 }
 0x1af   : > { %v3187_v5 = vadd.f32 %v5393_v1, %v3156_v13  ;;  %v3109_v55 = vmax.f32 %v5250_v49, %v3061_v36  ;;  %v3066_v11 = vadd.f32 %v4436_v0, %v1899_v10  ;;  %v1891_v33 = vadd.f32 %v1890_v9, %v5629_v25  ;;  %v5631_v13 = vld [vmem:[#allocation9_spill] sm:$0xff] }
 0x1b0   : > { %v4329_v45 = vpop.f32.mrf.mxu1  ;;  %v4437_v39 = vpop.f32.mrf.mxu0 }
 0x1b1   : > { %v3211_v37 = vmax.f32 %v3187_v5, 0.0  ;;  %v3157_v34 = vmax.f32 %v3109_v55, %v3111_v43  ;;  %v3064_v21 = vadd.f32 %v2837_v47, %v1891_v33  ;;  %v3114_v59 = vmax.f32 %v5253_v15, %v3066_v11  ;;  %v5632_v5 = vld [vmem:[#allocation10_spill] sm:$0xff] }
 0x1b2   : > { %v1902_v63 = vadd.f32 %v4329_v45, %v5630_v35  ;;  %v1893_v49 = vpop.f32.mrf.mxu1  ;;  %v2840_v27 = vpop.f32.mrf.mxu0 }
 0x1b3   : > { %v3968_v23 = vpack.c.bf16 %v3211_v37, %v3211_v37  ;;  %v3188_v48 = vadd.f32 %v5393_v1, %v3157_v34  ;;  %v3112_v0 = vmax.f32 %v5256_v7, %v3064_v21  ;;  %v1894_v36 = vadd.f32 %v1893_v49, %v5631_v13 }
 0x1b4   : > { %v3067_v51 = vadd.f32 %v4437_v39, %v1902_v63  ;;  %v4332_v10 = vpop.f32.mrf.mxu1  ;;  %v4440_v43 = vpop.f32.mrf.mxu0  ;;  %v5633_v39 = vld [vmem:[#allocation11_spill] sm:$0xff] }
 0x1b5   : > { %3332 = vst.msk [vmem:[%s5404_s13] sm:$0xf] %vm3331_vm1, %v3968_v23  ;;  %v3212_v9 = vmax.f32 %v3188_v48, 0.0  ;;  %v3158_v47 = vmax.f32 %v3112_v0, %v3114_v59  ;;  %v3065_v15 = vadd.f32 %v2840_v27, %v1894_v36  ;;  %v1915_v55 = vadd.f32 %v4332_v10, %v5632_v5  ;;  %v5634_v27 = vld [vmem:[#allocation12_spill] sm:$0xff] }
 0x1b6   : > { %v1906_v11 = vpop.f32.mrf.mxu1  ;;  %v2853_v37 = vpop.f32.mrf.mxu0  ;;  %v3115_v7 = vmax.f32 %v5259_v3, %v3067_v51 }
 0x1b7   : > { %v3969_v25 = vpack.c.bf16 %v3212_v9, %v3212_v9  ;;  %v3189_v34 = vadd.f32 %v5393_v1, %v3158_v47  ;;  %v3113_v33 = vmax.f32 %v5262_v4, %v3065_v15  ;;  %v3070_v45 = vadd.f32 %v4440_v43, %v1915_v55  ;;  %v5635_v4 = vld [vmem:[#allocation13_spill] sm:$0xff] }
 0x1b8   : > { %v1907_v21 = vadd.f32 %v1906_v11, %v5633_v39  ;;  %v4333_v35 = vpop.f32.mrf.mxu1  ;;  %v4441_v63 = vpop.f32.mrf.mxu0  ;;  %v5636_v11 = vld [vmem:[#allocation14_spill] sm:$0xff] }
 0x1b9   : > { %3334 = vst.msk [vmem:[%s5404_s13 + $0x4] sm:$0x3] %vm3333_vm2, %v3969_v25  ;;  %v3213_v59 = vmax.f32 %v3189_v34, 0.0  ;;  %v3159_v49 = vmax.f32 %v3113_v33, %v3115_v7  ;;  %v1918_v23 = vadd.f32 %v4333_v35, %v5634_v27  ;;  %v3118_v43 = vmax.f32 %v5265_v41, %v3070_v45  ;;  %v5637_v45 = vld [vmem:[#allocation15_spill] sm:$0xff] }
 0x1ba   : > { %v3068_v48 = vadd.f32 %v2853_v37, %v1907_v21  ;;  %v1909_v0 = vpop.f32.mrf.mxu1  ;;  %v2856_v13 = vpop.f32.mrf.mxu0 }
 0x1bb   : > { %v3970_v36 = vpack.c.bf16 %v3213_v59, %v3213_v59  ;;  %v3190_v3 = vadd.f32 %v5393_v1, %v3159_v49  ;;  %v3071_v51 = vadd.f32 %v4441_v63, %v1918_v23  ;;  %v1910_v10 = vadd.f32 %v1909_v0, %v5635_v4  ;;  %v5638_v23 = vld [vmem:[#allocation16_spill] sm:$0xff]  ;;  %v5639_v4 = vld [vmem:[#allocation17_spill] sm:$0xff] }
 0x1bc   : > { %v3116_v9 = vmax.f32 %v5268_v29, %v3068_v48  ;;  %v4336_v47 = vpop.f32.mrf.mxu1  ;;  %v4444_v15 = vpop.f32.mrf.mxu0 }
 0x1bd   : > { %3335 = vst.msk [vmem:[%s5404_s13 + $0x8] sm:$0xf] %vm3331_vm1, %v3970_v36  ;;  %v3214_v5 = vmax.f32 %v3190_v3, 0.0  ;;  %v3069_v55 = vadd.f32 %v2856_v13, %v1910_v10  ;;  %v1931_v37 = vadd.f32 %v4336_v47, %v5636_v11  ;;  %v3119_v34 = vmax.f32 %v5271_v46, %v3071_v51  ;;  %v5640_v11 = vld [vmem:[#allocation18_spill] sm:$0xff] }
 0x1be   : > { %v3160_v25 = vmax.f32 %v3116_v9, %v3118_v43  ;;  %v1922_v7 = vpop.f32.mrf.mxu1  ;;  %v2869_v33 = vpop.f32.mrf.mxu0 }
 0x1bf   : > { %v3971_v39 = vpack.c.bf16 %v3214_v5, %v3214_v5  ;;  %v3117_v21 = vmax.f32 %v5274_v19, %v3069_v55  ;;  %v3074_v41 = vadd.f32 %v4444_v15, %v1931_v37  ;;  %v1923_v29 = vadd.f32 %v1922_v7, %v5637_v45 }
 0x1c0   : > { %v3191_v35 = vadd.f32 %v5393_v1, %v3160_v25  ;;  %v4337_v63 = vpop.f32.mrf.mxu1  ;;  %v4445_v59 = vpop.f32.mrf.mxu0 }
 0x1c1   : > { %3336 = vst.msk [vmem:[%s5404_s13 + $0xc] sm:$0x3] %vm3333_vm2, %v3971_v39  ;;  %v3161_v49 = vmax.f32 %v3117_v21, %v3119_v34  ;;  %v3072_v27 = vadd.f32 %v2869_v33, %v1923_v29  ;;  %v1934_v48 = vadd.f32 %v4337_v63, %v5638_v23  ;;  %v3122_v0 = vmax.f32 %v5277_v17, %v3074_v41  ;;  %v5641_v39 = vld [vmem:[#allocation19_spill] sm:$0xff] }
 0x1c2   : > { %v3215_v46 = vmax.f32 %v3191_v35, 0.0  ;;  %v1925_v13 = vpop.f32.mrf.mxu1  ;;  %v2872_v36 = vpop.f32.mrf.mxu0 }
 0x1c3   : > { %v3192_v19 = vadd.f32 %v5393_v1, %v3161_v49  ;;  %v3120_v3 = vmax.f32 %v5280_v53, %v3072_v27  ;;  %v3075_v51 = vadd.f32 %v4445_v59, %v1934_v48  ;;  %v1926_v10 = vadd.f32 %v1925_v13, %v5639_v4  ;;  %v5642_v59 = vld [vmem:[#allocation20_spill] sm:$0xff] }
 0x1c4   : > { %v3972_v43 = vpack.c.bf16 %v3215_v46, %v3215_v46  ;;  %v4340_v9 = vpop.f32.mrf.mxu1  ;;  %v4448_v47 = vpop.f32.mrf.mxu0 }
 0x1c5   : > { %v3216_v15 = vmax.f32 %v3192_v19, 0.0  ;;  %v3162_v5 = vmax.f32 %v3120_v3, %v3122_v0  ;;  %v3073_v55 = vadd.f32 %v2872_v36, %v1926_v10  ;;  %v3123_v17 = vmax.f32 %v5283_v31, %v3075_v51  ;;  %v5643_v36 = vld [vmem:[#allocation21_spill] sm:$0xff] }
 0x1c6   : > { %3337 = vst.msk [vmem:[%s5404_s13 + $0x10] sm:$0xf] %vm3331_vm1, %v3972_v43  ;;  %v1947_v37 = vadd.f32 %v4340_v9, %v5640_v11  ;;  %v1938_v25 = vpop.f32.mrf.mxu1  ;;  %v2885_v34 = vpop.f32.mrf.mxu0  ;;  %v5644_v43 = vld [vmem:[#allocation22_spill] sm:$0xff] }
 0x1c7   : > { %v3973_v7 = vpack.c.bf16 %v3216_v15, %v3216_v15  ;;  %v3193_v53 = vadd.f32 %v5393_v1, %v3162_v5  ;;  %v3121_v33 = vmax.f32 %v5286_v61, %v3073_v55  ;;  %v1939_v21 = vadd.f32 %v1938_v25, %v5641_v39  ;;  %v5646_v39 = vld [vmem:[#allocation24_spill] sm:$0xff] }
 0x1c8   : > { %v3078_v41 = vadd.f32 %v4448_v47, %v1947_v37  ;;  %v4341_v45 = vpop.f32.mrf.mxu1  ;;  %v4449_v29 = vpop.f32.mrf.mxu0 }
 0x1c9   : > { %3338 = vst.msk [vmem:[%s5404_s13 + $0x14] sm:$0x3] %vm3333_vm2, %v3973_v7  ;;  %v3217_v35 = vmax.f32 %v3193_v53, 0.0  ;;  %v3163_v63 = vmax.f32 %v3121_v33, %v3123_v17  ;;  %v3076_v31 = vadd.f32 %v2885_v34, %v1939_v21  ;;  %v1950_v49 = vadd.f32 %v4341_v45, %v5642_v59  ;;  %v5647_v59 = vld [vmem:[#allocation25_spill] sm:$0xff] }
 0x1ca   : > { %v1941_v27 = vpop.f32.mrf.mxu1  ;;  %v2888_v23 = vpop.f32.mrf.mxu0  ;;  %v3126_v61 = vmax.f32 %v5289_v56, %v3078_v41 }
 0x1cb   : > { %v3974_v48 = vpack.c.bf16 %v3217_v35, %v3217_v35  ;;  %v3194_v46 = vadd.f32 %v5393_v1, %v3163_v63  ;;  %v3124_v0 = vmax.f32 %v5292_v58, %v3076_v31  ;;  %v3079_v13 = vadd.f32 %v4449_v29, %v1950_v49  ;;  %v5645_v58 = vld [vmem:[#allocation23_spill] sm:$0xff] }
 0x1cc   : > { %v1942_v19 = vadd.f32 %v1941_v27, %v5643_v36  ;;  %v4344_v3 = vpop.f32.mrf.mxu1  ;;  %v4452_v51 = vpop.f32.mrf.mxu0 }
 0x1cd   : > { %3339 = vst.msk [vmem:[%s5404_s13 + $0x18] sm:$0xf] %vm3331_vm1, %v3974_v48  ;;  %v3218_v4 = vmax.f32 %v3194_v46, 0.0  ;;  %v3164_v10 = vmax.f32 %v3124_v0, %v3126_v61  ;;  %v1963_v9 = vadd.f32 %v4344_v3, %v5644_v43  ;;  %v3127_v37 = vmax.f32 %v5295_v60, %v3079_v13  ;;  %v5648_v61 = vld [vmem:[#allocation26_spill] sm:$0xff] }
 0x1ce   : > { %v3077_v47 = vadd.f32 %v2888_v23, %v1942_v19  ;;  %v1954_v15 = vpop.f32.mrf.mxu1  ;;  %v2901_v5 = vpop.f32.mrf.mxu0 }
 0x1cf   : > { %v3975_v55 = vpack.c.bf16 %v3218_v4, %v3218_v4  ;;  %v3195_v56 = vadd.f32 %v5393_v1, %v3164_v10  ;;  %v3082_v17 = vadd.f32 %v4452_v51, %v1963_v9  ;;  %v1955_v11 = vadd.f32 %v1954_v15, %v5645_v58  ;;  %v5649_v4 = vld [vmem:[#allocation27_spill] sm:$0xff] }
 0x1d0   : > { %v3125_v25 = vmax.f32 %v5298_v2, %v3077_v47  ;;  %v4345_v34 = vpop.f32.mrf.mxu1  ;;  %v4453_v7 = vpop.f32.mrf.mxu0 }
 0x1d1   : > { %3340 = vst.msk [vmem:[%s5404_s13 + $0x1c] sm:$0x3] %vm3333_vm2, %v3975_v55  ;;  %v3219_v53 = vmax.f32 %v3195_v56, 0.0  ;;  %v3080_v33 = vadd.f32 %v2901_v5, %v1955_v11  ;;  %v1966_v21 = vadd.f32 %v4345_v34, %v5646_v39  ;;  %v3130_v45 = vmax.f32 %v5301_v57, %v3082_v17  ;;  %v5650_v56 = vld [vmem:[#allocation28_spill] sm:$0xff]  ;;  %v5651_v34 = vld [vmem:[#allocation29_spill] sm:$0xff] }
 0x1d2   : > { %v3165_v41 = vmax.f32 %v3125_v25, %v3127_v37  ;;  %v1957_v29 = vpop.f32.mrf.mxu1  ;;  %v2904_v35 = vpop.f32.mrf.mxu0 }
 0x1d3   : > { %v3976_v63 = vpack.c.bf16 %v3219_v53, %v3219_v53  ;;  %v3128_v31 = vmax.f32 %v5304_v6, %v3080_v33  ;;  %v3083_v60 = vadd.f32 %v4453_v7, %v1966_v21  ;;  %v1958_v2 = vadd.f32 %v1957_v29, %v5647_v59 }
 0x1d4   : > { %v3196_v49 = vadd.f32 %v5393_v1, %v3165_v41  ;;  %v4348_v27 = vpop.f32.mrf.mxu1  ;;  %v4456_v23 = vpop.f32.mrf.mxu0 }
 0x1d5   : > { %3341 = vst.msk [vmem:[%s5404_s13 + $0x20] sm:$0xf] %vm3331_vm1, %v3976_v63  ;;  %v3166_v48 = vmax.f32 %v3128_v31, %v3130_v45  ;;  %v3081_v46 = vadd.f32 %v2904_v35, %v1958_v2  ;;  %v1979_v0 = vadd.f32 %v4348_v27, %v5648_v61  ;;  %v3131_v13 = vmax.f32 %v5307_v8, %v3083_v60  ;;  %v5652_v45 = vld [vmem:[#allocation30_spill] sm:$0xff] }
 0x1d6   : > { %v3220_v57 = vmax.f32 %v3196_v49, 0.0  ;;  %v1970_v36 = vpop.f32.mrf.mxu1  ;;  %v2917_v19 = vpop.f32.mrf.mxu0  ;;  %v5653_v49 = vld [vmem:[#allocation31_spill] sm:$0xff] }
 0x1d7   : > { %v3197_v6 = vadd.f32 %v5393_v1, %v3166_v48  ;;  %v3129_v3 = vmax.f32 %v5310_v14, %v3081_v46  ;;  %v3086_v51 = vadd.f32 %v4456_v23, %v1979_v0  ;;  %v1971_v10 = vadd.f32 %v1970_v36, %v5649_v4  ;;  %v5654_v0 = vld [vmem:[#allocation32_spill] sm:$0xff] }
 0x1d8   : > { %v3977_v43 = vpack.c.bf16 %v3220_v57, %v3220_v57  ;;  %v4349_v9 = vpop.f32.mrf.mxu1  ;;  %v4457_v47 = vpop.f32.mrf.mxu0 }
 0x1d9   : > { %v3221_v15 = vmax.f32 %v3197_v6, 0.0  ;;  %v3167_v5 = vmax.f32 %v3129_v3, %v3131_v13  ;;  %v3084_v55 = vadd.f32 %v2917_v19, %v1971_v10  ;;  %v3134_v8 = vmax.f32 %v5313_v16, %v3086_v51 }
 0x1da   : > { %3342 = vst.msk [vmem:[%s5404_s13 + $0x24] sm:$0x3] %vm3333_vm2, %v3977_v43  ;;  %v1982_v17 = vadd.f32 %v4349_v9, %v5650_v56  ;;  %v1973_v58 = vpop.f32.mrf.mxu1  ;;  %v2920_v11 = vpop.f32.mrf.mxu0 }
 0x1db   : > { %v3978_v37 = vpack.c.bf16 %v3221_v15, %v3221_v15  ;;  %v3198_v14 = vadd.f32 %v5393_v1, %v3167_v5  ;;  %v3132_v25 = vmax.f32 %v5316_v18, %v3084_v55  ;;  %v1974_v7 = vadd.f32 %v1973_v58, %v5651_v34  ;;  %v5656_v5 = vld [vmem:[#allocation34_spill] sm:$0xff] }
 0x1dc   : > { %v3087_v53 = vadd.f32 %v4457_v47, %v1982_v17  ;;  %v4352_v33 = vpop.f32.mrf.mxu1  ;;  %v4460_v39 = vpop.f32.mrf.mxu0 }
 0x1dd   : > { %3343 = vst.msk [vmem:[%s5404_s13 + $0x28] sm:$0xf] %vm3331_vm1, %v3978_v37  ;;  %v3222_v21 = vmax.f32 %v3198_v14, 0.0  ;;  %v3168_v41 = vmax.f32 %v3132_v25, %v3134_v8  ;;  %v3085_v16 = vadd.f32 %v2920_v11, %v1974_v7  ;;  %v1995_v29 = vadd.f32 %v4352_v33, %v5652_v45  ;;  %v5657_v14 = vld [vmem:[#allocation35_spill] sm:$0xff] }
 0x1de   : > { %v1986_v35 = vpop.f32.mrf.mxu1  ;;  %v2933_v63 = vpop.f32.mrf.mxu0  ;;  %v3135_v18 = vmax.f32 %v5319_v20, %v3087_v53 }
 0x1df   : > { %v3979_v31 = vpack.c.bf16 %v3222_v21, %v3222_v21  ;;  %v3199_v60 = vadd.f32 %v5393_v1, %v3168_v41  ;;  %v3133_v59 = vmax.f32 %v5322_v26, %v3085_v16  ;;  %v3090_v2 = vadd.f32 %v4460_v39, %v1995_v29  ;;  %v5655_v26 = vld [vmem:[#allocation33_spill] sm:$0xff]  ;;  %v5658_v39 = vld [vmem:[#allocation36_spill] sm:$0xff] }
 0x1e0   : > { %v1987_v27 = vadd.f32 %v1986_v35, %v5653_v49  ;;  %v4353_v23 = vpop.f32.mrf.mxu1  ;;  %v4461_v48 = vpop.f32.mrf.mxu0 }
 0x1e1   : > { %3344 = vst.msk [vmem:[%s5404_s13 + $0x2c] sm:$0x3] %vm3333_vm2, %v3979_v31  ;;  %v3223_v46 = vmax.f32 %v3199_v60, 0.0  ;;  %v3169_v61 = vmax.f32 %v3133_v59, %v3135_v18  ;;  %v1998_v57 = vadd.f32 %v4353_v23, %v5654_v0  ;;  %v3138_v4 = vmax.f32 %v5325_v28, %v3090_v2  ;;  %v5660_v23 = vld [vmem:[#allocation38_spill] sm:$0xff] }
 0x1e2   : > { %v3088_v13 = vadd.f32 %v2933_v63, %v1987_v27  ;;  %v1989_v36 = vpop.f32.mrf.mxu1  ;;  %v2936_v19 = vpop.f32.mrf.mxu0  ;;  %v5659_v63 = vld [vmem:[#allocation37_spill] sm:$0xff] }
 0x1e3   : > { %v3980_v6 = vpack.c.bf16 %v3223_v46, %v3223_v46  ;;  %v3200_v20 = vadd.f32 %v5393_v1, %v3169_v61  ;;  %v3091_v3 = vadd.f32 %v4461_v48, %v1998_v57  ;;  %v1990_v51 = vadd.f32 %v1989_v36, %v5655_v26 }
 0x1e4   : > { %v3136_v10 = vmax.f32 %v5328_v30, %v3088_v13  ;;  %v4356_v43 = vpop.f32.mrf.mxu1  ;;  %v4464_v9 = vpop.f32.mrf.mxu0  ;;  %v5661_v13 = vld [vmem:[#allocation39_spill] sm:$0xff] }
 0x1e5   : > { %3345 = vst.msk [vmem:[%s5404_s13 + $0x30] sm:$0xf] %vm3331_vm1, %v3980_v6  ;;  %v3224_v47 = vmax.f32 %v3200_v20, 0.0  ;;  %v3089_v15 = vadd.f32 %v2936_v19, %v1990_v51  ;;  %v2011_v55 = vadd.f32 %v4356_v43, %v5656_v5  ;;  %v3139_v56 = vmax.f32 %v5331_v32, %v3091_v3  ;;  %v5662_v51 = vld [vmem:[#allocation40_spill] sm:$0xff] }
 0x1e6   : > { %v3170_v8 = vmax.f32 %v3136_v10, %v3138_v4  ;;  %v2002_v17 = vpop.f32.mrf.mxu1  ;;  %v2949_v58 = vpop.f32.mrf.mxu0 }
 0x1e7   : > { %v3981_v11 = vpack.c.bf16 %v3224_v47, %v3224_v47  ;;  %v3137_v37 = vmax.f32 %v5334_v38, %v3089_v15  ;;  %v3094_v28 = vadd.f32 %v4464_v9, %v2011_v55  ;;  %v2003_v30 = vadd.f32 %v2002_v17, %v5657_v14  ;;  %v5663_v55 = vld [vmem:[#allocation41_spill] sm:$0xff] }
 0x1e8   : > { %v3201_v25 = vadd.f32 %v5393_v1, %v3170_v8  ;;  %v4357_v34 = vpop.f32.mrf.mxu1  ;;  %v4465_v7 = vpop.f32.mrf.mxu0 }
 0x1e9   : > { %3346 = vst.msk [vmem:[%s5404_s13 + $0x34] sm:$0x3] %vm3333_vm2, %v3981_v11  ;;  %v3171_v53 = vmax.f32 %v3137_v37, %v3139_v56  ;;  %v3092_v33 = vadd.f32 %v2949_v58, %v2003_v30  ;;  %v2014_v21 = vadd.f32 %v4357_v34, %v5658_v39  ;;  %v3142_v41 = vmax.f32 %v5337_v40, %v3094_v28  ;;  %v5664_v37 = vld [vmem:[#allocation42_spill] sm:$0xff] }
 0x1ea   : > { %v3225_v32 = vmax.f32 %v3201_v25, 0.0  ;;  %v2005_v16 = vpop.f32.mrf.mxu1  ;;  %v2952_v45 = vpop.f32.mrf.mxu0 }
 0x1eb   : > { %v3202_v38 = vadd.f32 %v5393_v1, %v3171_v53  ;;  %v3140_v29 = vmax.f32 %v5340_v42, %v3092_v33  ;;  %v3095_v35 = vadd.f32 %v4465_v7, %v2014_v21  ;;  %v2006_v31 = vadd.f32 %v2005_v16, %v5659_v63 }
 0x1ec   : > { %v3982_v60 = vpack.c.bf16 %v3225_v32, %v3225_v32  ;;  %v4360_v18 = vpop.f32.mrf.mxu1  ;;  %v4468_v59 = vpop.f32.mrf.mxu0 }
 0x1ed   : > { %v3226_v2 = vmax.f32 %v3202_v38, 0.0  ;;  %v3172_v49 = vmax.f32 %v3140_v29, %v3142_v41  ;;  %v3093_v27 = vadd.f32 %v2952_v45, %v2006_v31  ;;  %v3143_v40 = vmax.f32 %v5343_v44, %v3095_v35  ;;  %v5666_v45 = vld [vmem:[#allocation44_spill] sm:$0xff] }
 0x1ee   : > { %3347 = vst.msk [vmem:[%s5404_s13 + $0x38] sm:$0xf] %vm3331_vm1, %v3982_v60  ;;  %v2027_v48 = vadd.f32 %v4360_v18, %v5660_v23  ;;  %v2018_v46 = vpop.f32.mrf.mxu1  ;;  %v2965_v61 = vpop.f32.mrf.mxu0 }
 0x1ef   : > { %v3983_v0 = vpack.c.bf16 %v3226_v2, %v3226_v2  ;;  %v3203_v42 = vadd.f32 %v5393_v1, %v3172_v49  ;;  %v3141_v57 = vmax.f32 %v5346_v50, %v3093_v27  ;;  %v2019_v36 = vadd.f32 %v2018_v46, %v5661_v13  ;;  %v5670_v13 = vld [vmem:[#allocation51_spill] sm:$0xff] }
 0x1f0   : > { %v3098_v19 = vadd.f32 %v4468_v59, %v2027_v48  ;;  %v4361_v6 = vpop.f32.mrf.mxu1  ;;  %v4469_v20 = vpop.f32.mrf.mxu0  ;;  %v5667_v59 = vld [vmem:[#allocation45_spill] sm:$0xff]  ;;  %v5668_v48 = vld [vmem:[#allocation46_spill] sm:$0xff] }
 0x1f1   : > { %3348 = vst.msk [vmem:[%s5404_s13 + $0x3c] sm:$0x3] %vm3333_vm2, %v3983_v0  ;;  %v3227_v3 = vmax.f32 %v3203_v42, 0.0  ;;  %v3173_v26 = vmax.f32 %v3141_v57, %v3143_v40  ;;  %v3096_v44 = vadd.f32 %v2965_v61, %v2019_v36  ;;  %v2030_v4 = vadd.f32 %v4361_v6, %v5662_v51  ;;  %v5669_v61 = vld [vmem:[#allocation50_spill] sm:$0xff]  ;;  %v5671_v6 = vld [vmem:[#allocation47_spill] sm:$0xff] }
 0x1f2   : > { %v2021_v10 = vpop.f32.mrf.mxu1  ;;  %v2968_v43 = vpop.f32.mrf.mxu0  ;;  %v3146_v50 = vmax.f32 %v5349_v52, %v3098_v19 }
 0x1f3   : > { %v3984_v9 = vpack.c.bf16 %v3227_v3, %v3227_v3  ;;  %v3204_v47 = vadd.f32 %v5393_v1, %v3173_v26  ;;  %v3144_v15 = vmax.f32 %v5352_v54, %v3096_v44  ;;  %v3099_v5 = vadd.f32 %v4469_v20, %v2030_v4  ;;  %v5665_v54 = vld [vmem:[#allocation43_spill] sm:$0xff] }
 0x1f4   : > { %v2022_v8 = vadd.f32 %v2021_v10, %v5663_v55  ;;  %v4364_v56 = vpop.f32.mrf.mxu1  ;;  %v4472_v17 = vpop.f32.mrf.mxu0 }
 0x1f5   : > { %3349 = vst.msk [vmem:[%s5404_s13 + $0x40] sm:$0xf] %vm3331_vm1, %v3984_v9  ;;  %v3228_v58 = vmax.f32 %v3204_v47, 0.0  ;;  %v3174_v11 = vmax.f32 %v3144_v15, %v3146_v50  ;;  %v2043_v28 = vadd.f32 %v4364_v56, %v5664_v37  ;;  %v3147_v33 = vmax.f32 %v5355_v62, %v3099_v5  ;;  %v5673_v47 = vld [vmem:[#allocation48_spill] sm:$0xff] }
 0x1f6   : > { %v3097_v14 = vadd.f32 %v2968_v43, %v2022_v8  ;;  %v2034_v30 = vpop.f32.mrf.mxu1  ;;  %v2981_v25 = vpop.f32.mrf.mxu0  ;;  %v5672_v43 = vld [vmem:[#allocation52_spill] sm:$0xff]  ;;  %v5674_v8 = vld [vmem:[#allocation53_spill] sm:$0xff] }
 0x1f7   : > { %v3985_v34 = vpack.c.bf16 %v3228_v58, %v3228_v58  ;;  %v3205_v52 = vadd.f32 %v5393_v1, %v3174_v11  ;;  %v3102_v7 = vadd.f32 %v4472_v17, %v2043_v28  ;;  %v2035_v53 = vadd.f32 %v2034_v30, %v5665_v54  ;;  %v5675_v17 = vld [vmem:[#allocation49_spill] sm:$0xff]  ;;  %v5677_v54 = vld [vmem:[#allocation55_spill] sm:$0xff] }
 0x1f8   : > { %v3145_v39 = vmax.f32 %v5358_v12, %v3097_v14  ;;  %v4365_v21 = vpop.f32.mrf.mxu1  ;;  %v4473_v32 = vpop.f32.mrf.mxu0 }
 0x1f9   : > { %3350 = vst.msk [vmem:[%s5404_s13 + $0x44] sm:$0x3] %vm3333_vm2, %v3985_v34  ;;  %v3229_v41 = vmax.f32 %v3205_v52, 0.0  ;;  %v3100_v16 = vadd.f32 %v2981_v25, %v2035_v53  ;;  %v2046_v38 = vadd.f32 %v4365_v21, %v5666_v45  ;;  %v3150_v35 = vmax.f32 %v5361_v22, %v3102_v7  ;;  %v5676_v52 = vld [vmem:[#allocation54_spill] sm:$0xff] }
 0x1fa   : > { %v3175_v29 = vmax.f32 %v3145_v39, %v3147_v33  ;;  %v2037_v63 = vpop.f32.mrf.mxu1  ;;  %v2984_v31 = vpop.f32.mrf.mxu0 }
 0x1fb   : > { %v3986_v60 = vpack.c.bf16 %v3229_v41, %v3229_v41  ;;  %v3148_v18 = vmax.f32 %v5364_v24, %v3100_v16  ;;  %v3103_v62 = vadd.f32 %v4473_v32, %v2046_v38  ;;  %v2038_v12 = vadd.f32 %v2037_v63, %v5667_v59 }
 0x1fc   : > { %v3206_v2 = vadd.f32 %v5393_v1, %v3175_v29  ;;  %v4368_v49 = vpop.f32.mrf.mxu1  ;;  %v4476_v27 = vpop.f32.mrf.mxu0 }
 0x1fd   : > { %3351 = vst.msk [vmem:[%s5404_s13 + $0x48] sm:$0xf] %vm3331_vm1, %v3986_v60  ;;  %v3176_v40 = vmax.f32 %v3148_v18, %v3150_v35  ;;  %v3101_v23 = vadd.f32 %v2984_v31, %v2038_v12  ;;  %v2059_v46 = vadd.f32 %v4368_v49, %v5668_v48  ;;  %v3151_v0 = vmax.f32 %v5669_v61, %v3103_v62 }
 0x1fe   : > { %v3230_v22 = vmax.f32 %v3206_v2, 0.0  ;;  %v2050_v42 = vpop.f32.mrf.mxu1  ;;  %v2997_v57 = vpop.f32.mrf.mxu0 }
 0x1ff   : > { %v3207_v24 = vadd.f32 %v5393_v1, %v3176_v40  ;;  %v3149_v36 = vmax.f32 %v5670_v13, %v3101_v23  ;;  %v3106_v19 = vadd.f32 %v4476_v27, %v2059_v46  ;;  %v2051_v20 = vadd.f32 %v2050_v42, %v5671_v6 }
 0x200   : > { %v3987_v3 = vpack.c.bf16 %v3230_v22, %v3230_v22  ;;  %v4369_v26 = vpop.f32.mrf.mxu1  ;;  %v4477_v44 = vpop.f32.mrf.mxu0 }
 0x201   : > { %v3231_v51 = vmax.f32 %v3207_v24, 0.0  ;;  %v3177_v4 = vmax.f32 %v3149_v36, %v3151_v0  ;;  %v3104_v10 = vadd.f32 %v2997_v57, %v2051_v20  ;;  %v3154_v9 = vmax.f32 %v5672_v43, %v3106_v19 }
 0x202   : > { %3352 = vst.msk [vmem:[%s5404_s13 + $0x4c] sm:$0x3] %vm3333_vm2, %v3987_v3  ;;  %v2062_v50 = vadd.f32 %v4369_v26, %v5673_v47  ;;  %v2053_v15 = vpop.f32.mrf.mxu1  ;;  %v3000_v37 = vpop.f32.mrf.mxu0 }
 0x203   : > { %v3988_v5 = vpack.c.bf16 %v3231_v51, %v3231_v51  ;;  %v3208_v55 = vadd.f32 %v5393_v1, %v3177_v4  ;;  %v3152_v56 = vmax.f32 %v5674_v8, %v3104_v10  ;;  %v2054_v58 = vadd.f32 %v2053_v15, %v5675_v17 }
 0x204   : > { %v3107_v11 = vadd.f32 %v4477_v44, %v2062_v50 }
 0x205   : > { %3353 = vst.msk [vmem:[%s5404_s13 + $0x50] sm:$0xf] %vm3331_vm1, %v3988_v5  ;;  %v3232_v28 = vmax.f32 %v3208_v55, 0.0  ;;  %v3178_v14 = vmax.f32 %v3152_v56, %v3154_v9  ;;  %v3105_v30 = vadd.f32 %v3000_v37, %v2054_v58 }
 0x206   : > { %v3155_v7 = vmax.f32 %v5676_v52, %v3107_v11 }
 0x207   : > { %v3989_v25 = vpack.c.bf16 %v3232_v28, %v3232_v28  ;;  %v3209_v34 = vadd.f32 %v5393_v1, %v3178_v14  ;;  %v3153_v53 = vmax.f32 %v5677_v54, %v3105_v30 }
 0x209   : > { %3354 = vst.msk [vmem:[%s5404_s13 + $0x54] sm:$0x3] %vm3333_vm2, %v3989_v25  ;;  %v3233_v33 = vmax.f32 %v3209_v34, 0.0  ;;  %v3179_v39 = vmax.f32 %v3153_v53, %v3155_v7 }
 0x20b   : > { %v3990_v21 = vpack.c.bf16 %v3233_v33, %v3233_v33  ;;  %v3210_v32 = vadd.f32 %v5393_v1, %v3179_v39 }
 0x20d   : > { %3355 = vst.msk [vmem:[%s5404_s13 + $0x58] sm:$0xf] %vm3331_vm1, %v3990_v21  ;;  %v3234_v41 = vmax.f32 %v3210_v32, 0.0 }
 0x20f   : > { %v3991_v16 = vpack.c.bf16 %v3234_v41, %v3234_v41 }
 0x211   : > { %3356 = vst.msk [vmem:[%s5404_s13 + $0x5c] sm:$0x3] %vm3333_vm2, %v3991_v16 }
 0x212 PF: > { %s13_s12 = sadd.s32 1, %s4668_s12  }
 0x213   : > { %p10_p4 = scmp.ge.s32.totalorder %s13_s12, 4  }
 0x215   :  { %12 = sbr.rel (!%p10_p4) target bundleno = 1 (0x1), region = 66 }

// kernel: silly_net_forward.3
= control target key start
LH: loop header
LB: loop body
LE: loop exit
PB: predicated region body
PF: predicated region fallthrough
CT: control target
= control target key end

     0   :  { %v1190_v28 = vlaneseq  ;;  %v8758_v36 = vmov 1966171168   ;;  %s10698_s0 = inlined_call_operand.vmem [shape: bf16[2,9216], index: 0, kind: input, shape index: {}]   ;;  %s10699_s1 = inlined_call_operand.vmem [shape: bf16[9216,128], index: 1, kind: input, shape index: {}]   ;;  %s10700_s2 = inlined_call_operand.vmem [shape: bf16[128,10], index: 2, kind: input, shape index: {}]   ;;  %s10701_s3 = inlined_call_operand.hbm [shape: f32[2,10], index: 3, kind: output, shape index: {}]  }
   0x1   :  { %v8139_v0 = vld [vmem:[%s10699_s1 + $0x78] sm:$0xff]   ;;  %v8143_v4 = vld [vmem:[%s10699_s1 + $0x70] sm:$0xff]   ;;  %v8147_v8 = vld [vmem:[%s10699_s1 + $0x68] sm:$0xff]   ;;  %v1188_v37 = vunpack.c.l.s4 %v8758_v36 }
   0x2   :  { %v8140_v1 = vld [vmem:[%s10699_s1 + $0xf8] sm:$0xff]   ;;  %7314 = vmatprep.subr.bf16.mxu0 %v8139_v0  ;;  %v8144_v5 = vld [vmem:[%s10699_s1 + $0xf0] sm:$0xff]   ;;  %v8148_v9 = vld [vmem:[%s10699_s1 + $0xe8] sm:$0xff]   ;;  %v1191_v33 = vshrl.u32 %v1190_v28, 7 }
   0x3   :  { %v8141_v2 = vld [vmem:[%s10699_s1 + $0x38] sm:$0xff]   ;;  %7336 = vmatprep.subr.bf16.mxu1 %v8140_v1  ;;  %v8145_v6 = vld [vmem:[%s10699_s1 + $0x30] sm:$0xff]   ;;  %v8149_v10 = vld [vmem:[%s10699_s1 + $0x28] sm:$0xff]   ;;  %v1189_v40 = vunpack.c.0.s8 %v1188_v37 }
   0x4   :  { %v8142_v3 = vld [vmem:[%s10699_s1 + $0xb8] sm:$0xff]   ;;  %7315 = vmatpush3.bf16.msra.mxu0 %v8141_v2  ;;  %v8146_v7 = vld [vmem:[%s10699_s1 + $0xb0] sm:$0xff]   ;;  %v8150_v11 = vld [vmem:[%s10699_s1 + $0xa8] sm:$0xff]  }
   0x5   :  { %7337 = vmatpush3.bf16.msra.mxu1 %v8142_v3  ;;  %7316 = vmatprep.subr.bf16.mxu0 %v8143_v4  ;;  %v8151_v12 = vld [vmem:[%s10699_s1 + $0x60] sm:$0xff]   ;;  %v8155_v16 = vld [vmem:[%s10699_s1 + $0x58] sm:$0xff]   ;;  %v8159_v20 = vld [vmem:[%s10699_s1 + $0x50] sm:$0xff]   ;;  %v8887_v41 = vsub.s32 %v1189_v40, %v1191_v33 }
   0x6   :  { %7338 = vmatprep.subr.bf16.mxu1 %v8144_v5  ;;  %v8152_v13 = vld [vmem:[%s10699_s1 + $0xe0] sm:$0xff]   ;;  %v8156_v17 = vld [vmem:[%s10699_s1 + $0xd8] sm:$0xff]   ;;  %v8160_v21 = vld [vmem:[%s10699_s1 + $0xd0] sm:$0xff]  }
   0x7   :  { %v8153_v14 = vld [vmem:[%s10699_s1 + $0x20] sm:$0xff]   ;;  %v8157_v18 = vld [vmem:[%s10699_s1 + $0x18] sm:$0xff]   ;;  %v8161_v22 = vld [vmem:[%s10699_s1 + $0x10] sm:$0xff]  }
   0x8   :  { %7317 = vmatpush3.bf16.msra.mxu0 %v8145_v6  ;;  %v8154_v15 = vld [vmem:[%s10699_s1 + $0xa0] sm:$0xff]   ;;  %v8158_v19 = vld [vmem:[%s10699_s1 + $0x98] sm:$0xff]   ;;  %v8162_v23 = vld [vmem:[%s10699_s1 + $0x90] sm:$0xff]  }
   0x9   :  { %7339 = vmatpush3.bf16.msra.mxu1 %v8146_v7  ;;  %7318 = vmatprep.subr.bf16.mxu0 %v8147_v8  ;;  %v8163_v24 = vld [vmem:[%s10699_s1 + $0x48] sm:$0xff]   ;;  %v8167_v29 = vld [vmem:[%s10699_s1 + $0x40] sm:$0xff]   ;;  %v8172_v35 = vld [vmem:[%s10699_s1 + $0x178] sm:$0xff]  }
   0xa   :  { %7340 = vmatprep.subr.bf16.mxu1 %v8148_v9  ;;  %v8164_v25 = vld [vmem:[%s10699_s1 + $0xc8] sm:$0xff]   ;;  %v8168_v30 = vld [vmem:[%s10699_s1 + $0xc0] sm:$0xff]   ;;  %v8173_v38 = vld [vmem:[%s10699_s1 + $0x1f8] sm:$0xff]  }
   0xb   :  { %v8165_v26 = vld [vmem:[%s10699_s1 + $0x8] sm:$0xff]   ;;  %v8169_v31 = vld [vmem:[%s10699_s1] sm:$0xff]   ;;  %v8174_v47 = vld [vmem:[%s10699_s1 + $0x138] sm:$0xff]  }
   0xc   :  { %7319 = vmatpush3.bf16.msra.mxu0 %v8149_v10  ;;  %v8166_v27 = vld [vmem:[%s10699_s1 + $0x88] sm:$0xff]   ;;  %v8170_v32 = vld [vmem:[%s10699_s1 + $0x80] sm:$0xff]   ;;  %v8175_v49 = vld [vmem:[%s10699_s1 + $0x1b8] sm:$0xff]  }
   0xd   :  { %7341 = vmatpush3.bf16.msra.mxu1 %v8150_v11  ;;  %7320 = vmatprep.subr.bf16.mxu0 %v8151_v12  ;;  %v16_v34 = vld [vmem:[%s10698_s0] sm:$0xff]  ;;  %v8176_v52 = vld [vmem:[%s10699_s1 + $0x170] sm:$0xff]   ;;  %v8180_v58 = vld [vmem:[%s10699_s1 + $0x168] sm:$0xff]  }
   0xe   :  { %7342 = vmatprep.subr.bf16.mxu1 %v8152_v13  ;;  %v1186_v39 = vcombine.high %v16_v34, %v16_v34  ;;  %v1193_v42 = vrot.slane %v16_v34, %v8887_v41  ;;  %v8177_v54 = vld [vmem:[%s10699_s1 + $0x1f0] sm:$0xff]   ;;  %v8181_v59 = vld [vmem:[%s10699_s1 + $0x1e8] sm:$0xff]   ;;  %v8184_v62 = vld [vmem:[%s10699_s1 + $0x160] sm:$0xff]  }
   0xf   :  { %v8178_v55 = vld [vmem:[%s10699_s1 + $0x130] sm:$0xff]   ;;  %v8182_v60 = vld [vmem:[%s10699_s1 + $0x128] sm:$0xff]   ;;  %v8185_v63 = vld [vmem:[%s10699_s1 + $0x1e0] sm:$0xff]  }
  0x10   :  { %7321 = vmatpush3.bf16.msra.mxu0 %v8153_v14  ;;  %v8891_v43 = vrot.slane %v1186_v39, %v8887_v41  ;;  %v1201_v44 = vcombine.high %v1193_v42, %v1193_v42  ;;  %v1209_v45 = vrot.slane %v1193_v42, %v8887_v41  ;;  %v8179_v57 = vld [vmem:[%s10699_s1 + $0x1b0] sm:$0xff]   ;;  %v8183_v61 = vld [vmem:[%s10699_s1 + $0x1a8] sm:$0xff]   ;;  %v8186_v0 = vld [vmem:[%s10699_s1 + $0x120] sm:$0xff]  }
  0x11   :  { %7343 = vmatpush3.bf16.msra.mxu1 %v8154_v15  ;;  %7322 = vmatprep.subr.bf16.mxu0 %v8155_v16  ;;  %v8187_v1 = vld [vmem:[%s10699_s1 + $0x1a0] sm:$0xff]   ;;  %v8188_v2 = vld [vmem:[%s10699_s1 + $0x158] sm:$0xff]   ;;  %v8192_v6 = vld [vmem:[%s10699_s1 + $0x150] sm:$0xff]  }
  0x12   :  { %7344 = vmatprep.subr.bf16.mxu1 %v8156_v17  ;;  %v1202_v46 = vcombine.high %v8891_v43, %v8891_v43  ;;  %v1223_v48 = vrot.slane %v1201_v44, %v8887_v41  ;;  %v1231_v51 = vcombine.high %v1209_v45, %v1209_v45  ;;  %v8189_v3 = vld [vmem:[%s10699_s1 + $0x1d8] sm:$0xff]   ;;  %v8193_v7 = vld [vmem:[%s10699_s1 + $0x1d0] sm:$0xff]   ;;  %v8196_v10 = vld [vmem:[%s10699_s1 + $0x148] sm:$0xff]  }
  0x13   :  { %v8190_v4 = vld [vmem:[%s10699_s1 + $0x118] sm:$0xff]   ;;  %v8194_v8 = vld [vmem:[%s10699_s1 + $0x110] sm:$0xff]   ;;  %v8197_v11 = vld [vmem:[%s10699_s1 + $0x1c8] sm:$0xff]  }
  0x14   :  { %7323 = vmatpush3.bf16.msra.mxu0 %v8157_v18  ;;  %v1230_v50 = vrot.slane %v1202_v46, %v8887_v41  ;;  %5187 = vmatprep.mubr.bf16.mxu0 %v1223_v48  ;;  %v1233_v53 = vcombine.high %v1223_v48, %v1223_v48  ;;  %v8191_v5 = vld [vmem:[%s10699_s1 + $0x198] sm:$0xff]   ;;  %v8195_v9 = vld [vmem:[%s10699_s1 + $0x190] sm:$0xff]   ;;  %v8198_v12 = vld [vmem:[%s10699_s1 + $0x108] sm:$0xff]   ;;  %v1216_v18 = vrot.slane %v8891_v43, %v8887_v41 }
  0x15   :  { %7345 = vmatpush3.bf16.msra.mxu1 %v8158_v19  ;;  %7324 = vmatprep.subr.bf16.mxu0 %v8159_v20  ;;  %v8199_v13 = vld [vmem:[%s10699_s1 + $0x188] sm:$0xff]   ;;  %v8200_v14 = vld [vmem:[%s10699_s1 + $0x140] sm:$0xff]   ;;  %v8204_v19 = vld [vmem:[%s10699_s1 + $0x278] sm:$0xff]  }
  0x16   :  { %7346 = vmatprep.subr.bf16.mxu1 %v8160_v21  ;;  %v1234_v56 = vcombine.high %v1230_v50, %v1230_v50  ;;  %5227 = vmatprep.mubr.bf16.mxu1 %v1233_v53  ;;  %v8201_v15 = vld [vmem:[%s10699_s1 + $0x1c0] sm:$0xff]   ;;  %v8205_v20 = vld [vmem:[%s10699_s1 + $0x2f8] sm:$0xff]   ;;  %v8212_v28 = vld [vmem:[%s10699_s1 + $0x268] sm:$0xff]  }
  0x17   :  { %v8202_v16 = vld [vmem:[%s10699_s1 + $0x100] sm:$0xff]   ;;  %v8206_v21 = vld [vmem:[%s10699_s1 + $0x238] sm:$0xff]   ;;  %v8224_v40 = vld [vmem:[%s10699_s1 + $0x250] sm:$0xff]  }
  0x18   :  { %7325 = vmatpush3.bf16.msra.mxu0 %v8161_v22  ;;  %v8203_v17 = vld [vmem:[%s10699_s1 + $0x180] sm:$0xff]   ;;  %v8207_v22 = vld [vmem:[%s10699_s1 + $0x2b8] sm:$0xff]   ;;  %v8225_v42 = vld [vmem:[%s10699_s1 + $0x2d0] sm:$0xff]  }
  0x19   :  { %7347 = vmatpush3.bf16.msra.mxu1 %v8162_v23  ;;  %7326 = vmatprep.subr.bf16.mxu0 %v8163_v24  ;;  %v1232_v23 = vcombine.high %v1216_v18, %v1216_v18  ;;  %v8208_v24 = vld [vmem:[%s10699_s1 + $0x270] sm:$0xff]   ;;  %v8217_v33 = vld [vmem:[%s10699_s1 + $0x2e0] sm:$0xff]   ;;  %v8220_v36 = vld [vmem:[%s10699_s1 + $0x258] sm:$0xff]  }
  0x1a   :  { %7348 = vmatprep.subr.bf16.mxu1 %v8164_v25  ;;  %v8209_v25 = vld [vmem:[%s10699_s1 + $0x2f0] sm:$0xff]   ;;  %v8218_v34 = vld [vmem:[%s10699_s1 + $0x220] sm:$0xff]   ;;  %v8221_v37 = vld [vmem:[%s10699_s1 + $0x2d8] sm:$0xff]  }
  0x1b   :  { %v8223_v39 = vld [vmem:[%s10699_s1 + $0x298] sm:$0xff]   ;;  %v8226_v43 = vld [vmem:[%s10699_s1 + $0x210] sm:$0xff]   ;;  %v17_v46 = vld [vmem:[%s10698_s0 + $0x8] sm:$0xff] }
  0x1c   :  { %7327 = vmatpush3.bf16.msra.mxu0 %v8165_v26  ;;  %v8210_v26 = vld [vmem:[%s10699_s1 + $0x230] sm:$0xff]   ;;  %v1242_v48 = vrot.slane %v17_v46, %v8887_v41 }
  0x1d   :  { %7349 = vmatpush3.bf16.msra.mxu1 %v8166_v27  ;;  %7328 = vmatprep.subr.bf16.mxu0 %v8167_v29  ;;  %v8211_v27 = vld [vmem:[%s10699_s1 + $0x2b0] sm:$0xff]   ;;  %v8213_v29 = vld [vmem:[%s10699_s1 + $0x2e8] sm:$0xff]  }
  0x1e   :  { %7350 = vmatprep.subr.bf16.mxu1 %v8168_v30  ;;  %v8214_v30 = vld [vmem:[%s10699_s1 + $0x228] sm:$0xff]   ;;  %v8227_v44 = vld [vmem:[%s10699_s1 + $0x290] sm:$0xff]  }
  0x20   :  { %7329 = vmatpush3.bf16.msra.mxu0 %v8169_v31  ;;  %v8215_v31 = vld [vmem:[%s10699_s1 + $0x2a8] sm:$0xff]  }
  0x21   :  { %7351 = vmatpush3.bf16.msra.mxu1 %v8170_v32  ;;  %7358 = vmatprep.subr.bf16.mxu0 %v8172_v35  ;;  %v8216_v32 = vld [vmem:[%s10699_s1 + $0x260] sm:$0xff]  }
  0x22   :  { %7380 = vmatprep.subr.bf16.mxu1 %v8173_v38  ;;  %v8219_v35 = vld [vmem:[%s10699_s1 + $0x2a0] sm:$0xff]   ;;  %v8222_v38 = vld [vmem:[%s10699_s1 + $0x218] sm:$0xff]  }
  0x23   :  { %5188 = vmatmul.mubr.bf16.vlgmr.msra.gmra.mxu0 %v1209_v45  ;;  %v8228_v45 = vld [vmem:[%s10699_s1 + $0x248] sm:$0xff]  }
  0x24   :  { %7359 = vmatpush3.bf16.msra.mxu0 %v8174_v47  ;;  %5228 = vmatmul.mubr.bf16.vlgmr.msra.gmra.mxu1 %v1231_v51  ;;  %v8229_v47 = vld [vmem:[%s10699_s1 + $0x2c8] sm:$0xff]  }
  0x25   :  { %7360 = vmatprep.subr.bf16.mxu0 %v8176_v52  ;;  %7381 = vmatpush3.bf16.msra.mxu1 %v8175_v49  ;;  %v1235_v49 = vcombine.high %v17_v46, %v17_v46  ;;  %v8231_v51 = vld [vmem:[%s10699_s1 + $0x288] sm:$0xff]   ;;  %v1250_v52 = vcombine.high %v1242_v48, %v1242_v48 }
  0x26   :  { %5267 = vmatprep.mubr.bf16.mxu0 %v1230_v50  ;;  %7382 = vmatprep.subr.bf16.mxu1 %v8177_v54  ;;  %v8230_v50 = vld [vmem:[%s10699_s1 + $0x208] sm:$0xff]   ;;  %v8232_v54 = vld [vmem:[%s10699_s1 + $0x240] sm:$0xff]  }
  0x27   :  { %5307 = vmatprep.mubr.bf16.mxu1 %v1234_v56  ;;  %v9079_v53 = vrot.slane %v1235_v49, %v8887_v41  ;;  %v1272_v56 = vrot.slane %v1250_v52, %v8887_v41  ;;  %v8279_v46 = vld [vmem:[%s10699_s1 + $0x428] sm:$0xff]   ;;  %v8282_v49 = vld [vmem:[%s10699_s1 + $0x4e0] sm:$0xff]   ;;  %v8285_v52 = vld [vmem:[%s10699_s1 + $0x458] sm:$0xff]  }
  0x28   :  { %7361 = vmatpush3.bf16.msra.mxu0 %v8178_v55  ;;  %v8233_v55 = vld [vmem:[%s10699_s1 + $0x2c0] sm:$0xff]  }
  0x29   :  { %7362 = vmatprep.subr.bf16.mxu0 %v8180_v58  ;;  %7383 = vmatpush3.bf16.msra.mxu1 %v8179_v57  ;;  %v1251_v57 = vcombine.high %v9079_v53, %v9079_v53  ;;  %v8234_v58 = vld [vmem:[%s10699_s1 + $0x200] sm:$0xff]  }
  0x2a   :  { %7384 = vmatprep.subr.bf16.mxu1 %v8181_v59  ;;  %v8235_v59 = vld [vmem:[%s10699_s1 + $0x280] sm:$0xff]  }
  0x2c   :  { %7363 = vmatpush3.bf16.msra.mxu0 %v8182_v60  ;;  %v1282_v60 = vcombine.high %v1272_v56, %v1272_v56 }
  0x2d   :  { %7364 = vmatprep.subr.bf16.mxu0 %v8184_v62  ;;  %7385 = vmatpush3.bf16.msra.mxu1 %v8183_v61  ;;  %v1258_v61 = vrot.slane %v1242_v48, %v8887_v41  ;;  %v8236_v62 = vld [vmem:[%s10699_s1 + $0x378] sm:$0xff]   ;;  %v8281_v48 = vld [vmem:[%s10699_s1 + $0x460] sm:$0xff]  }
  0x2e   :  { %7386 = vmatprep.subr.bf16.mxu1 %v8185_v63  ;;  %v8237_v63 = vld [vmem:[%s10699_s1 + $0x3f8] sm:$0xff]  }
  0x30   :  { %7365 = vmatpush3.bf16.msra.mxu0 %v8186_v0  ;;  %v1279_v0 = vrot.slane %v1251_v57, %v8887_v41  ;;  %v8290_v57 = vld [vmem:[%s10699_s1 + $0x4d0] sm:$0xff]  }
  0x31   :  { %7366 = vmatprep.subr.bf16.mxu0 %v8188_v2  ;;  %7387 = vmatpush3.bf16.msra.mxu1 %v8187_v1  ;;  %v8238_v1 = vld [vmem:[%s10699_s1 + $0x338] sm:$0xff]  }
  0x32   :  { %7388 = vmatprep.subr.bf16.mxu1 %v8189_v3  ;;  %v8239_v2 = vld [vmem:[%s10699_s1 + $0x3b8] sm:$0xff]   ;;  %v1280_v3 = vcombine.high %v1258_v61, %v1258_v61 }
  0x34   :  { %7367 = vmatpush3.bf16.msra.mxu0 %v8190_v4  ;;  %v8240_v4 = vld [vmem:[%s10699_s1 + $0x370] sm:$0xff]  }
  0x35   :  { %7368 = vmatprep.subr.bf16.mxu0 %v8192_v6  ;;  %7389 = vmatpush3.bf16.msra.mxu1 %v8191_v5  ;;  %v8241_v5 = vld [vmem:[%s10699_s1 + $0x3f0] sm:$0xff]   ;;  %v1283_v6 = vcombine.high %v1279_v0, %v1279_v0 }
  0x36   :  { %7390 = vmatprep.subr.bf16.mxu1 %v8193_v7  ;;  %v8242_v7 = vld [vmem:[%s10699_s1 + $0x330] sm:$0xff]  }
  0x38   :  { %7369 = vmatpush3.bf16.msra.mxu0 %v8194_v8  ;;  %v8243_v8 = vld [vmem:[%s10699_s1 + $0x3b0] sm:$0xff]  }
  0x39   :  { %7370 = vmatprep.subr.bf16.mxu0 %v8196_v10  ;;  %7391 = vmatpush3.bf16.msra.mxu1 %v8195_v9  ;;  %v8244_v9 = vld [vmem:[%s10699_s1 + $0x368] sm:$0xff]  }
  0x3a   :  { %7392 = vmatprep.subr.bf16.mxu1 %v8197_v11  ;;  %v8245_v10 = vld [vmem:[%s10699_s1 + $0x3e8] sm:$0xff]  }
  0x3b   :  { %v8246_v11 = vld [vmem:[%s10699_s1 + $0x328] sm:$0xff]  }
  0x3c   :  { %7371 = vmatpush3.bf16.msra.mxu0 %v8198_v12  ;;  %v8247_v12 = vld [vmem:[%s10699_s1 + $0x3a8] sm:$0xff]  }
  0x3d   :  { %7372 = vmatprep.subr.bf16.mxu0 %v8200_v14  ;;  %7393 = vmatpush3.bf16.msra.mxu1 %v8199_v13  ;;  %v8248_v13 = vld [vmem:[%s10699_s1 + $0x360] sm:$0xff]  }
  0x3e   :  { %7394 = vmatprep.subr.bf16.mxu1 %v8201_v15  ;;  %v8249_v14 = vld [vmem:[%s10699_s1 + $0x3e0] sm:$0xff]  }
  0x3f   :  { %v8250_v15 = vld [vmem:[%s10699_s1 + $0x320] sm:$0xff]  }
  0x40   :  { %7373 = vmatpush3.bf16.msra.mxu0 %v8202_v16  ;;  %v8251_v16 = vld [vmem:[%s10699_s1 + $0x3a0] sm:$0xff]  }
  0x41   :  { %7402 = vmatprep.subr.bf16.mxu0 %v8204_v19  ;;  %7395 = vmatpush3.bf16.msra.mxu1 %v8203_v17  ;;  %v8252_v17 = vld [vmem:[%s10699_s1 + $0x358] sm:$0xff]  }
  0x42   :  { %7424 = vmatprep.subr.bf16.mxu1 %v8205_v20  ;;  %v8254_v19 = vld [vmem:[%s10699_s1 + $0x318] sm:$0xff]  }
  0x43   :  { %5268 = vmatmul.mubr.bf16.vlgmr.msra.gmra.mxu0 %v1216_v18  ;;  %v8253_v18 = vld [vmem:[%s10699_s1 + $0x3d8] sm:$0xff]  }
  0x44   :  { %7403 = vmatpush3.bf16.msra.mxu0 %v8206_v21  ;;  %5308 = vmatmul.mubr.bf16.vlgmr.msra.gmra.mxu1 %v1232_v23  ;;  %v8255_v20 = vld [vmem:[%s10699_s1 + $0x398] sm:$0xff]   ;;  %v8256_v21 = vld [vmem:[%s10699_s1 + $0x350] sm:$0xff]  }
  0x45   :  { %7404 = vmatprep.subr.bf16.mxu0 %v8208_v24  ;;  %7425 = vmatpush3.bf16.msra.mxu1 %v8207_v22  ;;  %v8257_v22 = vld [vmem:[%s10699_s1 + $0x3d0] sm:$0xff]  }
  0x46   :  { %7426 = vmatprep.subr.bf16.mxu1 %v8209_v25  ;;  %5347 = vmatprep.mubr.bf16.mxu0 %v1272_v56  ;;  %v8258_v23 = vld [vmem:[%s10699_s1 + $0x310] sm:$0xff]   ;;  %v8260_v25 = vld [vmem:[%s10699_s1 + $0x348] sm:$0xff]  }
  0x47   :  { %5387 = vmatprep.mubr.bf16.mxu1 %v1282_v60  ;;  %v8259_v24 = vld [vmem:[%s10699_s1 + $0x390] sm:$0xff]   ;;  %v8293_v60 = vld [vmem:[%s10699_s1 + $0x448] sm:$0xff]  }
  0x48   :  { %7405 = vmatpush3.bf16.msra.mxu0 %v8210_v26  ;;  %v8261_v26 = vld [vmem:[%s10699_s1 + $0x3c8] sm:$0xff]   ;;  %v8289_v56 = vld [vmem:[%s10699_s1 + $0x450] sm:$0xff]  }
  0x49   :  { %7406 = vmatprep.subr.bf16.mxu0 %v8212_v28  ;;  %7427 = vmatpush3.bf16.msra.mxu1 %v8211_v27  ;;  %v8262_v27 = vld [vmem:[%s10699_s1 + $0x308] sm:$0xff]  }
  0x4a   :  { %7428 = vmatprep.subr.bf16.mxu1 %v8213_v29  ;;  %v8263_v28 = vld [vmem:[%s10699_s1 + $0x388] sm:$0xff]   ;;  %v8264_v29 = vld [vmem:[%s10699_s1 + $0x340] sm:$0xff]  }
  0x4c   :  { %7407 = vmatpush3.bf16.msra.mxu0 %v8214_v30  ;;  %v8265_v30 = vld [vmem:[%s10699_s1 + $0x3c0] sm:$0xff]  }
  0x4d   :  { %7408 = vmatprep.subr.bf16.mxu0 %v8216_v32  ;;  %7429 = vmatpush3.bf16.msra.mxu1 %v8215_v31  ;;  %v8266_v31 = vld [vmem:[%s10699_s1 + $0x300] sm:$0xff]  }
  0x4e   :  { %7430 = vmatprep.subr.bf16.mxu1 %v8217_v33  ;;  %v8267_v32 = vld [vmem:[%s10699_s1 + $0x380] sm:$0xff]   ;;  %v1265_v33 = vrot.slane %v9079_v53, %v8887_v41  ;;  %v8286_v53 = vld [vmem:[%s10699_s1 + $0x4d8] sm:$0xff]  }
  0x50   :  { %7409 = vmatpush3.bf16.msra.mxu0 %v8218_v34  ;;  %v8269_v34 = vld [vmem:[%s10699_s1 + $0x478] sm:$0xff]  }
  0x51   :  { %7410 = vmatprep.subr.bf16.mxu0 %v8220_v36  ;;  %7431 = vmatpush3.bf16.msra.mxu1 %v8219_v35  ;;  %v8270_v35 = vld [vmem:[%s10699_s1 + $0x4f8] sm:$0xff]  }
  0x52   :  { %7432 = vmatprep.subr.bf16.mxu1 %v8221_v37  ;;  %v8271_v36 = vld [vmem:[%s10699_s1 + $0x438] sm:$0xff]  }
  0x53   :  { %v8272_v37 = vld [vmem:[%s10699_s1 + $0x4b8] sm:$0xff]  }
  0x54   :  { %7411 = vmatpush3.bf16.msra.mxu0 %v8222_v38  ;;  %v1281_v38 = vcombine.high %v1265_v33, %v1265_v33 }
  0x55   :  { %7412 = vmatprep.subr.bf16.mxu0 %v8224_v40  ;;  %7433 = vmatpush3.bf16.msra.mxu1 %v8223_v39  ;;  %v8273_v39 = vld [vmem:[%s10699_s1 + $0x470] sm:$0xff]  }
  0x56   :  { %7434 = vmatprep.subr.bf16.mxu1 %v8225_v42  ;;  %v8274_v40 = vld [vmem:[%s10699_s1 + $0x4f0] sm:$0xff]  }
  0x57   :  { %v8275_v42 = vld [vmem:[%s10699_s1 + $0x430] sm:$0xff]  }
  0x58   :  { %7413 = vmatpush3.bf16.msra.mxu0 %v8226_v43  ;;  %v8276_v43 = vld [vmem:[%s10699_s1 + $0x4b0] sm:$0xff]  }
  0x59   :  { %7414 = vmatprep.subr.bf16.mxu0 %v8228_v45  ;;  %7435 = vmatpush3.bf16.msra.mxu1 %v8227_v44  ;;  %v8277_v44 = vld [vmem:[%s10699_s1 + $0x468] sm:$0xff]  }
  0x5a   :  { %7436 = vmatprep.subr.bf16.mxu1 %v8229_v47  ;;  %v8278_v45 = vld [vmem:[%s10699_s1 + $0x4e8] sm:$0xff]  }
  0x5b   :  { %v8280_v47 = vld [vmem:[%s10699_s1 + $0x4a8] sm:$0xff]  }
  0x5c   :  { %7415 = vmatpush3.bf16.msra.mxu0 %v8230_v50  ;;  %v8283_v50 = vld [vmem:[%s10699_s1 + $0x420] sm:$0xff]  }
  0x5d   :  { %7416 = vmatprep.subr.bf16.mxu0 %v8232_v54  ;;  %7437 = vmatpush3.bf16.msra.mxu1 %v8231_v51  ;;  %v8284_v51 = vld [vmem:[%s10699_s1 + $0x4a0] sm:$0xff]   ;;  %v8287_v54 = vld [vmem:[%s10699_s1 + $0x418] sm:$0xff]  }
  0x5e   :  { %7438 = vmatprep.subr.bf16.mxu1 %v8233_v55  ;;  %v8288_v55 = vld [vmem:[%s10699_s1 + $0x498] sm:$0xff]  }
  0x60   :  { %7417 = vmatpush3.bf16.msra.mxu0 %v8234_v58  ;;  %v8291_v58 = vld [vmem:[%s10699_s1 + $0x410] sm:$0xff]  }
  0x61   :  { %7446 = vmatprep.subr.bf16.mxu0 %v8236_v62  ;;  %7439 = vmatpush3.bf16.msra.mxu1 %v8235_v59  ;;  %v8292_v59 = vld [vmem:[%s10699_s1 + $0x490] sm:$0xff]   ;;  %v8294_v62 = vld [vmem:[%s10699_s1 + $0x4c8] sm:$0xff]  }
  0x62   :  { %7468 = vmatprep.subr.bf16.mxu1 %v8237_v63 }
  0x63   :  { %5348 = vmatmul.mubr.bf16.vlgmr.msra.gmra.mxu0 %v1258_v61  ;;  %v18_v61 = vld [vmem:[%s10698_s0 + $0x10] sm:$0xff] }
  0x64   :  { %7447 = vmatpush3.bf16.msra.mxu0 %v8238_v1  ;;  %5427 = vmatprep.mubr.bf16.mxu0 %v1279_v0  ;;  %v1291_v63 = vrot.slane %v18_v61, %v8887_v41  ;;  %v1284_v0 = vcombine.high %v18_v61, %v18_v61  ;;  %v8295_v1 = vld [vmem:[%s10699_s1 + $0x408] sm:$0xff]  }
  0x65   :  { %5388 = vmatmul.mubr.bf16.vlgmr.msra.gmra.mxu1 %v1280_v3  ;;  %7448 = vmatprep.subr.bf16.mxu0 %v8240_v4  ;;  %v8344_v61 = vld [vmem:[%s10699_s1 + $0x628] sm:$0xff]  }
  0x66   :  { %7469 = vmatpush3.bf16.msra.mxu1 %v8239_v2  ;;  %5467 = vmatprep.mubr.bf16.mxu1 %v1283_v6  ;;  %v8296_v2 = vld [vmem:[%s10699_s1 + $0x488] sm:$0xff]   ;;  %v1299_v3 = vcombine.high %v1291_v63, %v1291_v63  ;;  %v9285_v4 = vrot.slane %v1284_v0, %v8887_v41  ;;  %v8298_v6 = vld [vmem:[%s10699_s1 + $0x4c0] sm:$0xff]  }
  0x67   :  { %7470 = vmatprep.subr.bf16.mxu1 %v8241_v5  ;;  %v8297_v5 = vld [vmem:[%s10699_s1 + $0x440] sm:$0xff]  }
  0x68   :  { %7449 = vmatpush3.bf16.msra.mxu0 %v8242_v7  ;;  %v1321_v7 = vrot.slane %v1299_v3, %v8887_v41  ;;  %v8347_v0 = vld [vmem:[%s10699_s1 + $0x6e0] sm:$0xff]   ;;  %v8350_v3 = vld [vmem:[%s10699_s1 + $0x658] sm:$0xff]  }
  0x69   :  { %7450 = vmatprep.subr.bf16.mxu0 %v8244_v9  ;;  %v8299_v9 = vld [vmem:[%s10699_s1 + $0x400] sm:$0xff]  }
  0x6a   :  { %7471 = vmatpush3.bf16.msra.mxu1 %v8243_v8  ;;  %v1300_v8 = vcombine.high %v9285_v4, %v9285_v4 }
  0x6b   :  { %7472 = vmatprep.subr.bf16.mxu1 %v8245_v10  ;;  %v8300_v10 = vld [vmem:[%s10699_s1 + $0x480] sm:$0xff]  }
  0x6c   :  { %7451 = vmatpush3.bf16.msra.mxu0 %v8246_v11  ;;  %v1331_v11 = vcombine.high %v1321_v7, %v1321_v7 }
  0x6d   :  { %7452 = vmatprep.subr.bf16.mxu0 %v8248_v13  ;;  %v8301_v13 = vld [vmem:[%s10699_s1 + $0x578] sm:$0xff]  }
  0x6e   :  { %7473 = vmatpush3.bf16.msra.mxu1 %v8247_v12  ;;  %v1307_v12 = vrot.slane %v1291_v63, %v8887_v41  ;;  %v8346_v63 = vld [vmem:[%s10699_s1 + $0x660] sm:$0xff]  }
  0x6f   :  { %7474 = vmatprep.subr.bf16.mxu1 %v8249_v14  ;;  %v8302_v14 = vld [vmem:[%s10699_s1 + $0x5f8] sm:$0xff]  }
  0x70   :  { %7453 = vmatpush3.bf16.msra.mxu0 %v8250_v15  ;;  %v1328_v15 = vrot.slane %v1300_v8, %v8887_v41  ;;  %v8355_v8 = vld [vmem:[%s10699_s1 + $0x6d0] sm:$0xff]  }
  0x71   :  { %7454 = vmatprep.subr.bf16.mxu0 %v8252_v17  ;;  %v8304_v17 = vld [vmem:[%s10699_s1 + $0x5b8] sm:$0xff]  }
  0x72   :  { %7475 = vmatpush3.bf16.msra.mxu1 %v8251_v16  ;;  %v8303_v16 = vld [vmem:[%s10699_s1 + $0x538] sm:$0xff]  }
  0x73   :  { %7476 = vmatprep.subr.bf16.mxu1 %v8253_v18  ;;  %v1329_v18 = vcombine.high %v1307_v12, %v1307_v12 }
  0x74   :  { %7455 = vmatpush3.bf16.msra.mxu0 %v8254_v19  ;;  %v8305_v19 = vld [vmem:[%s10699_s1 + $0x570] sm:$0xff]  }
  0x75   :  { %7456 = vmatprep.subr.bf16.mxu0 %v8256_v21  ;;  %v1332_v21 = vcombine.high %v1328_v15, %v1328_v15 }
  0x76   :  { %7477 = vmatpush3.bf16.msra.mxu1 %v8255_v20  ;;  %v8306_v20 = vld [vmem:[%s10699_s1 + $0x5f0] sm:$0xff]  }
  0x77   :  { %7478 = vmatprep.subr.bf16.mxu1 %v8257_v22  ;;  %v8307_v22 = vld [vmem:[%s10699_s1 + $0x530] sm:$0xff]  }
  0x78   :  { %7457 = vmatpush3.bf16.msra.mxu0 %v8258_v23  ;;  %v8308_v23 = vld [vmem:[%s10699_s1 + $0x5b0] sm:$0xff]  }
  0x79   :  { %7458 = vmatprep.subr.bf16.mxu0 %v8260_v25  ;;  %v8310_v25 = vld [vmem:[%s10699_s1 + $0x5e8] sm:$0xff]  }
  0x7a   :  { %7479 = vmatpush3.bf16.msra.mxu1 %v8259_v24  ;;  %v8309_v24 = vld [vmem:[%s10699_s1 + $0x568] sm:$0xff]  }
  0x7b   :  { %7480 = vmatprep.subr.bf16.mxu1 %v8261_v26  ;;  %v8311_v26 = vld [vmem:[%s10699_s1 + $0x528] sm:$0xff]  }
  0x7c   :  { %7459 = vmatpush3.bf16.msra.mxu0 %v8262_v27  ;;  %v8312_v27 = vld [vmem:[%s10699_s1 + $0x5a8] sm:$0xff]  }
  0x7d   :  { %7460 = vmatprep.subr.bf16.mxu0 %v8264_v29  ;;  %v8314_v29 = vld [vmem:[%s10699_s1 + $0x5e0] sm:$0xff]  }
  0x7e   :  { %7481 = vmatpush3.bf16.msra.mxu1 %v8263_v28  ;;  %v8313_v28 = vld [vmem:[%s10699_s1 + $0x560] sm:$0xff]  }
  0x7f   :  { %7482 = vmatprep.subr.bf16.mxu1 %v8265_v30  ;;  %v8315_v30 = vld [vmem:[%s10699_s1 + $0x520] sm:$0xff]  }
  0x80   :  { %7461 = vmatpush3.bf16.msra.mxu0 %v8266_v31  ;;  %v8316_v31 = vld [vmem:[%s10699_s1 + $0x5a0] sm:$0xff]  }
  0x81   :  { %7490 = vmatprep.subr.bf16.mxu0 %v8269_v34  ;;  %v8319_v34 = vld [vmem:[%s10699_s1 + $0x518] sm:$0xff]  }
  0x82   :  { %7483 = vmatpush3.bf16.msra.mxu1 %v8267_v32  ;;  %v8317_v32 = vld [vmem:[%s10699_s1 + $0x558] sm:$0xff]  }
  0x83   :  { %5428 = vmatmul.mubr.bf16.vlgmr.msra.gmra.mxu0 %v1265_v33  ;;  %7512 = vmatprep.subr.bf16.mxu1 %v8270_v35  ;;  %v8318_v33 = vld [vmem:[%s10699_s1 + $0x5d8] sm:$0xff]  }
  0x84   :  { %7491 = vmatpush3.bf16.msra.mxu0 %v8271_v36  ;;  %5507 = vmatprep.mubr.bf16.mxu0 %v1321_v7  ;;  %v8320_v35 = vld [vmem:[%s10699_s1 + $0x598] sm:$0xff]   ;;  %v8321_v36 = vld [vmem:[%s10699_s1 + $0x550] sm:$0xff]  }
  0x85   :  { %5468 = vmatmul.mubr.bf16.vlgmr.msra.gmra.mxu1 %v1281_v38  ;;  %7492 = vmatprep.subr.bf16.mxu0 %v8273_v39  ;;  %v8323_v38 = vld [vmem:[%s10699_s1 + $0x510] sm:$0xff]  }
  0x86   :  { %7513 = vmatpush3.bf16.msra.mxu1 %v8272_v37  ;;  %5547 = vmatprep.mubr.bf16.mxu1 %v1331_v11  ;;  %v8322_v37 = vld [vmem:[%s10699_s1 + $0x5d0] sm:$0xff]   ;;  %v8358_v11 = vld [vmem:[%s10699_s1 + $0x648] sm:$0xff]  }
  0x87   :  { %7514 = vmatprep.subr.bf16.mxu1 %v8274_v40  ;;  %v8324_v39 = vld [vmem:[%s10699_s1 + $0x590] sm:$0xff]   ;;  %v8325_v40 = vld [vmem:[%s10699_s1 + $0x548] sm:$0xff]  }
  0x88   :  { %7493 = vmatpush3.bf16.msra.mxu0 %v8275_v42  ;;  %v8326_v42 = vld [vmem:[%s10699_s1 + $0x5c8] sm:$0xff]   ;;  %v8354_v7 = vld [vmem:[%s10699_s1 + $0x650] sm:$0xff]  }
  0x89   :  { %7494 = vmatprep.subr.bf16.mxu0 %v8277_v44  ;;  %v8328_v44 = vld [vmem:[%s10699_s1 + $0x588] sm:$0xff]  }
  0x8a   :  { %7515 = vmatpush3.bf16.msra.mxu1 %v8276_v43  ;;  %v8327_v43 = vld [vmem:[%s10699_s1 + $0x508] sm:$0xff]  }
  0x8b   :  { %7516 = vmatprep.subr.bf16.mxu1 %v8278_v45  ;;  %v8329_v45 = vld [vmem:[%s10699_s1 + $0x540] sm:$0xff]  }
  0x8c   :  { %7495 = vmatpush3.bf16.msra.mxu0 %v8279_v46  ;;  %v8330_v46 = vld [vmem:[%s10699_s1 + $0x5c0] sm:$0xff]  }
  0x8d   :  { %7496 = vmatprep.subr.bf16.mxu0 %v8281_v48  ;;  %v8332_v48 = vld [vmem:[%s10699_s1 + $0x580] sm:$0xff]  }
  0x8e   :  { %7517 = vmatpush3.bf16.msra.mxu1 %v8280_v47  ;;  %v8331_v47 = vld [vmem:[%s10699_s1 + $0x500] sm:$0xff]  }
  0x8f   :  { %7518 = vmatprep.subr.bf16.mxu1 %v8282_v49  ;;  %v1314_v49 = vrot.slane %v9285_v4, %v8887_v41  ;;  %v8351_v4 = vld [vmem:[%s10699_s1 + $0x6d8] sm:$0xff]  }
  0x90   :  { %7497 = vmatpush3.bf16.msra.mxu0 %v8283_v50  ;;  %v8334_v50 = vld [vmem:[%s10699_s1 + $0x678] sm:$0xff]  }
  0x91   :  { %7498 = vmatprep.subr.bf16.mxu0 %v8285_v52  ;;  %v8336_v52 = vld [vmem:[%s10699_s1 + $0x638] sm:$0xff]  }
  0x92   :  { %7519 = vmatpush3.bf16.msra.mxu1 %v8284_v51  ;;  %v8335_v51 = vld [vmem:[%s10699_s1 + $0x6f8] sm:$0xff]  }
  0x93   :  { %7520 = vmatprep.subr.bf16.mxu1 %v8286_v53  ;;  %v8337_v53 = vld [vmem:[%s10699_s1 + $0x6b8] sm:$0xff]  }
  0x94   :  { %7499 = vmatpush3.bf16.msra.mxu0 %v8287_v54  ;;  %v1330_v54 = vcombine.high %v1314_v49, %v1314_v49 }
  0x95   :  { %7500 = vmatprep.subr.bf16.mxu0 %v8289_v56  ;;  %v8339_v56 = vld [vmem:[%s10699_s1 + $0x6f0] sm:$0xff]  }
  0x96   :  { %7521 = vmatpush3.bf16.msra.mxu1 %v8288_v55  ;;  %v8338_v55 = vld [vmem:[%s10699_s1 + $0x670] sm:$0xff]  }
  0x97   :  { %7522 = vmatprep.subr.bf16.mxu1 %v8290_v57  ;;  %v8340_v57 = vld [vmem:[%s10699_s1 + $0x630] sm:$0xff]  }
  0x98   :  { %7501 = vmatpush3.bf16.msra.mxu0 %v8291_v58  ;;  %v8341_v58 = vld [vmem:[%s10699_s1 + $0x6b0] sm:$0xff]  }
  0x99   :  { %7502 = vmatprep.subr.bf16.mxu0 %v8293_v60  ;;  %v8343_v60 = vld [vmem:[%s10699_s1 + $0x6e8] sm:$0xff]  }
  0x9a   :  { %7523 = vmatpush3.bf16.msra.mxu1 %v8292_v59  ;;  %v8342_v59 = vld [vmem:[%s10699_s1 + $0x668] sm:$0xff]  }
  0x9b   :  { %7524 = vmatprep.subr.bf16.mxu1 %v8294_v62  ;;  %v8345_v62 = vld [vmem:[%s10699_s1 + $0x6a8] sm:$0xff]  }
  0x9c   :  { %7503 = vmatpush3.bf16.msra.mxu0 %v8295_v1  ;;  %v8348_v1 = vld [vmem:[%s10699_s1 + $0x620] sm:$0xff]  }
  0x9d   :  { %7504 = vmatprep.subr.bf16.mxu0 %v8297_v5  ;;  %v8352_v5 = vld [vmem:[%s10699_s1 + $0x618] sm:$0xff]  }
  0x9e   :  { %7525 = vmatpush3.bf16.msra.mxu1 %v8296_v2  ;;  %v8349_v2 = vld [vmem:[%s10699_s1 + $0x6a0] sm:$0xff]  }
  0x9f   :  { %7526 = vmatprep.subr.bf16.mxu1 %v8298_v6  ;;  %v8353_v6 = vld [vmem:[%s10699_s1 + $0x698] sm:$0xff]  }
  0xa0   :  { %7505 = vmatpush3.bf16.msra.mxu0 %v8299_v9  ;;  %v8356_v9 = vld [vmem:[%s10699_s1 + $0x610] sm:$0xff]  }
  0xa1   :  { %7534 = vmatprep.subr.bf16.mxu0 %v8301_v13  ;;  %v19_v13 = vld [vmem:[%s10698_s0 + $0x18] sm:$0xff] }
  0xa2   :  { %7527 = vmatpush3.bf16.msra.mxu1 %v8300_v10  ;;  %v8357_v10 = vld [vmem:[%s10699_s1 + $0x690] sm:$0xff]  }
  0xa3   :  { %5508 = vmatmul.mubr.bf16.vlgmr.msra.gmra.mxu0 %v1307_v12  ;;  %7556 = vmatprep.subr.bf16.mxu1 %v8302_v14  ;;  %v8359_v12 = vld [vmem:[%s10699_s1 + $0x6c8] sm:$0xff]  }
  0xa4   :  { %7535 = vmatpush3.bf16.msra.mxu0 %v8303_v16  ;;  %5587 = vmatprep.mubr.bf16.mxu0 %v1328_v15  ;;  %v8360_v14 = vld [vmem:[%s10699_s1 + $0x608] sm:$0xff]   ;;  %v1340_v15 = vrot.slane %v19_v13, %v8887_v41  ;;  %v1333_v16 = vcombine.high %v19_v13, %v19_v13  ;;  %v8400_v13 = vld [vmem:[%s10699_s1 + $0x8f8] sm:$0xff]  }
  0xa5   :  { %5548 = vmatmul.mubr.bf16.vlgmr.msra.gmra.mxu1 %v1329_v18  ;;  %7536 = vmatprep.subr.bf16.mxu0 %v8305_v19  ;;  %v8362_v18 = vld [vmem:[%s10699_s1 + $0x640] sm:$0xff]  }
  0xa6   :  { %7557 = vmatpush3.bf16.msra.mxu1 %v8304_v17  ;;  %5627 = vmatprep.mubr.bf16.mxu1 %v1332_v21  ;;  %v8361_v17 = vld [vmem:[%s10699_s1 + $0x688] sm:$0xff]   ;;  %v1348_v19 = vcombine.high %v1340_v15, %v1340_v15  ;;  %v8363_v21 = vld [vmem:[%s10699_s1 + $0x6c0] sm:$0xff]  }
  0xa7   :  { %7558 = vmatprep.subr.bf16.mxu1 %v8306_v20  ;;  %v9494_v20 = vrot.slane %v1333_v16, %v8887_v41 }
  0xa8   :  { %7537 = vmatpush3.bf16.msra.mxu0 %v8307_v22  ;;  %v8364_v22 = vld [vmem:[%s10699_s1 + $0x600] sm:$0xff]  }
  0xa9   :  { %7538 = vmatprep.subr.bf16.mxu0 %v8309_v24  ;;  %v1349_v24 = vcombine.high %v9494_v20, %v9494_v20 }
  0xaa   :  { %7559 = vmatpush3.bf16.msra.mxu1 %v8308_v23  ;;  %v1370_v23 = vrot.slane %v1348_v19, %v8887_v41 }
  0xab   :  { %7560 = vmatprep.subr.bf16.mxu1 %v8310_v25  ;;  %v8365_v25 = vld [vmem:[%s10699_s1 + $0x680] sm:$0xff]  }
  0xac   :  { %7539 = vmatpush3.bf16.msra.mxu0 %v8311_v26  ;;  %v1380_v26 = vcombine.high %v1370_v23, %v1370_v23 }
  0xad   :  { %7540 = vmatprep.subr.bf16.mxu0 %v8313_v28  ;;  %v8366_v28 = vld [vmem:[%s10699_s1 + $0x778] sm:$0xff]  }
  0xae   :  { %7561 = vmatpush3.bf16.msra.mxu1 %v8312_v27  ;;  %v1356_v27 = vrot.slane %v1340_v15, %v8887_v41  ;;  %v8402_v15 = vld [vmem:[%s10699_s1 + $0x8b8] sm:$0xff]  }
  0xaf   :  { %7562 = vmatprep.subr.bf16.mxu1 %v8314_v29  ;;  %v8367_v29 = vld [vmem:[%s10699_s1 + $0x7f8] sm:$0xff]  }
  0xb0   :  { %7541 = vmatpush3.bf16.msra.mxu0 %v8315_v30  ;;  %v1377_v30 = vrot.slane %v1349_v24, %v8887_v41  ;;  %v8407_v24 = vld [vmem:[%s10699_s1 + $0x868] sm:$0xff]  }
  0xb1   :  { %7542 = vmatprep.subr.bf16.mxu0 %v8317_v32  ;;  %v8369_v32 = vld [vmem:[%s10699_s1 + $0x7b8] sm:$0xff]  }
  0xb2   :  { %7563 = vmatpush3.bf16.msra.mxu1 %v8316_v31  ;;  %v8368_v31 = vld [vmem:[%s10699_s1 + $0x738] sm:$0xff]  }
  0xb3   :  { %7564 = vmatprep.subr.bf16.mxu1 %v8318_v33  ;;  %v1378_v33 = vcombine.high %v1356_v27, %v1356_v27 }
  0xb4   :  { %7543 = vmatpush3.bf16.msra.mxu0 %v8319_v34  ;;  %v8370_v34 = vld [vmem:[%s10699_s1 + $0x770] sm:$0xff]  }
  0xb5   :  { %7544 = vmatprep.subr.bf16.mxu0 %v8321_v36  ;;  %v1381_v36 = vcombine.high %v1377_v30, %v1377_v30 }
  0xb6   :  { %7565 = vmatpush3.bf16.msra.mxu1 %v8320_v35  ;;  %v8371_v35 = vld [vmem:[%s10699_s1 + $0x7f0] sm:$0xff]  }
  0xb7   :  { %7566 = vmatprep.subr.bf16.mxu1 %v8322_v37 }
  0xb8   :  { %7545 = vmatpush3.bf16.msra.mxu0 %v8323_v38  ;;  %v8372_v38 = vld [vmem:[%s10699_s1 + $0x730] sm:$0xff]  }
  0xb9   :  { %7546 = vmatprep.subr.bf16.mxu0 %v8325_v40 }
  0xba   :  { %7567 = vmatpush3.bf16.msra.mxu1 %v8324_v39  ;;  %v8373_v39 = vld [vmem:[%s10699_s1 + $0x7b0] sm:$0xff]  }
  0xbb   :  { %7568 = vmatprep.subr.bf16.mxu1 %v8326_v42 }
  0xbc   :  { %7547 = vmatpush3.bf16.msra.mxu0 %v8327_v43  ;;  %v8374_v43 = vld [vmem:[%s10699_s1 + $0x768] sm:$0xff]  }
  0xbd   :  { %7548 = vmatprep.subr.bf16.mxu0 %v8329_v45  ;;  %v8375_v45 = vld [vmem:[%s10699_s1 + $0x7e8] sm:$0xff]  }
  0xbe   :  { %7569 = vmatpush3.bf16.msra.mxu1 %v8328_v44 }
  0xbf   :  { %7570 = vmatprep.subr.bf16.mxu1 %v8330_v46 }
  0xc0   :  { %7549 = vmatpush3.bf16.msra.mxu0 %v8331_v47 }
  0xc1   :  { %7578 = vmatprep.subr.bf16.mxu0 %v8334_v50  ;;  %v8377_v50 = vld [vmem:[%s10699_s1 + $0x7a8] sm:$0xff]  }
  0xc2   :  { %7571 = vmatpush3.bf16.msra.mxu1 %v8332_v48  ;;  %v8376_v48 = vld [vmem:[%s10699_s1 + $0x728] sm:$0xff]  }
  0xc3   :  { %5588 = vmatmul.mubr.bf16.vlgmr.msra.gmra.mxu0 %v1314_v49  ;;  %7600 = vmatprep.subr.bf16.mxu1 %v8335_v51 }
  0xc4   :  { %7579 = vmatpush3.bf16.msra.mxu0 %v8336_v52  ;;  %5667 = vmatprep.mubr.bf16.mxu0 %v1370_v23 }
  0xc5   :  { %5628 = vmatmul.mubr.bf16.vlgmr.msra.gmra.mxu1 %v1330_v54  ;;  %7580 = vmatprep.subr.bf16.mxu0 %v8338_v55  ;;  %v8379_v55 = vld [vmem:[%s10699_s1 + $0x7e0] sm:$0xff]  }
  0xc6   :  { %7601 = vmatpush3.bf16.msra.mxu1 %v8337_v53  ;;  %5707 = vmatprep.mubr.bf16.mxu1 %v1380_v26  ;;  %v8378_v53 = vld [vmem:[%s10699_s1 + $0x760] sm:$0xff]   ;;  %v8408_v26 = vld [vmem:[%s10699_s1 + $0x8e8] sm:$0xff]  }
  0xc7   :  { %7602 = vmatprep.subr.bf16.mxu1 %v8339_v56 }
  0xc8   :  { %7581 = vmatpush3.bf16.msra.mxu0 %v8340_v57  ;;  %v8380_v57 = vld [vmem:[%s10699_s1 + $0x720] sm:$0xff]  }
  0xc9   :  { %7582 = vmatprep.subr.bf16.mxu0 %v8342_v59  ;;  %v8382_v59 = vld [vmem:[%s10699_s1 + $0x758] sm:$0xff]  }
  0xca   :  { %7603 = vmatpush3.bf16.msra.mxu1 %v8341_v58  ;;  %v8381_v58 = vld [vmem:[%s10699_s1 + $0x7a0] sm:$0xff]  }
  0xcb   :  { %7604 = vmatprep.subr.bf16.mxu1 %v8343_v60  ;;  %v8383_v60 = vld [vmem:[%s10699_s1 + $0x7d8] sm:$0xff]  }
  0xcc   :  { %7583 = vmatpush3.bf16.msra.mxu0 %v8344_v61  ;;  %v8384_v61 = vld [vmem:[%s10699_s1 + $0x718] sm:$0xff]  }
  0xcd   :  { %7584 = vmatprep.subr.bf16.mxu0 %v8346_v63  ;;  %v8386_v63 = vld [vmem:[%s10699_s1 + $0x750] sm:$0xff]  }
  0xce   :  { %7605 = vmatpush3.bf16.msra.mxu1 %v8345_v62  ;;  %v8385_v62 = vld [vmem:[%s10699_s1 + $0x798] sm:$0xff]  }
  0xcf   :  { %7606 = vmatprep.subr.bf16.mxu1 %v8347_v0  ;;  %v8387_v0 = vld [vmem:[%s10699_s1 + $0x7d0] sm:$0xff]  }
  0xd0   :  { %7585 = vmatpush3.bf16.msra.mxu0 %v8348_v1  ;;  %v8388_v1 = vld [vmem:[%s10699_s1 + $0x710] sm:$0xff]  }
  0xd1   :  { %7586 = vmatprep.subr.bf16.mxu0 %v8350_v3  ;;  %v8390_v3 = vld [vmem:[%s10699_s1 + $0x748] sm:$0xff]  }
  0xd2   :  { %7607 = vmatpush3.bf16.msra.mxu1 %v8349_v2  ;;  %v8389_v2 = vld [vmem:[%s10699_s1 + $0x790] sm:$0xff]  }
  0xd3   :  { %7608 = vmatprep.subr.bf16.mxu1 %v8351_v4  ;;  %v8391_v4 = vld [vmem:[%s10699_s1 + $0x7c8] sm:$0xff]  }
  0xd4   :  { %7587 = vmatpush3.bf16.msra.mxu0 %v8352_v5  ;;  %v8392_v5 = vld [vmem:[%s10699_s1 + $0x708] sm:$0xff]  }
  0xd5   :  { %7588 = vmatprep.subr.bf16.mxu0 %v8354_v7  ;;  %v8394_v7 = vld [vmem:[%s10699_s1 + $0x740] sm:$0xff]  }
  0xd6   :  { %7609 = vmatpush3.bf16.msra.mxu1 %v8353_v6  ;;  %v8393_v6 = vld [vmem:[%s10699_s1 + $0x788] sm:$0xff]  }
  0xd7   :  { %7610 = vmatprep.subr.bf16.mxu1 %v8355_v8  ;;  %v8395_v8 = vld [vmem:[%s10699_s1 + $0x7c0] sm:$0xff]  }
  0xd8   :  { %7589 = vmatpush3.bf16.msra.mxu0 %v8356_v9  ;;  %v8396_v9 = vld [vmem:[%s10699_s1 + $0x700] sm:$0xff]  }
  0xd9   :  { %7590 = vmatprep.subr.bf16.mxu0 %v8358_v11  ;;  %v1363_v11 = vrot.slane %v9494_v20, %v8887_v41  ;;  %v8405_v20 = vld [vmem:[%s10699_s1 + $0x830] sm:$0xff]  }
  0xda   :  { %7611 = vmatpush3.bf16.msra.mxu1 %v8357_v10  ;;  %v8397_v10 = vld [vmem:[%s10699_s1 + $0x780] sm:$0xff]  }
  0xdb   :  { %7612 = vmatprep.subr.bf16.mxu1 %v8359_v12  ;;  %v8399_v12 = vld [vmem:[%s10699_s1 + $0x878] sm:$0xff]   ;;  %v1379_v16 = vcombine.high %v1363_v11, %v1363_v11 }
  0xdc   :  { %7591 = vmatpush3.bf16.msra.mxu0 %v8360_v14  ;;  %v8401_v14 = vld [vmem:[%s10699_s1 + $0x838] sm:$0xff]  }
  0xdd   :  { %7592 = vmatprep.subr.bf16.mxu0 %v8362_v18  ;;  %v8404_v18 = vld [vmem:[%s10699_s1 + $0x8f0] sm:$0xff]  }
  0xde   :  { %7613 = vmatpush3.bf16.msra.mxu1 %v8361_v17  ;;  %v8403_v17 = vld [vmem:[%s10699_s1 + $0x870] sm:$0xff]  }
  0xdf   :  { %7614 = vmatprep.subr.bf16.mxu1 %v8363_v21  ;;  %v8406_v21 = vld [vmem:[%s10699_s1 + $0x8b0] sm:$0xff]  }
  0xe0   :  { %7593 = vmatpush3.bf16.msra.mxu0 %v8364_v22 }
  0xe1   :  { %7622 = vmatprep.subr.bf16.mxu0 %v8366_v28 }
  0xe2   :  { %7615 = vmatpush3.bf16.msra.mxu1 %v8365_v25 }
  0xe3   :  { %v7330_v37 = vpop.f32.mrf.mxu0  ;;  %5668 = vmatmul.mubr.bf16.vlgmr.msra.gmra.mxu0 %v1356_v27  ;;  %7644 = vmatprep.subr.bf16.mxu1 %v8367_v29  ;;  %v8409_v29 = vld [vmem:[%s10699_s1 + $0x828] sm:$0xff]  }
  0xe4   :  { %7623 = vmatpush3.bf16.msra.mxu0 %v8368_v31  ;;  %5747 = vmatprep.mubr.bf16.mxu0 %v1377_v30  ;;  %v7352_v40 = vpop.f32.mrf.mxu1 }
  0xe5   :  { %5708 = vmatmul.mubr.bf16.vlgmr.msra.gmra.mxu1 %v1378_v33  ;;  %v7331_v42 = vpop.f32.mrf.mxu0  ;;  %7624 = vmatprep.subr.bf16.mxu0 %v8370_v34 }
  0xe6   :  { %7645 = vmatpush3.bf16.msra.mxu1 %v8369_v32  ;;  %v7332_v44 = vadd.f32 %v7331_v42, %v7330_v37  ;;  %5787 = vmatprep.mubr.bf16.mxu1 %v1381_v36  ;;  %v7353_v46 = vpop.f32.mrf.mxu1  ;;  %v8410_v32 = vld [vmem:[%s10699_s1 + $0x8a8] sm:$0xff]   ;;  %v8412_v37 = vld [vmem:[%s10699_s1 + $0x8e0] sm:$0xff]   ;;  %v8415_v42 = vld [vmem:[%s10699_s1 + $0x858] sm:$0xff]  }
  0xe7   :  { %v7333_v47 = vpop.f32.mrf.mxu0  ;;  %7646 = vmatprep.subr.bf16.mxu1 %v8371_v35  ;;  %v7354_v49 = vadd.f32 %v7353_v46, %v7352_v40  ;;  %v8411_v35 = vld [vmem:[%s10699_s1 + $0x860] sm:$0xff]   ;;  %v8419_v46 = vld [vmem:[%s10699_s1 + $0x850] sm:$0xff]  }
  0xe8   :  { %7625 = vmatpush3.bf16.msra.mxu0 %v8372_v38  ;;  %v7355_v51 = vpop.f32.mrf.mxu1  ;;  %v8414_v40 = vld [vmem:[%s10699_s1 + $0x8a0] sm:$0xff]   ;;  %v8420_v47 = vld [vmem:[%s10699_s1 + $0x8d0] sm:$0xff]  }
  0xe9   :  { %v7334_v52 = vpop.f32.mrf.mxu0  ;;  %7626 = vmatprep.subr.bf16.mxu0 %v8374_v43  ;;  %v9549_v54 = vadd.f32 %v7354_v49, %v7332_v44  ;;  %v8416_v43 = vld [vmem:[%s10699_s1 + $0x8d8] sm:$0xff]   ;;  %v8422_v49 = vld [vmem:[%s10699_s1 + $0x890] sm:$0xff]   ;;  %v8424_v51 = vld [vmem:[%s10699_s1 + $0x8c8] sm:$0xff]  }
  0xea   :  { %7647 = vmatpush3.bf16.msra.mxu1 %v8373_v39  ;;  %v7356_v56 = vpop.f32.mrf.mxu1  ;;  %v8413_v39 = vld [vmem:[%s10699_s1 + $0x820] sm:$0xff]   ;;  %v8417_v44 = vld [vmem:[%s10699_s1 + $0x818] sm:$0xff]  }
  0xeb   :  { %7648 = vmatprep.subr.bf16.mxu1 %v8375_v45  ;;  %v8418_v45 = vld [vmem:[%s10699_s1 + $0x898] sm:$0xff]   ;;  %v20_v52 = vld [vmem:[%s10698_s0 + $0x20] sm:$0xff]  ;;  %v8426_v56 = vld [vmem:[%s10699_s1 + $0x888] sm:$0xff]  }
  0xec   :  { %7627 = vmatpush3.bf16.msra.mxu0 %v8376_v48  ;;  %v8421_v48 = vld [vmem:[%s10699_s1 + $0x810] sm:$0xff]  }
  0xed   :  { %7628 = vmatprep.subr.bf16.mxu0 %v8378_v53  ;;  %v8425_v53 = vld [vmem:[%s10699_s1 + $0x808] sm:$0xff]  }
  0xee   :  { %7649 = vmatpush3.bf16.msra.mxu1 %v8377_v50  ;;  %v8423_v50 = vld [vmem:[%s10699_s1 + $0x848] sm:$0xff]  }
  0xef   :  { %7650 = vmatprep.subr.bf16.mxu1 %v8379_v55  ;;  %v1382_v55 = vcombine.high %v20_v52, %v20_v52 }
  0xf0   :  { %7629 = vmatpush3.bf16.msra.mxu0 %v8380_v57  ;;  %v8427_v57 = vld [vmem:[%s10699_s1 + $0x840] sm:$0xff]  }
  0xf1   :  { %7630 = vmatprep.subr.bf16.mxu0 %v8382_v59  ;;  %v9705_v59 = vrot.slane %v1382_v55, %v8887_v41  ;;  %v8467_v55 = vld [vmem:[%s10699_s1 + $0xab8] sm:$0xff]  }
  0xf2   :  { %7651 = vmatpush3.bf16.msra.mxu1 %v8381_v58 }
  0xf3   :  { %7652 = vmatprep.subr.bf16.mxu1 %v8383_v60  ;;  %v8428_v60 = vld [vmem:[%s10699_s1 + $0x8c0] sm:$0xff]  }
  0xf4   :  { %7631 = vmatpush3.bf16.msra.mxu0 %v8384_v61  ;;  %v8429_v61 = vld [vmem:[%s10699_s1 + $0x800] sm:$0xff]  }
  0xf5   :  { %7632 = vmatprep.subr.bf16.mxu0 %v8386_v63  ;;  %v1398_v63 = vcombine.high %v9705_v59, %v9705_v59 }
  0xf6   :  { %7653 = vmatpush3.bf16.msra.mxu1 %v8385_v62 }
  0xf7   :  { %7654 = vmatprep.subr.bf16.mxu1 %v8387_v0  ;;  %v8430_v0 = vld [vmem:[%s10699_s1 + $0x880] sm:$0xff]  }
  0xf8   :  { %7633 = vmatpush3.bf16.msra.mxu0 %v8388_v1 }
  0xf9   :  { %7634 = vmatprep.subr.bf16.mxu0 %v8390_v3  ;;  %v8431_v3 = vld [vmem:[%s10699_s1 + $0x978] sm:$0xff]  }
  0xfa   :  { %7655 = vmatpush3.bf16.msra.mxu1 %v8389_v2 }
  0xfb   :  { %7656 = vmatprep.subr.bf16.mxu1 %v8391_v4  ;;  %v8432_v4 = vld [vmem:[%s10699_s1 + $0x9f8] sm:$0xff]  }
  0xfc   :  { %7635 = vmatpush3.bf16.msra.mxu0 %v8392_v5  ;;  %v1426_v5 = vrot.slane %v1398_v63, %v8887_v41 }
  0xfd   :  { %7636 = vmatprep.subr.bf16.mxu0 %v8394_v7  ;;  %v8434_v7 = vld [vmem:[%s10699_s1 + $0x9b8] sm:$0xff]  }
  0xfe   :  { %7657 = vmatpush3.bf16.msra.mxu1 %v8393_v6  ;;  %v8433_v6 = vld [vmem:[%s10699_s1 + $0x938] sm:$0xff]  }
  0xff   :  { %7658 = vmatprep.subr.bf16.mxu1 %v8395_v8 }
 0x100   :  { %7637 = vmatpush3.bf16.msra.mxu0 %v8396_v9  ;;  %v8435_v9 = vld [vmem:[%s10699_s1 + $0x970] sm:$0xff]  }
 0x101   :  { %7666 = vmatprep.subr.bf16.mxu0 %v8399_v12 }
 0x102   :  { %7659 = vmatpush3.bf16.msra.mxu1 %v8397_v10  ;;  %v8436_v10 = vld [vmem:[%s10699_s1 + $0x9f0] sm:$0xff]  }
 0x103   :  { %v7374_v19 = vpop.f32.mrf.mxu0  ;;  %5748 = vmatmul.mubr.bf16.vlgmr.msra.gmra.mxu0 %v1363_v11  ;;  %7688 = vmatprep.subr.bf16.mxu1 %v8400_v13  ;;  %v1430_v11 = vcombine.high %v1426_v5, %v1426_v5  ;;  %v8437_v13 = vld [vmem:[%s10699_s1 + $0x930] sm:$0xff]  }
 0x104   :  { %7667 = vmatpush3.bf16.msra.mxu0 %v8401_v14  ;;  %v7396_v22 = vpop.f32.mrf.mxu1  ;;  %v8438_v14 = vld [vmem:[%s10699_s1 + $0x9b0] sm:$0xff]  }
 0x105   :  { %5788 = vmatmul.mubr.bf16.vlgmr.msra.gmra.mxu1 %v1379_v16  ;;  %v7375_v23 = vpop.f32.mrf.mxu0  ;;  %7668 = vmatprep.subr.bf16.mxu0 %v8403_v17  ;;  %v8439_v17 = vld [vmem:[%s10699_s1 + $0x968] sm:$0xff]  }
 0x106   :  { %7689 = vmatpush3.bf16.msra.mxu1 %v8402_v15  ;;  %v7376_v25 = vadd.f32 %v7375_v23, %v7374_v19  ;;  %v7397_v27 = vpop.f32.mrf.mxu1  ;;  %v8440_v19 = vld [vmem:[%s10699_s1 + $0x9e8] sm:$0xff]  }
 0x107   :  { %v7377_v28 = vpop.f32.mrf.mxu0  ;;  %7690 = vmatprep.subr.bf16.mxu1 %v8404_v18  ;;  %v7398_v31 = vadd.f32 %v7397_v27, %v7396_v22  ;;  %v8441_v22 = vld [vmem:[%s10699_s1 + $0x928] sm:$0xff]  }
 0x108   :  { %v5270_v30 = vadd.f32 %v7376_v25, %v9549_v54  ;;  %7669 = vmatpush3.bf16.msra.mxu0 %v8405_v20  ;;  %v7399_v33 = vpop.f32.mrf.mxu1  ;;  %v1389_v54 = vrot.slane %v20_v52, %v8887_v41  ;;  %v8442_v25 = vld [vmem:[%s10699_s1 + $0x9a8] sm:$0xff]   ;;  %v8443_v28 = vld [vmem:[%s10699_s1 + $0x960] sm:$0xff]   ;;  %v8464_v52 = vld [vmem:[%s10699_s1 + $0xa78] sm:$0xff]  }
 0x109   :  { %v7378_v34 = vpop.f32.mrf.mxu0  ;;  %7670 = vmatprep.subr.bf16.mxu0 %v8407_v24  ;;  %v8446_v33 = vld [vmem:[%s10699_s1 + $0x9a0] sm:$0xff]  }
 0x10a   :  { %v9650_v36 = vadd.f32 %v7398_v31, %v5270_v30  ;;  %7691 = vmatpush3.bf16.msra.mxu1 %v8406_v21  ;;  %v7400_v38 = vpop.f32.mrf.mxu1  ;;  %v1397_v58 = vcombine.high %v1389_v54, %v1389_v54  ;;  %v1405_v2 = vrot.slane %v1389_v54, %v8887_v41  ;;  %v8444_v30 = vld [vmem:[%s10699_s1 + $0x9e0] sm:$0xff]   ;;  %v8447_v34 = vld [vmem:[%s10699_s1 + $0x958] sm:$0xff]  }
 0x10b   :  { %7692 = vmatprep.subr.bf16.mxu1 %v8408_v26  ;;  %v8451_v38 = vld [vmem:[%s10699_s1 + $0x950] sm:$0xff]   ;;  %v8466_v54 = vld [vmem:[%s10699_s1 + $0xa38] sm:$0xff]  }
 0x10c   :  { %7671 = vmatpush3.bf16.msra.mxu0 %v8409_v29  ;;  %v1419_v62 = vrot.slane %v1397_v58, %v8887_v41  ;;  %v1427_v8 = vcombine.high %v1405_v2, %v1405_v2  ;;  %v8469_v58 = vld [vmem:[%s10699_s1 + $0xaf0] sm:$0xff]  }
 0x10d   :  { %7672 = vmatprep.subr.bf16.mxu0 %v8411_v35  ;;  %v8448_v35 = vld [vmem:[%s10699_s1 + $0x9d8] sm:$0xff]  }
 0x10e   :  { %7693 = vmatpush3.bf16.msra.mxu1 %v8410_v32  ;;  %5827 = vmatprep.mubr.bf16.mxu0 %v1419_v62  ;;  %v1429_v1 = vcombine.high %v1419_v62, %v1419_v62  ;;  %v8445_v32 = vld [vmem:[%s10699_s1 + $0x920] sm:$0xff]  }
 0x10f   :  { %7694 = vmatprep.subr.bf16.mxu1 %v8412_v37  ;;  %v8450_v37 = vld [vmem:[%s10699_s1 + $0x998] sm:$0xff]  }
 0x110   :  { %7673 = vmatpush3.bf16.msra.mxu0 %v8413_v39  ;;  %5867 = vmatprep.mubr.bf16.mxu1 %v1429_v1  ;;  %v8452_v39 = vld [vmem:[%s10699_s1 + $0x9d0] sm:$0xff]  }
 0x111   :  { %7674 = vmatprep.subr.bf16.mxu0 %v8415_v42  ;;  %v8454_v42 = vld [vmem:[%s10699_s1 + $0x990] sm:$0xff]  }
 0x112   :  { %7695 = vmatpush3.bf16.msra.mxu1 %v8414_v40  ;;  %v8453_v40 = vld [vmem:[%s10699_s1 + $0x910] sm:$0xff]  }
 0x113   :  { %7696 = vmatprep.subr.bf16.mxu1 %v8416_v43  ;;  %v8455_v43 = vld [vmem:[%s10699_s1 + $0x948] sm:$0xff]  }
 0x114   :  { %7675 = vmatpush3.bf16.msra.mxu0 %v8417_v44  ;;  %v8456_v44 = vld [vmem:[%s10699_s1 + $0x9c8] sm:$0xff]  }
 0x115   :  { %7676 = vmatprep.subr.bf16.mxu0 %v8419_v46  ;;  %v8458_v46 = vld [vmem:[%s10699_s1 + $0x988] sm:$0xff]  }
 0x116   :  { %7697 = vmatpush3.bf16.msra.mxu1 %v8418_v45  ;;  %v8457_v45 = vld [vmem:[%s10699_s1 + $0x908] sm:$0xff]  }
 0x117   :  { %7698 = vmatprep.subr.bf16.mxu1 %v8420_v47  ;;  %v8459_v47 = vld [vmem:[%s10699_s1 + $0x940] sm:$0xff]  }
 0x118   :  { %7677 = vmatpush3.bf16.msra.mxu0 %v8421_v48  ;;  %v8460_v48 = vld [vmem:[%s10699_s1 + $0x9c0] sm:$0xff]  }
 0x119   :  { %7678 = vmatprep.subr.bf16.mxu0 %v8423_v50  ;;  %v8462_v50 = vld [vmem:[%s10699_s1 + $0x980] sm:$0xff]  }
 0x11a   :  { %7699 = vmatpush3.bf16.msra.mxu1 %v8422_v49  ;;  %v8461_v49 = vld [vmem:[%s10699_s1 + $0x900] sm:$0xff]  }
 0x11b   :  { %7700 = vmatprep.subr.bf16.mxu1 %v8424_v51  ;;  %v1412_v51 = vrot.slane %v9705_v59, %v8887_v41 }
 0x11c   :  { %7679 = vmatpush3.bf16.msra.mxu0 %v8425_v53  ;;  %v8465_v53 = vld [vmem:[%s10699_s1 + $0xaf8] sm:$0xff]  }
 0x11d   :  { %7680 = vmatprep.subr.bf16.mxu0 %v8427_v57  ;;  %v8468_v57 = vld [vmem:[%s10699_s1 + $0xa70] sm:$0xff]  }
 0x11e   :  { %7701 = vmatpush3.bf16.msra.mxu1 %v8426_v56  ;;  %v1428_v56 = vcombine.high %v1412_v51, %v1412_v51 }
 0x11f   :  { %7702 = vmatprep.subr.bf16.mxu1 %v8428_v60  ;;  %v8470_v60 = vld [vmem:[%s10699_s1 + $0xa30] sm:$0xff]  }
 0x120   :  { %7681 = vmatpush3.bf16.msra.mxu0 %v8429_v61  ;;  %v8471_v61 = vld [vmem:[%s10699_s1 + $0xab0] sm:$0xff]  }
 0x121   :  { %7710 = vmatprep.subr.bf16.mxu0 %v8431_v3 }
 0x122   :  { %7703 = vmatpush3.bf16.msra.mxu1 %v8430_v0  ;;  %v8472_v0 = vld [vmem:[%s10699_s1 + $0xa68] sm:$0xff]  }
 0x123   :  { %v7418_v12 = vpop.f32.mrf.mxu0  ;;  %5828 = vmatmul.mubr.bf16.vlgmr.msra.gmra.mxu0 %v1405_v2  ;;  %7732 = vmatprep.subr.bf16.mxu1 %v8432_v4  ;;  %v8473_v2 = vld [vmem:[%s10699_s1 + $0xae8] sm:$0xff]  }
 0x124   :  { %7711 = vmatpush3.bf16.msra.mxu0 %v8433_v6  ;;  %5907 = vmatprep.mubr.bf16.mxu0 %v1426_v5  ;;  %v8474_v5 = vld [vmem:[%s10699_s1 + $0xa28] sm:$0xff]  }
 0x125   :  { %v7440_v15 = vpop.f32.mrf.mxu1  ;;  %5868 = vmatmul.mubr.bf16.vlgmr.msra.gmra.mxu1 %v1427_v8  ;;  %v7419_v16 = vpop.f32.mrf.mxu0  ;;  %7712 = vmatprep.subr.bf16.mxu0 %v8435_v9  ;;  %v8475_v8 = vld [vmem:[%s10699_s1 + $0xaa8] sm:$0xff]  }
 0x126   :  { %7733 = vmatpush3.bf16.msra.mxu1 %v8434_v7  ;;  %v7420_v18 = vadd.f32 %v7419_v16, %v7418_v12  ;;  %5947 = vmatprep.mubr.bf16.mxu1 %v1430_v11  ;;  %v8476_v11 = vld [vmem:[%s10699_s1 + $0xa60] sm:$0xff]  }
 0x127   :  { %v7441_v20 = vpop.f32.mrf.mxu1  ;;  %v7421_v21 = vpop.f32.mrf.mxu0  ;;  %7734 = vmatprep.subr.bf16.mxu1 %v8436_v10  ;;  %v8479_v16 = vld [vmem:[%s10699_s1 + $0xaa0] sm:$0xff]  }
 0x128   :  { %v5350_v23 = vadd.f32 %v7420_v18, %v9650_v36  ;;  %v7442_v24 = vadd.f32 %v7441_v20, %v7440_v15  ;;  %7713 = vmatpush3.bf16.msra.mxu0 %v8437_v13  ;;  %v8449_v36 = vld [vmem:[%s10699_s1 + $0x918] sm:$0xff]   ;;  %v8477_v13 = vld [vmem:[%s10699_s1 + $0xae0] sm:$0xff]   ;;  %v8484_v21 = vld [vmem:[%s10699_s1 + $0xa50] sm:$0xff]  }
 0x129   :  { %v7443_v26 = vpop.f32.mrf.mxu1  ;;  %v7422_v27 = vpop.f32.mrf.mxu0  ;;  %7714 = vmatprep.subr.bf16.mxu0 %v8439_v17  ;;  %v8478_v15 = vld [vmem:[%s10699_s1 + $0xa20] sm:$0xff]   ;;  %v8480_v17 = vld [vmem:[%s10699_s1 + $0xa58] sm:$0xff]  }
 0x12a   :  { %v9761_v29 = vadd.f32 %v7442_v24, %v5350_v23  ;;  %7735 = vmatpush3.bf16.msra.mxu1 %v8438_v14  ;;  %v8481_v18 = vld [vmem:[%s10699_s1 + $0xad8] sm:$0xff]   ;;  %v8486_v23 = vld [vmem:[%s10699_s1 + $0xa10] sm:$0xff]   ;;  %v8489_v26 = vld [vmem:[%s10699_s1 + $0xac8] sm:$0xff]  }
 0x12b   :  { %v7444_v31 = vpop.f32.mrf.mxu1  ;;  %7736 = vmatprep.subr.bf16.mxu1 %v8440_v19  ;;  %v8482_v19 = vld [vmem:[%s10699_s1 + $0xa18] sm:$0xff]   ;;  %v8487_v24 = vld [vmem:[%s10699_s1 + $0xa90] sm:$0xff]   ;;  %v21_v27 = vld [vmem:[%s10698_s0 + $0x28] sm:$0xff] }
 0x12c   :  { %7715 = vmatpush3.bf16.msra.mxu0 %v8441_v22  ;;  %v8483_v20 = vld [vmem:[%s10699_s1 + $0xa98] sm:$0xff]   ;;  %v8485_v22 = vld [vmem:[%s10699_s1 + $0xad0] sm:$0xff]   ;;  %v8491_v31 = vld [vmem:[%s10699_s1 + $0xa88] sm:$0xff]  }
 0x12d   :  { %7716 = vmatprep.subr.bf16.mxu0 %v8443_v28  ;;  %v8490_v28 = vld [vmem:[%s10699_s1 + $0xa08] sm:$0xff]  }
 0x12e   :  { %7737 = vmatpush3.bf16.msra.mxu1 %v8442_v25  ;;  %v8488_v25 = vld [vmem:[%s10699_s1 + $0xa48] sm:$0xff]  }
 0x12f   :  { %7738 = vmatprep.subr.bf16.mxu1 %v8444_v30  ;;  %v1431_v30 = vcombine.high %v21_v27, %v21_v27 }
 0x130   :  { %7717 = vmatpush3.bf16.msra.mxu0 %v8445_v32  ;;  %v8492_v32 = vld [vmem:[%s10699_s1 + $0xa40] sm:$0xff]  }
 0x131   :  { %7718 = vmatprep.subr.bf16.mxu0 %v8447_v34  ;;  %v9917_v34 = vrot.slane %v1431_v30, %v8887_v41  ;;  %v8532_v30 = vld [vmem:[%s10699_s1 + $0xcb8] sm:$0xff]  }
 0x132   :  { %7739 = vmatpush3.bf16.msra.mxu1 %v8446_v33 }
 0x133   :  { %7740 = vmatprep.subr.bf16.mxu1 %v8448_v35  ;;  %v8493_v35 = vld [vmem:[%s10699_s1 + $0xac0] sm:$0xff]  }
 0x134   :  { %7719 = vmatpush3.bf16.msra.mxu0 %v8449_v36  ;;  %v8494_v36 = vld [vmem:[%s10699_s1 + $0xa00] sm:$0xff]  }
 0x135   :  { %7720 = vmatprep.subr.bf16.mxu0 %v8451_v38  ;;  %v1447_v38 = vcombine.high %v9917_v34, %v9917_v34 }
 0x136   :  { %7741 = vmatpush3.bf16.msra.mxu1 %v8450_v37 }
 0x137   :  { %7742 = vmatprep.subr.bf16.mxu1 %v8452_v39  ;;  %v8495_v39 = vld [vmem:[%s10699_s1 + $0xa80] sm:$0xff]  }
 0x138   :  { %7721 = vmatpush3.bf16.msra.mxu0 %v8453_v40 }
 0x139   :  { %7722 = vmatprep.subr.bf16.mxu0 %v8455_v43  ;;  %v8496_v43 = vld [vmem:[%s10699_s1 + $0xb78] sm:$0xff]  }
 0x13a   :  { %7743 = vmatpush3.bf16.msra.mxu1 %v8454_v42 }
 0x13b   :  { %7744 = vmatprep.subr.bf16.mxu1 %v8456_v44  ;;  %v8497_v44 = vld [vmem:[%s10699_s1 + $0xbf8] sm:$0xff]  }
 0x13c   :  { %7723 = vmatpush3.bf16.msra.mxu0 %v8457_v45  ;;  %v1475_v45 = vrot.slane %v1447_v38, %v8887_v41 }
 0x13d   :  { %7724 = vmatprep.subr.bf16.mxu0 %v8459_v47  ;;  %v8499_v47 = vld [vmem:[%s10699_s1 + $0xbb8] sm:$0xff]  }
 0x13e   :  { %7745 = vmatpush3.bf16.msra.mxu1 %v8458_v46  ;;  %v8498_v46 = vld [vmem:[%s10699_s1 + $0xb38] sm:$0xff]  }
 0x13f   :  { %7746 = vmatprep.subr.bf16.mxu1 %v8460_v48 }
 0x140   :  { %7725 = vmatpush3.bf16.msra.mxu0 %v8461_v49  ;;  %v8500_v49 = vld [vmem:[%s10699_s1 + $0xb70] sm:$0xff]  }
 0x141   :  { %7754 = vmatprep.subr.bf16.mxu0 %v8464_v52 }
 0x142   :  { %7747 = vmatpush3.bf16.msra.mxu1 %v8462_v50  ;;  %v8501_v50 = vld [vmem:[%s10699_s1 + $0xbf0] sm:$0xff]  }
 0x143   :  { %v7462_v59 = vpop.f32.mrf.mxu0  ;;  %5908 = vmatmul.mubr.bf16.vlgmr.msra.gmra.mxu0 %v1412_v51  ;;  %7776 = vmatprep.subr.bf16.mxu1 %v8465_v53  ;;  %v1479_v51 = vcombine.high %v1475_v45, %v1475_v45  ;;  %v8502_v53 = vld [vmem:[%s10699_s1 + $0xb30] sm:$0xff]  }
 0x144   :  { %7755 = vmatpush3.bf16.msra.mxu0 %v8466_v54  ;;  %v8503_v54 = vld [vmem:[%s10699_s1 + $0xbb0] sm:$0xff]  }
 0x145   :  { %v7484_v62 = vpop.f32.mrf.mxu1  ;;  %5948 = vmatmul.mubr.bf16.vlgmr.msra.gmra.mxu1 %v1428_v56  ;;  %v7463_v63 = vpop.f32.mrf.mxu0  ;;  %7756 = vmatprep.subr.bf16.mxu0 %v8468_v57  ;;  %v8504_v57 = vld [vmem:[%s10699_s1 + $0xb68] sm:$0xff]  }
 0x146   :  { %7777 = vmatpush3.bf16.msra.mxu1 %v8467_v55  ;;  %v7464_v1 = vadd.f32 %v7463_v63, %v7462_v59  ;;  %v8505_v59 = vld [vmem:[%s10699_s1 + $0xbe8] sm:$0xff]  }
 0x147   :  { %v7485_v3 = vpop.f32.mrf.mxu1  ;;  %v7465_v4 = vpop.f32.mrf.mxu0  ;;  %7778 = vmatprep.subr.bf16.mxu1 %v8469_v58 }
 0x148   :  { %v5430_v6 = vadd.f32 %v7464_v1, %v9761_v29  ;;  %v7486_v7 = vadd.f32 %v7485_v3, %v7484_v62  ;;  %7757 = vmatpush3.bf16.msra.mxu0 %v8470_v60  ;;  %v1438_v29 = vrot.slane %v21_v27, %v8887_v41  ;;  %v8506_v62 = vld [vmem:[%s10699_s1 + $0xb28] sm:$0xff]   ;;  %v8508_v4 = vld [vmem:[%s10699_s1 + $0xb60] sm:$0xff]   ;;  %v8529_v27 = vld [vmem:[%s10699_s1 + $0xc78] sm:$0xff]  }
 0x149   :  { %v7487_v9 = vpop.f32.mrf.mxu1  ;;  %v7466_v10 = vpop.f32.mrf.mxu0  ;;  %7758 = vmatprep.subr.bf16.mxu0 %v8472_v0  ;;  %v8507_v1 = vld [vmem:[%s10699_s1 + $0xba8] sm:$0xff]  }
 0x14a   :  { %v9862_v12 = vadd.f32 %v7486_v7, %v5430_v6  ;;  %7779 = vmatpush3.bf16.msra.mxu1 %v8471_v61  ;;  %v1446_v33 = vcombine.high %v1438_v29, %v1438_v29  ;;  %v1454_v42 = vrot.slane %v1438_v29, %v8887_v41  ;;  %v8509_v6 = vld [vmem:[%s10699_s1 + $0xbe0] sm:$0xff]   ;;  %v8512_v10 = vld [vmem:[%s10699_s1 + $0xb58] sm:$0xff]  }
 0x14b   :  { %v7488_v14 = vpop.f32.mrf.mxu1  ;;  %7780 = vmatprep.subr.bf16.mxu1 %v8473_v2  ;;  %v8511_v9 = vld [vmem:[%s10699_s1 + $0xba0] sm:$0xff]   ;;  %v8531_v29 = vld [vmem:[%s10699_s1 + $0xc38] sm:$0xff]  }
 0x14c   :  { %7759 = vmatpush3.bf16.msra.mxu0 %v8474_v5  ;;  %v1468_v37 = vrot.slane %v1446_v33, %v8887_v41  ;;  %v1476_v48 = vcombine.high %v1454_v42, %v1454_v42  ;;  %v8516_v14 = vld [vmem:[%s10699_s1 + $0xb50] sm:$0xff]  }
 0x14d   :  { %7760 = vmatprep.subr.bf16.mxu0 %v8476_v11  ;;  %v8513_v11 = vld [vmem:[%s10699_s1 + $0xbd8] sm:$0xff]   ;;  %v8534_v33 = vld [vmem:[%s10699_s1 + $0xcf0] sm:$0xff]  }
 0x14e   :  { %7781 = vmatpush3.bf16.msra.mxu1 %v8475_v8  ;;  %5987 = vmatprep.mubr.bf16.mxu0 %v1468_v37  ;;  %v1478_v40 = vcombine.high %v1468_v37, %v1468_v37  ;;  %v8510_v8 = vld [vmem:[%s10699_s1 + $0xb20] sm:$0xff]  }
 0x14f   :  { %7782 = vmatprep.subr.bf16.mxu1 %v8477_v13  ;;  %v8515_v13 = vld [vmem:[%s10699_s1 + $0xb98] sm:$0xff]  }
 0x150   :  { %7761 = vmatpush3.bf16.msra.mxu0 %v8478_v15  ;;  %6027 = vmatprep.mubr.bf16.mxu1 %v1478_v40  ;;  %v8517_v15 = vld [vmem:[%s10699_s1 + $0xbd0] sm:$0xff]  }
 0x151   :  { %7762 = vmatprep.subr.bf16.mxu0 %v8480_v17  ;;  %v8519_v17 = vld [vmem:[%s10699_s1 + $0xb90] sm:$0xff]  }
 0x152   :  { %7783 = vmatpush3.bf16.msra.mxu1 %v8479_v16  ;;  %v8518_v16 = vld [vmem:[%s10699_s1 + $0xb10] sm:$0xff]  }
 0x153   :  { %7784 = vmatprep.subr.bf16.mxu1 %v8481_v18  ;;  %v8520_v18 = vld [vmem:[%s10699_s1 + $0xb48] sm:$0xff]  }
 0x154   :  { %7763 = vmatpush3.bf16.msra.mxu0 %v8482_v19  ;;  %v8521_v19 = vld [vmem:[%s10699_s1 + $0xbc8] sm:$0xff]  }
 0x155   :  { %7764 = vmatprep.subr.bf16.mxu0 %v8484_v21  ;;  %v8523_v21 = vld [vmem:[%s10699_s1 + $0xb88] sm:$0xff]  }
 0x156   :  { %7785 = vmatpush3.bf16.msra.mxu1 %v8483_v20  ;;  %v8522_v20 = vld [vmem:[%s10699_s1 + $0xb08] sm:$0xff]  }
 0x157   :  { %7786 = vmatprep.subr.bf16.mxu1 %v8485_v22  ;;  %v8524_v22 = vld [vmem:[%s10699_s1 + $0xb40] sm:$0xff]  }
 0x158   :  { %7765 = vmatpush3.bf16.msra.mxu0 %v8486_v23  ;;  %v8525_v23 = vld [vmem:[%s10699_s1 + $0xbc0] sm:$0xff]  }
 0x159   :  { %7766 = vmatprep.subr.bf16.mxu0 %v8488_v25  ;;  %v8527_v25 = vld [vmem:[%s10699_s1 + $0xb80] sm:$0xff]  }
 0x15a   :  { %7787 = vmatpush3.bf16.msra.mxu1 %v8487_v24  ;;  %v8526_v24 = vld [vmem:[%s10699_s1 + $0xb00] sm:$0xff]  }
 0x15b   :  { %7788 = vmatprep.subr.bf16.mxu1 %v8489_v26  ;;  %v1461_v26 = vrot.slane %v9917_v34, %v8887_v41 }
 0x15c   :  { %7767 = vmatpush3.bf16.msra.mxu0 %v8490_v28  ;;  %v8530_v28 = vld [vmem:[%s10699_s1 + $0xcf8] sm:$0xff]  }
 0x15d   :  { %7768 = vmatprep.subr.bf16.mxu0 %v8492_v32  ;;  %v8533_v32 = vld [vmem:[%s10699_s1 + $0xc70] sm:$0xff]  }
 0x15e   :  { %7789 = vmatpush3.bf16.msra.mxu1 %v8491_v31  ;;  %v1477_v31 = vcombine.high %v1461_v26, %v1461_v26 }
 0x15f   :  { %7790 = vmatprep.subr.bf16.mxu1 %v8493_v35  ;;  %v8535_v35 = vld [vmem:[%s10699_s1 + $0xc30] sm:$0xff]  }
 0x160   :  { %7769 = vmatpush3.bf16.msra.mxu0 %v8494_v36  ;;  %v8536_v36 = vld [vmem:[%s10699_s1 + $0xcb0] sm:$0xff]  }
 0x161   :  { %7798 = vmatprep.subr.bf16.mxu0 %v8496_v43 }
 0x162   :  { %7791 = vmatpush3.bf16.msra.mxu1 %v8495_v39  ;;  %v8537_v39 = vld [vmem:[%s10699_s1 + $0xc68] sm:$0xff]  }
 0x163   :  { %v7506_v52 = vpop.f32.mrf.mxu0  ;;  %5988 = vmatmul.mubr.bf16.vlgmr.msra.gmra.mxu0 %v1454_v42  ;;  %7820 = vmatprep.subr.bf16.mxu1 %v8497_v44  ;;  %v8538_v42 = vld [vmem:[%s10699_s1 + $0xce8] sm:$0xff]  }
 0x164   :  { %7799 = vmatpush3.bf16.msra.mxu0 %v8498_v46  ;;  %6067 = vmatprep.mubr.bf16.mxu0 %v1475_v45  ;;  %v8539_v45 = vld [vmem:[%s10699_s1 + $0xc28] sm:$0xff]  }
 0x165   :  { %v7528_v55 = vpop.f32.mrf.mxu1  ;;  %6028 = vmatmul.mubr.bf16.vlgmr.msra.gmra.mxu1 %v1476_v48  ;;  %v7507_v56 = vpop.f32.mrf.mxu0  ;;  %7800 = vmatprep.subr.bf16.mxu0 %v8500_v49  ;;  %v8540_v48 = vld [vmem:[%s10699_s1 + $0xca8] sm:$0xff]  }
 0x166   :  { %7821 = vmatpush3.bf16.msra.mxu1 %v8499_v47  ;;  %v7508_v58 = vadd.f32 %v7507_v56, %v7506_v52  ;;  %6107 = vmatprep.mubr.bf16.mxu1 %v1479_v51  ;;  %v8541_v51 = vld [vmem:[%s10699_s1 + $0xc60] sm:$0xff]  }
 0x167   :  { %v7529_v60 = vpop.f32.mrf.mxu1  ;;  %v7509_v61 = vpop.f32.mrf.mxu0  ;;  %7822 = vmatprep.subr.bf16.mxu1 %v8501_v50  ;;  %v8544_v56 = vld [vmem:[%s10699_s1 + $0xca0] sm:$0xff]  }
 0x168   :  { %v5510_v63 = vadd.f32 %v7508_v58, %v9862_v12  ;;  %v7530_v0 = vadd.f32 %v7529_v60, %v7528_v55  ;;  %7801 = vmatpush3.bf16.msra.mxu0 %v8502_v53  ;;  %v8514_v12 = vld [vmem:[%s10699_s1 + $0xb18] sm:$0xff]   ;;  %v8542_v53 = vld [vmem:[%s10699_s1 + $0xce0] sm:$0xff]   ;;  %v8549_v61 = vld [vmem:[%s10699_s1 + $0xc50] sm:$0xff]  }
 0x169   :  { %v7531_v2 = vpop.f32.mrf.mxu1  ;;  %v7510_v3 = vpop.f32.mrf.mxu0  ;;  %7802 = vmatprep.subr.bf16.mxu0 %v8504_v57  ;;  %v8543_v55 = vld [vmem:[%s10699_s1 + $0xc20] sm:$0xff]   ;;  %v8545_v57 = vld [vmem:[%s10699_s1 + $0xc58] sm:$0xff]  }
 0x16a   :  { %v9973_v5 = vadd.f32 %v7530_v0, %v5510_v63  ;;  %7823 = vmatpush3.bf16.msra.mxu1 %v8503_v54  ;;  %v8546_v58 = vld [vmem:[%s10699_s1 + $0xcd8] sm:$0xff]   ;;  %v8551_v63 = vld [vmem:[%s10699_s1 + $0xc10] sm:$0xff]   ;;  %v8554_v2 = vld [vmem:[%s10699_s1 + $0xcc8] sm:$0xff]  }
 0x16b   :  { %v7532_v7 = vpop.f32.mrf.mxu1  ;;  %7824 = vmatprep.subr.bf16.mxu1 %v8505_v59  ;;  %v8547_v59 = vld [vmem:[%s10699_s1 + $0xc18] sm:$0xff]   ;;  %v8552_v0 = vld [vmem:[%s10699_s1 + $0xc90] sm:$0xff]   ;;  %v8555_v3 = vld [vmem:[%s10699_s1 + $0xc08] sm:$0xff]  }
 0x16c   :  { %7803 = vmatpush3.bf16.msra.mxu0 %v8506_v62  ;;  %v8548_v60 = vld [vmem:[%s10699_s1 + $0xc98] sm:$0xff]   ;;  %v8550_v62 = vld [vmem:[%s10699_s1 + $0xcd0] sm:$0xff]  }
 0x16d   :  { %7804 = vmatprep.subr.bf16.mxu0 %v8508_v4  ;;  %v22_v4 = vld [vmem:[%s10698_s0 + $0x30] sm:$0xff] }
 0x16e   :  { %7825 = vmatpush3.bf16.msra.mxu1 %v8507_v1  ;;  %v8553_v1 = vld [vmem:[%s10699_s1 + $0xc48] sm:$0xff]   ;;  %v1480_v7 = vcombine.high %v22_v4, %v22_v4 }
 0x16f   :  { %7826 = vmatprep.subr.bf16.mxu1 %v8509_v6  ;;  %v1487_v6 = vrot.slane %v22_v4, %v8887_v41  ;;  %v8595_v4 = vld [vmem:[%s10699_s1 + $0xef8] sm:$0xff]  }
 0x170   :  { %7805 = vmatpush3.bf16.msra.mxu0 %v8510_v8  ;;  %v8557_v8 = vld [vmem:[%s10699_s1 + $0xc40] sm:$0xff]  }
 0x171   :  { %7806 = vmatprep.subr.bf16.mxu0 %v8512_v10  ;;  %v1495_v10 = vcombine.high %v1487_v6, %v1487_v6 }
 0x172   :  { %7827 = vmatpush3.bf16.msra.mxu1 %v8511_v9  ;;  %v8558_v9 = vld [vmem:[%s10699_s1 + $0xcc0] sm:$0xff]  }
 0x173   :  { %7828 = vmatprep.subr.bf16.mxu1 %v8513_v11  ;;  %v10132_v11 = vrot.slane %v1480_v7, %v8887_v41 }
 0x174   :  { %7807 = vmatpush3.bf16.msra.mxu0 %v8514_v12  ;;  %v8559_v12 = vld [vmem:[%s10699_s1 + $0xc00] sm:$0xff]  }
 0x175   :  { %7808 = vmatprep.subr.bf16.mxu0 %v8516_v14  ;;  %v1517_v14 = vrot.slane %v1495_v10, %v8887_v41 }
 0x176   :  { %7829 = vmatpush3.bf16.msra.mxu1 %v8515_v13  ;;  %v8560_v13 = vld [vmem:[%s10699_s1 + $0xc80] sm:$0xff]  }
 0x177   :  { %7830 = vmatprep.subr.bf16.mxu1 %v8517_v15  ;;  %v1496_v15 = vcombine.high %v10132_v11, %v10132_v11 }
 0x178   :  { %7809 = vmatpush3.bf16.msra.mxu0 %v8518_v16  ;;  %v1503_v16 = vrot.slane %v1487_v6, %v8887_v41  ;;  %v8597_v6 = vld [vmem:[%s10699_s1 + $0xeb8] sm:$0xff]  }
 0x179   :  { %7810 = vmatprep.subr.bf16.mxu0 %v8520_v18  ;;  %v1527_v18 = vcombine.high %v1517_v14, %v1517_v14 }
 0x17a   :  { %7831 = vmatpush3.bf16.msra.mxu1 %v8519_v17  ;;  %v8561_v17 = vld [vmem:[%s10699_s1 + $0xd78] sm:$0xff]  }
 0x17b   :  { %7832 = vmatprep.subr.bf16.mxu1 %v8521_v19  ;;  %v8562_v19 = vld [vmem:[%s10699_s1 + $0xdf8] sm:$0xff]  }
 0x17c   :  { %7811 = vmatpush3.bf16.msra.mxu0 %v8522_v20  ;;  %v1524_v20 = vrot.slane %v1496_v15, %v8887_v41  ;;  %v8602_v15 = vld [vmem:[%s10699_s1 + $0xe68] sm:$0xff]  }
 0x17d   :  { %7812 = vmatprep.subr.bf16.mxu0 %v8524_v22  ;;  %v8564_v22 = vld [vmem:[%s10699_s1 + $0xdb8] sm:$0xff]  }
 0x17e   :  { %7833 = vmatpush3.bf16.msra.mxu1 %v8523_v21  ;;  %v8563_v21 = vld [vmem:[%s10699_s1 + $0xd38] sm:$0xff]  }
 0x17f   :  { %7834 = vmatprep.subr.bf16.mxu1 %v8525_v23  ;;  %v1525_v23 = vcombine.high %v1503_v16, %v1503_v16 }
 0x180   :  { %7813 = vmatpush3.bf16.msra.mxu0 %v8526_v24  ;;  %v8565_v24 = vld [vmem:[%s10699_s1 + $0xd70] sm:$0xff]  }
 0x181   :  { %7842 = vmatprep.subr.bf16.mxu0 %v8529_v27 }
 0x182   :  { %7835 = vmatpush3.bf16.msra.mxu1 %v8527_v25  ;;  %v8566_v25 = vld [vmem:[%s10699_s1 + $0xdf0] sm:$0xff]  }
 0x183   :  { %v7550_v34 = vpop.f32.mrf.mxu0  ;;  %6068 = vmatmul.mubr.bf16.vlgmr.msra.gmra.mxu0 %v1461_v26  ;;  %7864 = vmatprep.subr.bf16.mxu1 %v8530_v28  ;;  %v1528_v26 = vcombine.high %v1524_v20, %v1524_v20  ;;  %v8567_v28 = vld [vmem:[%s10699_s1 + $0xd30] sm:$0xff]  }
 0x184   :  { %7843 = vmatpush3.bf16.msra.mxu0 %v8531_v29  ;;  %6147 = vmatprep.mubr.bf16.mxu0 %v1517_v14  ;;  %v8568_v29 = vld [vmem:[%s10699_s1 + $0xdb0] sm:$0xff]  }
 0x185   :  { %v7572_v37 = vpop.f32.mrf.mxu1  ;;  %6108 = vmatmul.mubr.bf16.vlgmr.msra.gmra.mxu1 %v1477_v31  ;;  %v7551_v38 = vpop.f32.mrf.mxu0  ;;  %7844 = vmatprep.subr.bf16.mxu0 %v8533_v32  ;;  %v8569_v32 = vld [vmem:[%s10699_s1 + $0xd68] sm:$0xff]  }
 0x186   :  { %7865 = vmatpush3.bf16.msra.mxu1 %v8532_v30  ;;  %v7552_v40 = vadd.f32 %v7551_v38, %v7550_v34  ;;  %6187 = vmatprep.mubr.bf16.mxu1 %v1527_v18  ;;  %v8570_v34 = vld [vmem:[%s10699_s1 + $0xde8] sm:$0xff]  }
 0x187   :  { %v7573_v43 = vpop.f32.mrf.mxu1  ;;  %v7553_v44 = vpop.f32.mrf.mxu0  ;;  %7866 = vmatprep.subr.bf16.mxu1 %v8534_v33 }
 0x188   :  { %v5590_v46 = vadd.f32 %v7552_v40, %v9973_v5  ;;  %v7574_v47 = vadd.f32 %v7573_v43, %v7572_v37  ;;  %7845 = vmatpush3.bf16.msra.mxu0 %v8535_v35  ;;  %v8556_v5 = vld [vmem:[%s10699_s1 + $0xc88] sm:$0xff]   ;;  %v8573_v44 = vld [vmem:[%s10699_s1 + $0xd60] sm:$0xff]  }
 0x189   :  { %v7575_v49 = vpop.f32.mrf.mxu1  ;;  %v7554_v50 = vpop.f32.mrf.mxu0  ;;  %7846 = vmatprep.subr.bf16.mxu0 %v8537_v39  ;;  %v8571_v37 = vld [vmem:[%s10699_s1 + $0xd28] sm:$0xff]  }
 0x18a   :  { %v10074_v52 = vadd.f32 %v7574_v47, %v5590_v46  ;;  %7867 = vmatpush3.bf16.msra.mxu1 %v8536_v36  ;;  %v8572_v40 = vld [vmem:[%s10699_s1 + $0xda8] sm:$0xff]   ;;  %v8574_v46 = vld [vmem:[%s10699_s1 + $0xde0] sm:$0xff]   ;;  %v8577_v50 = vld [vmem:[%s10699_s1 + $0xd58] sm:$0xff]  }
 0x18b   :  { %v7576_v54 = vpop.f32.mrf.mxu1  ;;  %7868 = vmatprep.subr.bf16.mxu1 %v8538_v42  ;;  %v8576_v49 = vld [vmem:[%s10699_s1 + $0xda0] sm:$0xff]  }
 0x18c   :  { %7847 = vmatpush3.bf16.msra.mxu0 %v8539_v45  ;;  %v8581_v54 = vld [vmem:[%s10699_s1 + $0xd50] sm:$0xff]  }
 0x18d   :  { %7848 = vmatprep.subr.bf16.mxu0 %v8541_v51  ;;  %v8578_v51 = vld [vmem:[%s10699_s1 + $0xdd8] sm:$0xff]  }
 0x18e   :  { %7869 = vmatpush3.bf16.msra.mxu1 %v8540_v48  ;;  %v8575_v48 = vld [vmem:[%s10699_s1 + $0xd20] sm:$0xff]  }
 0x18f   :  { %7870 = vmatprep.subr.bf16.mxu1 %v8542_v53  ;;  %v8580_v53 = vld [vmem:[%s10699_s1 + $0xd98] sm:$0xff]  }
 0x190   :  { %7849 = vmatpush3.bf16.msra.mxu0 %v8543_v55  ;;  %v8582_v55 = vld [vmem:[%s10699_s1 + $0xdd0] sm:$0xff]  }
 0x191   :  { %7850 = vmatprep.subr.bf16.mxu0 %v8545_v57  ;;  %v8584_v57 = vld [vmem:[%s10699_s1 + $0xd90] sm:$0xff]  }
 0x192   :  { %7871 = vmatpush3.bf16.msra.mxu1 %v8544_v56  ;;  %v8583_v56 = vld [vmem:[%s10699_s1 + $0xd10] sm:$0xff]  }
 0x193   :  { %7872 = vmatprep.subr.bf16.mxu1 %v8546_v58  ;;  %v8585_v58 = vld [vmem:[%s10699_s1 + $0xd48] sm:$0xff]  }
 0x194   :  { %7851 = vmatpush3.bf16.msra.mxu0 %v8547_v59  ;;  %v8586_v59 = vld [vmem:[%s10699_s1 + $0xdc8] sm:$0xff]  }
 0x195   :  { %7852 = vmatprep.subr.bf16.mxu0 %v8549_v61  ;;  %v8588_v61 = vld [vmem:[%s10699_s1 + $0xd88] sm:$0xff]  }
 0x196   :  { %7873 = vmatpush3.bf16.msra.mxu1 %v8548_v60  ;;  %v8587_v60 = vld [vmem:[%s10699_s1 + $0xd08] sm:$0xff]  }
 0x197   :  { %7874 = vmatprep.subr.bf16.mxu1 %v8550_v62  ;;  %v8589_v62 = vld [vmem:[%s10699_s1 + $0xd40] sm:$0xff]  }
 0x198   :  { %7853 = vmatpush3.bf16.msra.mxu0 %v8551_v63  ;;  %v8590_v63 = vld [vmem:[%s10699_s1 + $0xdc0] sm:$0xff]  }
 0x199   :  { %7854 = vmatprep.subr.bf16.mxu0 %v8553_v1  ;;  %v8592_v1 = vld [vmem:[%s10699_s1 + $0xd80] sm:$0xff]  }
 0x19a   :  { %7875 = vmatpush3.bf16.msra.mxu1 %v8552_v0  ;;  %v8591_v0 = vld [vmem:[%s10699_s1 + $0xd00] sm:$0xff]  }
 0x19b   :  { %7876 = vmatprep.subr.bf16.mxu1 %v8554_v2  ;;  %v1510_v2 = vrot.slane %v10132_v11, %v8887_v41  ;;  %v8600_v11 = vld [vmem:[%s10699_s1 + $0xe30] sm:$0xff]  }
 0x19c   :  { %7855 = vmatpush3.bf16.msra.mxu0 %v8555_v3  ;;  %v8594_v3 = vld [vmem:[%s10699_s1 + $0xe78] sm:$0xff]  }
 0x19d   :  { %7856 = vmatprep.subr.bf16.mxu0 %v8557_v8  ;;  %v1526_v7 = vcombine.high %v1510_v2, %v1510_v2  ;;  %v8598_v8 = vld [vmem:[%s10699_s1 + $0xe70] sm:$0xff]  }
 0x19e   :  { %7877 = vmatpush3.bf16.msra.mxu1 %v8556_v5  ;;  %v8596_v5 = vld [vmem:[%s10699_s1 + $0xe38] sm:$0xff]  }
 0x19f   :  { %7878 = vmatprep.subr.bf16.mxu1 %v8558_v9  ;;  %v8599_v9 = vld [vmem:[%s10699_s1 + $0xef0] sm:$0xff]  }
 0x1a0   :  { %7857 = vmatpush3.bf16.msra.mxu0 %v8559_v12  ;;  %v8601_v12 = vld [vmem:[%s10699_s1 + $0xeb0] sm:$0xff]  }
 0x1a1   :  { %7886 = vmatprep.subr.bf16.mxu0 %v8561_v17  ;;  %v8603_v17 = vld [vmem:[%s10699_s1 + $0xee8] sm:$0xff]  }
 0x1a2   :  { %7879 = vmatpush3.bf16.msra.mxu1 %v8560_v13 }
 0x1a3   :  { %v7594_v27 = vpop.f32.mrf.mxu0  ;;  %6148 = vmatmul.mubr.bf16.vlgmr.msra.gmra.mxu0 %v1503_v16  ;;  %7908 = vmatprep.subr.bf16.mxu1 %v8562_v19 }
 0x1a4   :  { %7887 = vmatpush3.bf16.msra.mxu0 %v8563_v21  ;;  %6227 = vmatprep.mubr.bf16.mxu0 %v1524_v20  ;;  %v8604_v20 = vld [vmem:[%s10699_s1 + $0xe28] sm:$0xff]  }
 0x1a5   :  { %v7616_v30 = vpop.f32.mrf.mxu1  ;;  %6188 = vmatmul.mubr.bf16.vlgmr.msra.gmra.mxu1 %v1525_v23  ;;  %v7595_v31 = vpop.f32.mrf.mxu0  ;;  %7888 = vmatprep.subr.bf16.mxu0 %v8565_v24  ;;  %v8605_v23 = vld [vmem:[%s10699_s1 + $0xea8] sm:$0xff]  }
 0x1a6   :  { %7909 = vmatpush3.bf16.msra.mxu1 %v8564_v22  ;;  %v7596_v33 = vadd.f32 %v7595_v31, %v7594_v27  ;;  %6267 = vmatprep.mubr.bf16.mxu1 %v1528_v26  ;;  %v8606_v26 = vld [vmem:[%s10699_s1 + $0xe60] sm:$0xff]  }
 0x1a7   :  { %v7617_v35 = vpop.f32.mrf.mxu1  ;;  %v7597_v36 = vpop.f32.mrf.mxu0  ;;  %7910 = vmatprep.subr.bf16.mxu1 %v8566_v25  ;;  %v8609_v31 = vld [vmem:[%s10699_s1 + $0xea0] sm:$0xff]  }
 0x1a8   :  { %v5670_v38 = vadd.f32 %v7596_v33, %v10074_v52  ;;  %v7618_v39 = vadd.f32 %v7617_v35, %v7616_v30  ;;  %7889 = vmatpush3.bf16.msra.mxu0 %v8567_v28  ;;  %v8579_v52 = vld [vmem:[%s10699_s1 + $0xd18] sm:$0xff]   ;;  %v8607_v28 = vld [vmem:[%s10699_s1 + $0xee0] sm:$0xff]   ;;  %v8614_v36 = vld [vmem:[%s10699_s1 + $0xe50] sm:$0xff]  }
 0x1a9   :  { %v7619_v42 = vpop.f32.mrf.mxu1  ;;  %v7598_v43 = vpop.f32.mrf.mxu0  ;;  %7890 = vmatprep.subr.bf16.mxu0 %v8569_v32  ;;  %v8608_v30 = vld [vmem:[%s10699_s1 + $0xe20] sm:$0xff]   ;;  %v8610_v32 = vld [vmem:[%s10699_s1 + $0xe58] sm:$0xff]  }
 0x1aa   :  { %v10185_v45 = vadd.f32 %v7618_v39, %v5670_v38  ;;  %7911 = vmatpush3.bf16.msra.mxu1 %v8568_v29  ;;  %v8611_v33 = vld [vmem:[%s10699_s1 + $0xed8] sm:$0xff]   ;;  %v8616_v38 = vld [vmem:[%s10699_s1 + $0xe10] sm:$0xff]   ;;  %v8619_v42 = vld [vmem:[%s10699_s1 + $0xec8] sm:$0xff]  }
 0x1ab   :  { %v7620_v47 = vpop.f32.mrf.mxu1  ;;  %7912 = vmatprep.subr.bf16.mxu1 %v8570_v34  ;;  %v8612_v34 = vld [vmem:[%s10699_s1 + $0xe18] sm:$0xff]   ;;  %v8617_v39 = vld [vmem:[%s10699_s1 + $0xe90] sm:$0xff]   ;;  %v8620_v43 = vld [vmem:[%s10699_s1 + $0xe08] sm:$0xff]  }
 0x1ac   :  { %7891 = vmatpush3.bf16.msra.mxu0 %v8571_v37  ;;  %v8613_v35 = vld [vmem:[%s10699_s1 + $0xe98] sm:$0xff]   ;;  %v8615_v37 = vld [vmem:[%s10699_s1 + $0xed0] sm:$0xff]  }
 0x1ad   :  { %7892 = vmatprep.subr.bf16.mxu0 %v8573_v44  ;;  %v23_v44 = vld [vmem:[%s10698_s0 + $0x38] sm:$0xff] }
 0x1ae   :  { %7913 = vmatpush3.bf16.msra.mxu1 %v8572_v40  ;;  %v8618_v40 = vld [vmem:[%s10699_s1 + $0xe48] sm:$0xff]   ;;  %v1529_v47 = vcombine.high %v23_v44, %v23_v44 }
 0x1af   :  { %7914 = vmatprep.subr.bf16.mxu1 %v8574_v46  ;;  %v1536_v46 = vrot.slane %v23_v44, %v8887_v41  ;;  %v8660_v44 = vld [vmem:[%s10699_s1 + $0x10f8] sm:$0xff]  }
 0x1b0   :  { %7893 = vmatpush3.bf16.msra.mxu0 %v8575_v48  ;;  %v8622_v48 = vld [vmem:[%s10699_s1 + $0xe40] sm:$0xff]  }
 0x1b1   :  { %7894 = vmatprep.subr.bf16.mxu0 %v8577_v50  ;;  %v1544_v50 = vcombine.high %v1536_v46, %v1536_v46 }
 0x1b2   :  { %7915 = vmatpush3.bf16.msra.mxu1 %v8576_v49  ;;  %v8623_v49 = vld [vmem:[%s10699_s1 + $0xec0] sm:$0xff]  }
 0x1b3   :  { %7916 = vmatprep.subr.bf16.mxu1 %v8578_v51  ;;  %v10344_v51 = vrot.slane %v1529_v47, %v8887_v41 }
 0x1b4   :  { %7895 = vmatpush3.bf16.msra.mxu0 %v8579_v52  ;;  %v8624_v52 = vld [vmem:[%s10699_s1 + $0xe00] sm:$0xff]  }
 0x1b5   :  { %7896 = vmatprep.subr.bf16.mxu0 %v8581_v54  ;;  %v1566_v54 = vrot.slane %v1544_v50, %v8887_v41 }
 0x1b6   :  { %7917 = vmatpush3.bf16.msra.mxu1 %v8580_v53  ;;  %v8625_v53 = vld [vmem:[%s10699_s1 + $0xe80] sm:$0xff]  }
 0x1b7   :  { %7918 = vmatprep.subr.bf16.mxu1 %v8582_v55  ;;  %v1545_v55 = vcombine.high %v10344_v51, %v10344_v51 }
 0x1b8   :  { %7897 = vmatpush3.bf16.msra.mxu0 %v8583_v56  ;;  %v1552_v56 = vrot.slane %v1536_v46, %v8887_v41  ;;  %v8662_v46 = vld [vmem:[%s10699_s1 + $0x10b8] sm:$0xff]  }
 0x1b9   :  { %7898 = vmatprep.subr.bf16.mxu0 %v8585_v58  ;;  %v1576_v58 = vcombine.high %v1566_v54, %v1566_v54 }
 0x1ba   :  { %7919 = vmatpush3.bf16.msra.mxu1 %v8584_v57  ;;  %v8626_v57 = vld [vmem:[%s10699_s1 + $0xf78] sm:$0xff]  }
 0x1bb   :  { %7920 = vmatprep.subr.bf16.mxu1 %v8586_v59  ;;  %v8627_v59 = vld [vmem:[%s10699_s1 + $0xff8] sm:$0xff]  }
 0x1bc   :  { %7899 = vmatpush3.bf16.msra.mxu0 %v8587_v60  ;;  %v1573_v60 = vrot.slane %v1545_v55, %v8887_v41  ;;  %v8667_v55 = vld [vmem:[%s10699_s1 + $0x1068] sm:$0xff]  }
 0x1bd   :  { %7900 = vmatprep.subr.bf16.mxu0 %v8589_v62  ;;  %v8629_v62 = vld [vmem:[%s10699_s1 + $0xfb8] sm:$0xff]  }
 0x1be   :  { %7921 = vmatpush3.bf16.msra.mxu1 %v8588_v61  ;;  %v8628_v61 = vld [vmem:[%s10699_s1 + $0xf38] sm:$0xff]  }
 0x1bf   :  { %7922 = vmatprep.subr.bf16.mxu1 %v8590_v63  ;;  %v1574_v63 = vcombine.high %v1552_v56, %v1552_v56 }
 0x1c0   :  { %7901 = vmatpush3.bf16.msra.mxu0 %v8591_v0  ;;  %v8630_v0 = vld [vmem:[%s10699_s1 + $0xf70] sm:$0xff]  }
 0x1c1   :  { %7930 = vmatprep.subr.bf16.mxu0 %v8594_v3 }
 0x1c2   :  { %7923 = vmatpush3.bf16.msra.mxu1 %v8592_v1  ;;  %v8631_v1 = vld [vmem:[%s10699_s1 + $0xff0] sm:$0xff]  }
 0x1c3   :  { %v7638_v10 = vpop.f32.mrf.mxu0  ;;  %6228 = vmatmul.mubr.bf16.vlgmr.msra.gmra.mxu0 %v1510_v2  ;;  %7952 = vmatprep.subr.bf16.mxu1 %v8595_v4  ;;  %v1577_v2 = vcombine.high %v1573_v60, %v1573_v60  ;;  %v8632_v4 = vld [vmem:[%s10699_s1 + $0xf30] sm:$0xff]  }
 0x1c4   :  { %7931 = vmatpush3.bf16.msra.mxu0 %v8596_v5  ;;  %6307 = vmatprep.mubr.bf16.mxu0 %v1566_v54  ;;  %v8633_v5 = vld [vmem:[%s10699_s1 + $0xfb0] sm:$0xff]  }
 0x1c5   :  { %v7660_v13 = vpop.f32.mrf.mxu1  ;;  %6268 = vmatmul.mubr.bf16.vlgmr.msra.gmra.mxu1 %v1526_v7  ;;  %v7639_v14 = vpop.f32.mrf.mxu0  ;;  %7932 = vmatprep.subr.bf16.mxu0 %v8598_v8  ;;  %v8634_v8 = vld [vmem:[%s10699_s1 + $0xf68] sm:$0xff]  }
 0x1c6   :  { %7953 = vmatpush3.bf16.msra.mxu1 %v8597_v6  ;;  %v7640_v16 = vadd.f32 %v7639_v14, %v7638_v10  ;;  %6347 = vmatprep.mubr.bf16.mxu1 %v1576_v58  ;;  %v8635_v10 = vld [vmem:[%s10699_s1 + $0xfe8] sm:$0xff]  }
 0x1c7   :  { %v7661_v18 = vpop.f32.mrf.mxu1  ;;  %v7641_v19 = vpop.f32.mrf.mxu0  ;;  %7954 = vmatprep.subr.bf16.mxu1 %v8599_v9 }
 0x1c8   :  { %v5750_v21 = vadd.f32 %v7640_v16, %v10185_v45  ;;  %v7662_v22 = vadd.f32 %v7661_v18, %v7660_v13  ;;  %7933 = vmatpush3.bf16.msra.mxu0 %v8600_v11  ;;  %v8621_v45 = vld [vmem:[%s10699_s1 + $0xe88] sm:$0xff]   ;;  %v8638_v19 = vld [vmem:[%s10699_s1 + $0xf60] sm:$0xff]  }
 0x1c9   :  { %v7663_v24 = vpop.f32.mrf.mxu1  ;;  %v7642_v25 = vpop.f32.mrf.mxu0  ;;  %7934 = vmatprep.subr.bf16.mxu0 %v8602_v15  ;;  %v8636_v13 = vld [vmem:[%s10699_s1 + $0xf28] sm:$0xff]  }
 0x1ca   :  { %v10286_v27 = vadd.f32 %v7662_v22, %v5750_v21  ;;  %7955 = vmatpush3.bf16.msra.mxu1 %v8601_v12  ;;  %v8637_v16 = vld [vmem:[%s10699_s1 + $0xfa8] sm:$0xff]   ;;  %v8639_v21 = vld [vmem:[%s10699_s1 + $0xfe0] sm:$0xff]   ;;  %v8642_v25 = vld [vmem:[%s10699_s1 + $0xf58] sm:$0xff]  }
 0x1cb   :  { %v7664_v29 = vpop.f32.mrf.mxu1  ;;  %7956 = vmatprep.subr.bf16.mxu1 %v8603_v17  ;;  %v8641_v24 = vld [vmem:[%s10699_s1 + $0xfa0] sm:$0xff]  }
 0x1cc   :  { %7935 = vmatpush3.bf16.msra.mxu0 %v8604_v20  ;;  %v8646_v29 = vld [vmem:[%s10699_s1 + $0xf50] sm:$0xff]  }
 0x1cd   :  { %7936 = vmatprep.subr.bf16.mxu0 %v8606_v26  ;;  %v8643_v26 = vld [vmem:[%s10699_s1 + $0xfd8] sm:$0xff]  }
 0x1ce   :  { %7957 = vmatpush3.bf16.msra.mxu1 %v8605_v23  ;;  %v8640_v23 = vld [vmem:[%s10699_s1 + $0xf20] sm:$0xff]  }
 0x1cf   :  { %7958 = vmatprep.subr.bf16.mxu1 %v8607_v28  ;;  %v8645_v28 = vld [vmem:[%s10699_s1 + $0xf98] sm:$0xff]  }
 0x1d0   :  { %7937 = vmatpush3.bf16.msra.mxu0 %v8608_v30  ;;  %v8647_v30 = vld [vmem:[%s10699_s1 + $0xfd0] sm:$0xff]  }
 0x1d1   :  { %7938 = vmatprep.subr.bf16.mxu0 %v8610_v32  ;;  %v8649_v32 = vld [vmem:[%s10699_s1 + $0xf90] sm:$0xff]  }
 0x1d2   :  { %7959 = vmatpush3.bf16.msra.mxu1 %v8609_v31  ;;  %v8648_v31 = vld [vmem:[%s10699_s1 + $0xf10] sm:$0xff]  }
 0x1d3   :  { %7960 = vmatprep.subr.bf16.mxu1 %v8611_v33  ;;  %v8650_v33 = vld [vmem:[%s10699_s1 + $0xf48] sm:$0xff]  }
 0x1d4   :  { %7939 = vmatpush3.bf16.msra.mxu0 %v8612_v34  ;;  %v8651_v34 = vld [vmem:[%s10699_s1 + $0xfc8] sm:$0xff]  }
 0x1d5   :  { %7940 = vmatprep.subr.bf16.mxu0 %v8614_v36  ;;  %v8653_v36 = vld [vmem:[%s10699_s1 + $0xf88] sm:$0xff]  }
 0x1d6   :  { %7961 = vmatpush3.bf16.msra.mxu1 %v8613_v35  ;;  %v8652_v35 = vld [vmem:[%s10699_s1 + $0xf08] sm:$0xff]  }
 0x1d7   :  { %7962 = vmatprep.subr.bf16.mxu1 %v8615_v37  ;;  %v8654_v37 = vld [vmem:[%s10699_s1 + $0xf40] sm:$0xff]  }
 0x1d8   :  { %7941 = vmatpush3.bf16.msra.mxu0 %v8616_v38  ;;  %v8655_v38 = vld [vmem:[%s10699_s1 + $0xfc0] sm:$0xff]  }
 0x1d9   :  { %7942 = vmatprep.subr.bf16.mxu0 %v8618_v40  ;;  %v8657_v40 = vld [vmem:[%s10699_s1 + $0xf80] sm:$0xff]  }
 0x1da   :  { %7963 = vmatpush3.bf16.msra.mxu1 %v8617_v39  ;;  %v8656_v39 = vld [vmem:[%s10699_s1 + $0xf00] sm:$0xff]  }
 0x1db   :  { %7964 = vmatprep.subr.bf16.mxu1 %v8619_v42  ;;  %v1559_v42 = vrot.slane %v10344_v51, %v8887_v41  ;;  %v8665_v51 = vld [vmem:[%s10699_s1 + $0x1030] sm:$0xff]  }
 0x1dc   :  { %7943 = vmatpush3.bf16.msra.mxu0 %v8620_v43  ;;  %v8659_v43 = vld [vmem:[%s10699_s1 + $0x1078] sm:$0xff]  }
 0x1dd   :  { %7944 = vmatprep.subr.bf16.mxu0 %v8622_v48  ;;  %v1575_v47 = vcombine.high %v1559_v42, %v1559_v42  ;;  %v8663_v48 = vld [vmem:[%s10699_s1 + $0x1070] sm:$0xff]  }
 0x1de   :  { %7965 = vmatpush3.bf16.msra.mxu1 %v8621_v45  ;;  %v8661_v45 = vld [vmem:[%s10699_s1 + $0x1038] sm:$0xff]  }
 0x1df   :  { %7966 = vmatprep.subr.bf16.mxu1 %v8623_v49  ;;  %v8664_v49 = vld [vmem:[%s10699_s1 + $0x10f0] sm:$0xff]  }
 0x1e0   :  { %7945 = vmatpush3.bf16.msra.mxu0 %v8624_v52  ;;  %v8666_v52 = vld [vmem:[%s10699_s1 + $0x10b0] sm:$0xff]  }
 0x1e1   :  { %7974 = vmatprep.subr.bf16.mxu0 %v8626_v57  ;;  %v8668_v57 = vld [vmem:[%s10699_s1 + $0x10e8] sm:$0xff]  }
 0x1e2   :  { %7967 = vmatpush3.bf16.msra.mxu1 %v8625_v53 }
 0x1e3   :  { %v7682_v3 = vpop.f32.mrf.mxu0  ;;  %6308 = vmatmul.mubr.bf16.vlgmr.msra.gmra.mxu0 %v1552_v56  ;;  %7996 = vmatprep.subr.bf16.mxu1 %v8627_v59 }
 0x1e4   :  { %7975 = vmatpush3.bf16.msra.mxu0 %v8628_v61  ;;  %6387 = vmatprep.mubr.bf16.mxu0 %v1573_v60  ;;  %v8669_v60 = vld [vmem:[%s10699_s1 + $0x1028] sm:$0xff]  }
 0x1e5   :  { %v7704_v6 = vpop.f32.mrf.mxu1  ;;  %6348 = vmatmul.mubr.bf16.vlgmr.msra.gmra.mxu1 %v1574_v63  ;;  %v7683_v7 = vpop.f32.mrf.mxu0  ;;  %7976 = vmatprep.subr.bf16.mxu0 %v8630_v0  ;;  %v8670_v63 = vld [vmem:[%s10699_s1 + $0x10a8] sm:$0xff]  }
 0x1e6   :  { %7997 = vmatpush3.bf16.msra.mxu1 %v8629_v62  ;;  %v7684_v9 = vadd.f32 %v7683_v7, %v7682_v3  ;;  %6427 = vmatprep.mubr.bf16.mxu1 %v1577_v2  ;;  %v8671_v2 = vld [vmem:[%s10699_s1 + $0x1060] sm:$0xff]  }
 0x1e7   :  { %v7705_v11 = vpop.f32.mrf.mxu1  ;;  %v7685_v12 = vpop.f32.mrf.mxu0  ;;  %7998 = vmatprep.subr.bf16.mxu1 %v8631_v1  ;;  %v8674_v7 = vld [vmem:[%s10699_s1 + $0x10a0] sm:$0xff]  }
 0x1e8   :  { %v5830_v14 = vadd.f32 %v7684_v9, %v10286_v27  ;;  %v7706_v15 = vadd.f32 %v7705_v11, %v7704_v6  ;;  %7977 = vmatpush3.bf16.msra.mxu0 %v8632_v4  ;;  %v8644_v27 = vld [vmem:[%s10699_s1 + $0xf18] sm:$0xff]   ;;  %v8672_v4 = vld [vmem:[%s10699_s1 + $0x10e0] sm:$0xff]   ;;  %v8679_v12 = vld [vmem:[%s10699_s1 + $0x1050] sm:$0xff]  }
 0x1e9   :  { %v7707_v17 = vpop.f32.mrf.mxu1  ;;  %v7686_v18 = vpop.f32.mrf.mxu0  ;;  %7978 = vmatprep.subr.bf16.mxu0 %v8634_v8  ;;  %v8673_v6 = vld [vmem:[%s10699_s1 + $0x1020] sm:$0xff]   ;;  %v8675_v8 = vld [vmem:[%s10699_s1 + $0x1058] sm:$0xff]  }
 0x1ea   :  { %v10397_v20 = vadd.f32 %v7706_v15, %v5830_v14  ;;  %7999 = vmatpush3.bf16.msra.mxu1 %v8633_v5  ;;  %v8676_v9 = vld [vmem:[%s10699_s1 + $0x10d8] sm:$0xff]   ;;  %v8681_v14 = vld [vmem:[%s10699_s1 + $0x1010] sm:$0xff]   ;;  %v8684_v17 = vld [vmem:[%s10699_s1 + $0x10c8] sm:$0xff]  }
 0x1eb   :  { %v7708_v22 = vpop.f32.mrf.mxu1  ;;  %8000 = vmatprep.subr.bf16.mxu1 %v8635_v10  ;;  %v8677_v10 = vld [vmem:[%s10699_s1 + $0x1018] sm:$0xff]   ;;  %v8682_v15 = vld [vmem:[%s10699_s1 + $0x1090] sm:$0xff]   ;;  %v8685_v18 = vld [vmem:[%s10699_s1 + $0x1008] sm:$0xff]  }
 0x1ec   :  { %7979 = vmatpush3.bf16.msra.mxu0 %v8636_v13  ;;  %v8678_v11 = vld [vmem:[%s10699_s1 + $0x1098] sm:$0xff]   ;;  %v8680_v13 = vld [vmem:[%s10699_s1 + $0x10d0] sm:$0xff]  }
 0x1ed   :  { %7980 = vmatprep.subr.bf16.mxu0 %v8638_v19  ;;  %v24_v19 = vld [vmem:[%s10698_s0 + $0x40] sm:$0xff] }
 0x1ee   :  { %8001 = vmatpush3.bf16.msra.mxu1 %v8637_v16  ;;  %v8683_v16 = vld [vmem:[%s10699_s1 + $0x1048] sm:$0xff]   ;;  %v1578_v22 = vcombine.high %v24_v19, %v24_v19 }
 0x1ef   :  { %8002 = vmatprep.subr.bf16.mxu1 %v8639_v21  ;;  %v1585_v21 = vrot.slane %v24_v19, %v8887_v41 }
 0x1f0   :  { %7981 = vmatpush3.bf16.msra.mxu0 %v8640_v23  ;;  %v8687_v23 = vld [vmem:[%s10699_s1 + $0x1040] sm:$0xff]  }
 0x1f1   :  { %7982 = vmatprep.subr.bf16.mxu0 %v8642_v25  ;;  %v1593_v25 = vcombine.high %v1585_v21, %v1585_v21 }
 0x1f2   :  { %8003 = vmatpush3.bf16.msra.mxu1 %v8641_v24  ;;  %v8688_v24 = vld [vmem:[%s10699_s1 + $0x10c0] sm:$0xff]  }
 0x1f3   :  { %8004 = vmatprep.subr.bf16.mxu1 %v8643_v26  ;;  %v10556_v26 = vrot.slane %v1578_v22, %v8887_v41 }
 0x1f4   :  { %7983 = vmatpush3.bf16.msra.mxu0 %v8644_v27  ;;  %v8689_v27 = vld [vmem:[%s10699_s1 + $0x1000] sm:$0xff]  }
 0x1f5   :  { %7984 = vmatprep.subr.bf16.mxu0 %v8646_v29  ;;  %v1615_v29 = vrot.slane %v1593_v25, %v8887_v41 }
 0x1f6   :  { %8005 = vmatpush3.bf16.msra.mxu1 %v8645_v28  ;;  %v8690_v28 = vld [vmem:[%s10699_s1 + $0x1080] sm:$0xff]  }
 0x1f7   :  { %8006 = vmatprep.subr.bf16.mxu1 %v8647_v30  ;;  %v1594_v30 = vcombine.high %v10556_v26, %v10556_v26 }
 0x1f8   :  { %7985 = vmatpush3.bf16.msra.mxu0 %v8648_v31  ;;  %v1601_v31 = vrot.slane %v1585_v21, %v8887_v41 }
 0x1f9   :  { %7986 = vmatprep.subr.bf16.mxu0 %v8650_v33  ;;  %v1625_v33 = vcombine.high %v1615_v29, %v1615_v29 }
 0x1fa   :  { %8007 = vmatpush3.bf16.msra.mxu1 %v8649_v32  ;;  %v8691_v32 = vld [vmem:[%s10699_s1 + $0x1178] sm:$0xff]  }
 0x1fb   :  { %8008 = vmatprep.subr.bf16.mxu1 %v8651_v34  ;;  %v8692_v34 = vld [vmem:[%s10699_s1 + $0x11f8] sm:$0xff]  }
 0x1fc   :  { %7987 = vmatpush3.bf16.msra.mxu0 %v8652_v35  ;;  %v1622_v35 = vrot.slane %v1594_v30, %v8887_v41 }
 0x1fd   :  { %7988 = vmatprep.subr.bf16.mxu0 %v8654_v37  ;;  %v8694_v37 = vld [vmem:[%s10699_s1 + $0x11b8] sm:$0xff]  }
 0x1fe   :  { %8009 = vmatpush3.bf16.msra.mxu1 %v8653_v36  ;;  %v8693_v36 = vld [vmem:[%s10699_s1 + $0x1138] sm:$0xff]  }
 0x1ff   :  { %8010 = vmatprep.subr.bf16.mxu1 %v8655_v38  ;;  %v1623_v38 = vcombine.high %v1601_v31, %v1601_v31 }
 0x200   :  { %7989 = vmatpush3.bf16.msra.mxu0 %v8656_v39  ;;  %v8695_v39 = vld [vmem:[%s10699_s1 + $0x1170] sm:$0xff]  }
 0x201   :  { %8018 = vmatprep.subr.bf16.mxu0 %v8659_v43 }
 0x202   :  { %8011 = vmatpush3.bf16.msra.mxu1 %v8657_v40  ;;  %v8696_v40 = vld [vmem:[%s10699_s1 + $0x11f0] sm:$0xff]  }
 0x203   :  { %v7726_v50 = vpop.f32.mrf.mxu0  ;;  %6388 = vmatmul.mubr.bf16.vlgmr.msra.gmra.mxu0 %v1559_v42  ;;  %8040 = vmatprep.subr.bf16.mxu1 %v8660_v44  ;;  %v1626_v42 = vcombine.high %v1622_v35, %v1622_v35  ;;  %v8697_v44 = vld [vmem:[%s10699_s1 + $0x1130] sm:$0xff]  }
 0x204   :  { %8019 = vmatpush3.bf16.msra.mxu0 %v8661_v45  ;;  %6467 = vmatprep.mubr.bf16.mxu0 %v1615_v29  ;;  %v8698_v45 = vld [vmem:[%s10699_s1 + $0x11b0] sm:$0xff]  }
 0x205   :  { %v7748_v53 = vpop.f32.mrf.mxu1  ;;  %6428 = vmatmul.mubr.bf16.vlgmr.msra.gmra.mxu1 %v1575_v47  ;;  %v7727_v54 = vpop.f32.mrf.mxu0  ;;  %8020 = vmatprep.subr.bf16.mxu0 %v8663_v48  ;;  %v8699_v48 = vld [vmem:[%s10699_s1 + $0x1168] sm:$0xff]  }
 0x206   :  { %8041 = vmatpush3.bf16.msra.mxu1 %v8662_v46  ;;  %v7728_v56 = vadd.f32 %v7727_v54, %v7726_v50  ;;  %6507 = vmatprep.mubr.bf16.mxu1 %v1625_v33  ;;  %v8700_v50 = vld [vmem:[%s10699_s1 + $0x11e8] sm:$0xff]  }
 0x207   :  { %v7749_v58 = vpop.f32.mrf.mxu1  ;;  %v7729_v59 = vpop.f32.mrf.mxu0  ;;  %8042 = vmatprep.subr.bf16.mxu1 %v8664_v49 }
 0x208   :  { %v5910_v61 = vadd.f32 %v7728_v56, %v10397_v20  ;;  %v7750_v62 = vadd.f32 %v7749_v58, %v7748_v53  ;;  %8021 = vmatpush3.bf16.msra.mxu0 %v8665_v51  ;;  %v8686_v20 = vld [vmem:[%s10699_s1 + $0x1088] sm:$0xff]   ;;  %v8703_v59 = vld [vmem:[%s10699_s1 + $0x1160] sm:$0xff]  }
 0x209   :  { %v7751_v0 = vpop.f32.mrf.mxu1  ;;  %v7730_v1 = vpop.f32.mrf.mxu0  ;;  %8022 = vmatprep.subr.bf16.mxu0 %v8667_v55  ;;  %v8701_v53 = vld [vmem:[%s10699_s1 + $0x1128] sm:$0xff]  }
 0x20a   :  { %v10498_v3 = vadd.f32 %v7750_v62, %v5910_v61  ;;  %8043 = vmatpush3.bf16.msra.mxu1 %v8666_v52  ;;  %v8702_v56 = vld [vmem:[%s10699_s1 + $0x11a8] sm:$0xff]   ;;  %v8704_v61 = vld [vmem:[%s10699_s1 + $0x11e0] sm:$0xff]   ;;  %v8707_v1 = vld [vmem:[%s10699_s1 + $0x1158] sm:$0xff]  }
 0x20b   :  { %v7752_v5 = vpop.f32.mrf.mxu1  ;;  %8044 = vmatprep.subr.bf16.mxu1 %v8668_v57  ;;  %v8706_v0 = vld [vmem:[%s10699_s1 + $0x11a0] sm:$0xff]  }
 0x20c   :  { %8023 = vmatpush3.bf16.msra.mxu0 %v8669_v60  ;;  %v8711_v5 = vld [vmem:[%s10699_s1 + $0x1150] sm:$0xff]  }
 0x20d   :  { %8024 = vmatprep.subr.bf16.mxu0 %v8671_v2  ;;  %v8708_v2 = vld [vmem:[%s10699_s1 + $0x11d8] sm:$0xff]  }
 0x20e   :  { %8045 = vmatpush3.bf16.msra.mxu1 %v8670_v63  ;;  %v8705_v63 = vld [vmem:[%s10699_s1 + $0x1120] sm:$0xff]  }
 0x20f   :  { %8046 = vmatprep.subr.bf16.mxu1 %v8672_v4  ;;  %v8710_v4 = vld [vmem:[%s10699_s1 + $0x1198] sm:$0xff]  }
 0x210   :  { %8025 = vmatpush3.bf16.msra.mxu0 %v8673_v6  ;;  %v8712_v6 = vld [vmem:[%s10699_s1 + $0x11d0] sm:$0xff]  }
 0x211   :  { %8026 = vmatprep.subr.bf16.mxu0 %v8675_v8  ;;  %v8714_v8 = vld [vmem:[%s10699_s1 + $0x1190] sm:$0xff]  }
 0x212   :  { %8047 = vmatpush3.bf16.msra.mxu1 %v8674_v7  ;;  %v8713_v7 = vld [vmem:[%s10699_s1 + $0x1110] sm:$0xff]  }
 0x213   :  { %8048 = vmatprep.subr.bf16.mxu1 %v8676_v9  ;;  %v8715_v9 = vld [vmem:[%s10699_s1 + $0x1148] sm:$0xff]  }
 0x214   :  { %8027 = vmatpush3.bf16.msra.mxu0 %v8677_v10  ;;  %v8716_v10 = vld [vmem:[%s10699_s1 + $0x11c8] sm:$0xff]  }
 0x215   :  { %8028 = vmatprep.subr.bf16.mxu0 %v8679_v12  ;;  %v8719_v12 = vld [vmem:[%s10699_s1 + $0x1140] sm:$0xff]  }
 0x216   :  { %8049 = vmatpush3.bf16.msra.mxu1 %v8678_v11  ;;  %v8717_v11 = vld [vmem:[%s10699_s1 + $0x1108] sm:$0xff]  }
 0x217   :  { %8050 = vmatprep.subr.bf16.mxu1 %v8680_v13  ;;  %v8718_v13 = vld [vmem:[%s10699_s1 + $0x1188] sm:$0xff]  }
 0x218   :  { %8029 = vmatpush3.bf16.msra.mxu0 %v8681_v14  ;;  %v8720_v14 = vld [vmem:[%s10699_s1 + $0x11c0] sm:$0xff]  }
 0x219   :  { %8030 = vmatprep.subr.bf16.mxu0 %v8683_v16  ;;  %v1608_v16 = vrot.slane %v10556_v26, %v8887_v41 }
 0x21a   :  { %8051 = vmatpush3.bf16.msra.mxu1 %v8682_v15  ;;  %v8721_v15 = vld [vmem:[%s10699_s1 + $0x1100] sm:$0xff]  }
 0x21b   :  { %8052 = vmatprep.subr.bf16.mxu1 %v8684_v17 }
 0x21c   :  { %8031 = vmatpush3.bf16.msra.mxu0 %v8685_v18 }
 0x21d   :  { %8032 = vmatprep.subr.bf16.mxu0 %v8687_v23 }
 0x21e   :  { %8053 = vmatpush3.bf16.msra.mxu1 %v8686_v20 }
 0x21f   :  { %8054 = vmatprep.subr.bf16.mxu1 %v8688_v24 }
 0x220   :  { %8033 = vmatpush3.bf16.msra.mxu0 %v8689_v27 }
 0x221   :  { %8062 = vmatprep.subr.bf16.mxu0 %v8691_v32 }
 0x222   :  { %8055 = vmatpush3.bf16.msra.mxu1 %v8690_v28 }
 0x223   :  { %v7770_v43 = vpop.f32.mrf.mxu0  ;;  %6468 = vmatmul.mubr.bf16.vlgmr.msra.gmra.mxu0 %v1601_v31  ;;  %8084 = vmatprep.subr.bf16.mxu1 %v8692_v34 }
 0x224   :  { %8063 = vmatpush3.bf16.msra.mxu0 %v8693_v36  ;;  %6547 = vmatprep.mubr.bf16.mxu0 %v1622_v35 }
 0x225   :  { %v7792_v46 = vpop.f32.mrf.mxu1  ;;  %6508 = vmatmul.mubr.bf16.vlgmr.msra.gmra.mxu1 %v1623_v38  ;;  %v7771_v47 = vpop.f32.mrf.mxu0  ;;  %8064 = vmatprep.subr.bf16.mxu0 %v8695_v39 }
 0x226   :  { %8085 = vmatpush3.bf16.msra.mxu1 %v8694_v37  ;;  %v7772_v49 = vadd.f32 %v7771_v47, %v7770_v43  ;;  %6587 = vmatprep.mubr.bf16.mxu1 %v1626_v42 }
 0x227   :  { %v7793_v51 = vpop.f32.mrf.mxu1  ;;  %v7773_v52 = vpop.f32.mrf.mxu0  ;;  %8086 = vmatprep.subr.bf16.mxu1 %v8696_v40 }
 0x228   :  { %v5990_v54 = vadd.f32 %v7772_v49, %v10498_v3  ;;  %v7794_v55 = vadd.f32 %v7793_v51, %v7792_v46  ;;  %8065 = vmatpush3.bf16.msra.mxu0 %v8697_v44  ;;  %v8709_v3 = vld [vmem:[%s10699_s1 + $0x1118] sm:$0xff]  }
 0x229   :  { %v7795_v57 = vpop.f32.mrf.mxu1  ;;  %v7774_v58 = vpop.f32.mrf.mxu0  ;;  %8066 = vmatprep.subr.bf16.mxu0 %v8699_v48 }
 0x22a   :  { %v6030_v60 = vadd.f32 %v7794_v55, %v5990_v54  ;;  %8087 = vmatpush3.bf16.msra.mxu1 %v8698_v45 }
 0x22b   :  { %v7796_v62 = vpop.f32.mrf.mxu1  ;;  %8088 = vmatprep.subr.bf16.mxu1 %v8700_v50 }
 0x22c   :  { %8067 = vmatpush3.bf16.msra.mxu0 %v8701_v53 }
 0x22d   :  { %8068 = vmatprep.subr.bf16.mxu0 %v8703_v59 }
 0x22e   :  { %8089 = vmatpush3.bf16.msra.mxu1 %v8702_v56 }
 0x22f   :  { %8090 = vmatprep.subr.bf16.mxu1 %v8704_v61 }
 0x230   :  { %8069 = vmatpush3.bf16.msra.mxu0 %v8705_v63 }
 0x231   :  { %8070 = vmatprep.subr.bf16.mxu0 %v8707_v1 }
 0x232   :  { %8091 = vmatpush3.bf16.msra.mxu1 %v8706_v0 }
 0x233   :  { %8092 = vmatprep.subr.bf16.mxu1 %v8708_v2 }
 0x234   :  { %8071 = vmatpush3.bf16.msra.mxu0 %v8709_v3 }
 0x235   :  { %8072 = vmatprep.subr.bf16.mxu0 %v8711_v5 }
 0x236   :  { %8093 = vmatpush3.bf16.msra.mxu1 %v8710_v4 }
 0x237   :  { %8094 = vmatprep.subr.bf16.mxu1 %v8712_v6 }
 0x238   :  { %8073 = vmatpush3.bf16.msra.mxu0 %v8713_v7 }
 0x239   :  { %8074 = vmatprep.subr.bf16.mxu0 %v8715_v9 }
 0x23a   :  { %8095 = vmatpush3.bf16.msra.mxu1 %v8714_v8 }
 0x23b   :  { %8096 = vmatprep.subr.bf16.mxu1 %v8716_v10 }
 0x23c   :  { %8075 = vmatpush3.bf16.msra.mxu0 %v8717_v11 }
 0x23d   :  { %8076 = vmatprep.subr.bf16.mxu0 %v8719_v12 }
 0x23e   :  { %8 = vsyncpa [#allocation3], 0  ;;  %8097 = vmatpush3.bf16.msra.mxu1 %v8718_v13  ;;  %v8722_v17 = vld [vmem:[%s10699_s1 + $0x1180] sm:$0xff]   ;;  %v1624_v18 = vcombine.high %v1608_v16, %v1608_v16  ;;  %v8724_v43 = vld [vmem:[%s10700_s2 + $0x38] sm:$0xff]   ;;  %v8759_v44 = vmov 0.0   ;;  %vm8760_vm0 = vmmov 0  }
 0x23f   :  { %8098 = vmatprep.subr.bf16.mxu1 %v8720_v14  ;;  %v8725_v45 = vld [vmem:[%s10700_s2 + $0x30] sm:$0xff]   ;;  %v8726_v46 = vld [vmem:[%s10700_s2 + $0x28] sm:$0xff]   ;;  %v8727_v47 = vld [vmem:[%s10700_s2 + $0x20] sm:$0xff]   ;;  %vm6701_vm1 = vcmask 74752  }
 0x240   :  { %8077 = vmatpush3.bf16.msra.mxu0 %v8721_v15  ;;  %v8728_v48 = vld [vmem:[%s10700_s2 + $0x18] sm:$0xff]   ;;  %v8729_v52 = vld [vmem:[%s10700_s2 + $0x10] sm:$0xff]   ;;  %v8731_v63 = vld [vmem:[%s10700_s2] sm:$0xff]  }
 0x241   :  { %8115 = vmatprep.subr.bf16.mxu0 %v8759_v44 }
 0x242   :  { %8099 = vmatpush3.bf16.msra.mxu1 %v8722_v17 }
 0x243   :  { %v7814_v19 = vpop.f32.mrf.mxu0  ;;  %6548 = vmatmul.mubr.bf16.vlgmr.msra.gmra.mxu0 %v1608_v16 }
 0x244   :  { %8116 = vmatpush3.bf16.msra.mxu0 %v8724_v43  ;;  %8131 = vmatprep.mubr.msk.bf16.mxu0 %vm8760_vm0, %v8759_v44 }
 0x245   :  { %v7836_v20 = vpop.f32.mrf.mxu1  ;;  %6588 = vmatmul.mubr.bf16.vlgmr.msra.gmra.mxu1 %v1624_v18  ;;  %v7815_v21 = vpop.f32.mrf.mxu0  ;;  %8117 = vmatprep.subr.bf16.mxu0 %v8759_v44 }
 0x246   :  { %v7816_v22 = vadd.f32 %v7815_v21, %v7814_v19 }
 0x247   :  { %v7837_v23 = vpop.f32.mrf.mxu1  ;;  %v7817_v24 = vpop.f32.mrf.mxu0 }
 0x248   :  { %v6070_v25 = vadd.f32 %v7816_v22, %v6030_v60  ;;  %v7838_v41 = vadd.f32 %v7837_v23, %v7836_v20  ;;  %8118 = vmatpush3.bf16.msra.mxu0 %v8725_v45  ;;  %v8730_v60 = vld [vmem:[%s10700_s2 + $0x8] sm:$0xff]   ;;  %s8761_s2 = smov [#allocation2]  }
 0x249   :  { %v7839_v26 = vpop.f32.mrf.mxu1  ;;  %v7818_v27 = vpop.f32.mrf.mxu0  ;;  %8119 = vmatprep.subr.bf16.mxu0 %v8759_v44  ;;  %s6722_s6 = sshll.u32 %s8761_s2, 4  ;;  %s6723_s6 = int_to_ptr.vmem [resolvable:$true] %s6722_s6 }
 0x24a   :  { %v6110_v28 = vadd.f32 %v7838_v41, %v6070_v25  ;;  %s8736_s0 = scalar_lea.vmem %s6723_s6, 32  ;;  %p8741_p1 = scmp.lt.s32.totalorder %s6723_s6, %s6723_s6 }
 0x24b   :  { %v7840_v29 = vpop.f32.mrf.mxu1  ;;  %p8737_p0 = scmp.ne.s32.totalorder %s6723_s6, %s8736_s0  ;;  %p8742_p2 = scmp.lt.s32.totalorder %s8736_s0, %s8736_s0 }
 0x24c   :  { %8120 = vmatpush3.bf16.msra.mxu0 %v8726_v46 }
 0x24d   :  { %8121 = vmatprep.subr.bf16.mxu0 %v8759_v44  ;;  %p8743_p3 = por %p8742_p2, %p8741_p1 }
 0x24f   :  { %p8744_p4 = pnand %p8743_p3, %p8737_p0 }
 0x250   :  { %8122 = vmatpush3.bf16.msra.mxu0 %v8727_v47 }
 0x251   :  { %8123 = vmatprep.subr.bf16.mxu0 %v8759_v44 }
 0x254   :  { %8124 = vmatpush3.bf16.msra.mxu0 %v8728_v48 }
 0x255   :  { %8125 = vmatprep.subr.bf16.mxu0 %v8759_v44 }
 0x258   :  { %8126 = vmatpush3.bf16.msra.mxu0 %v8729_v52 }
 0x259   :  { %8127 = vmatprep.subr.bf16.mxu0 %v8759_v44 }
 0x25c   :  { %8128 = vmatpush3.bf16.msra.mxu0 %v8730_v60 }
 0x25d   :  { %8129 = vmatprep.subr.bf16.mxu0 %v8759_v44 }
 0x260   :  { %8130 = vmatpush3.bf16.msra.mxu0 %v8731_v63 }
 0x263   :  { %v7858_v30 = vpop.f32.mrf.mxu0 }
 0x265   :  { %v7880_v31 = vpop.f32.mrf.mxu1  ;;  %v7859_v32 = vpop.f32.mrf.mxu0 }
 0x266   :  { %v7860_v33 = vadd.f32 %v7859_v32, %v7858_v30 }
 0x267   :  { %v7881_v34 = vpop.f32.mrf.mxu1  ;;  %v7861_v35 = vpop.f32.mrf.mxu0 }
 0x268   :  { %v6150_v36 = vadd.f32 %v7860_v33, %v6110_v28  ;;  %v7882_v37 = vadd.f32 %v7881_v34, %v7880_v31 }
 0x269   :  { %v7883_v38 = vpop.f32.mrf.mxu1  ;;  %v7862_v39 = vpop.f32.mrf.mxu0 }
 0x26a   :  { %v6190_v40 = vadd.f32 %v7882_v37, %v6150_v36 }
 0x26b   :  { %v7884_v42 = vpop.f32.mrf.mxu1 }
 0x283   :  { %v7902_v49 = vpop.f32.mrf.mxu0 }
 0x285   :  { %v7924_v50 = vpop.f32.mrf.mxu1  ;;  %v7903_v51 = vpop.f32.mrf.mxu0 }
 0x286   :  { %v7904_v53 = vadd.f32 %v7903_v51, %v7902_v49 }
 0x287   :  { %v7925_v54 = vpop.f32.mrf.mxu1  ;;  %v7905_v55 = vpop.f32.mrf.mxu0 }
 0x288   :  { %v6230_v56 = vadd.f32 %v7904_v53, %v6190_v40  ;;  %v7926_v57 = vadd.f32 %v7925_v54, %v7924_v50 }
 0x289   :  { %v7927_v58 = vpop.f32.mrf.mxu1  ;;  %v7906_v59 = vpop.f32.mrf.mxu0 }
 0x28a   :  { %v6270_v61 = vadd.f32 %v7926_v57, %v6230_v56 }
 0x28b   :  { %v7928_v62 = vpop.f32.mrf.mxu1 }
 0x2a3   :  { %v7946_v0 = vpop.f32.mrf.mxu0 }
 0x2a5   :  { %v7968_v1 = vpop.f32.mrf.mxu1  ;;  %v7947_v2 = vpop.f32.mrf.mxu0 }
 0x2a6   :  { %v7948_v3 = vadd.f32 %v7947_v2, %v7946_v0 }
 0x2a7   :  { %v7969_v4 = vpop.f32.mrf.mxu1  ;;  %v7949_v5 = vpop.f32.mrf.mxu0 }
 0x2a8   :  { %v6310_v6 = vadd.f32 %v7948_v3, %v6270_v61  ;;  %v7970_v7 = vadd.f32 %v7969_v4, %v7968_v1 }
 0x2a9   :  { %v7971_v8 = vpop.f32.mrf.mxu1  ;;  %v7950_v9 = vpop.f32.mrf.mxu0 }
 0x2aa   :  { %v6350_v10 = vadd.f32 %v7970_v7, %v6310_v6 }
 0x2ab   :  { %v7972_v11 = vpop.f32.mrf.mxu1 }
 0x2c3   :  { %v7990_v12 = vpop.f32.mrf.mxu0 }
 0x2c5   :  { %v8012_v13 = vpop.f32.mrf.mxu1  ;;  %v7991_v14 = vpop.f32.mrf.mxu0 }
 0x2c6   :  { %v7992_v27 = vadd.f32 %v7991_v14, %v7990_v12 }
 0x2c7   :  { %v8013_v15 = vpop.f32.mrf.mxu1  ;;  %v7993_v16 = vpop.f32.mrf.mxu0 }
 0x2c8   :  { %v6390_v28 = vadd.f32 %v7992_v27, %v6350_v10  ;;  %v8014_v29 = vadd.f32 %v8013_v15, %v8012_v13 }
 0x2c9   :  { %v8015_v17 = vpop.f32.mrf.mxu1  ;;  %v7994_v18 = vpop.f32.mrf.mxu0 }
 0x2ca   :  { %v6430_v31 = vadd.f32 %v8014_v29, %v6390_v28 }
 0x2cb   :  { %v8016_v19 = vpop.f32.mrf.mxu1 }
 0x2e3   :  { %v8034_v20 = vpop.f32.mrf.mxu0 }
 0x2e5   :  { %v8056_v21 = vpop.f32.mrf.mxu1  ;;  %v8035_v22 = vpop.f32.mrf.mxu0 }
 0x2e6   :  { %v8036_v30 = vadd.f32 %v8035_v22, %v8034_v20 }
 0x2e7   :  { %v8057_v23 = vpop.f32.mrf.mxu1  ;;  %v8037_v24 = vpop.f32.mrf.mxu0 }
 0x2e8   :  { %v6470_v32 = vadd.f32 %v8036_v30, %v6430_v31  ;;  %v8058_v33 = vadd.f32 %v8057_v23, %v8056_v21 }
 0x2e9   :  { %v8059_v25 = vpop.f32.mrf.mxu1  ;;  %v8038_v41 = vpop.f32.mrf.mxu0 }
 0x2ea   :  { %v6510_v37 = vadd.f32 %v8058_v33, %v6470_v32 }
 0x2eb   :  { %v8060_v26 = vpop.f32.mrf.mxu1 }
 0x303   :  { %v8078_v34 = vpop.f32.mrf.mxu0 }
 0x305   :  { %v8100_v35 = vpop.f32.mrf.mxu1  ;;  %v8079_v36 = vpop.f32.mrf.mxu0 }
 0x306   :  { %v8080_v38 = vadd.f32 %v8079_v36, %v8078_v34 }
 0x307   :  { %v8101_v39 = vpop.f32.mrf.mxu1  ;;  %v8081_v40 = vpop.f32.mrf.mxu0 }
 0x308   :  { %v6550_v42 = vadd.f32 %v8080_v38, %v6510_v37  ;;  %v8102_v43 = vadd.f32 %v8101_v39, %v8100_v35 }
 0x309   :  { %v8103_v44 = vpop.f32.mrf.mxu1  ;;  %v8082_v45 = vpop.f32.mrf.mxu0 }
 0x30a   :  { %v6590_v46 = vadd.f32 %v8102_v43, %v6550_v42 }
 0x30b   :  { %v8104_v47 = vpop.f32.mrf.mxu1 }
 0x30c   :  { %v6595_v48 = vmax.f32 %v6590_v46, 0.0 }
 0x30e   :  { %v6596_v49 = vpack.c.bf16 %v6595_v48, %v6595_v48 }
 0x310   :  { %8132 = vmatmul.mubr.bf16.vlgmr.msra.gmra.mxu0 %v6596_v49 }
 0x3d0   :  { %v6695_v50 = vpop.f32.mrf.mxu0 }
 0x3d1   :  { %v6702_v51 = vsel %vm6701_vm1, %v6695_v50, -inf }
 0x3d2   :  { %6703 = vmax.xlane.f32.xlu0 %v6702_v51  ;;  %v8133_v52 = vpop.f32.mrf.mxu0 }
 0x3d4   :  { %v6698_v53 = vpop.f32.mrf.mxu0 }
 0x3d6   :  { %v8134_v54 = vpop.f32.mrf.mxu0 }
 0x45b   :  { %v6704_v55 = vpop.xlane.xlu0 %6703 }
 0x45c   :  { %v6705_v56 = vsub.f32 %v6695_v50, %v6704_v55 }
 0x45e   :  { %v6706_v57 = vmul.f32 1.442695, %v6705_v56 }
 0x460   :  { %8732 = vpow2.f32 %v6706_v57 }
 0x46d   :  { %v8733_v58 = vpop.eup %8732 }
 0x46e   :  { %v6708_v59 = vsel %vm6701_vm1, %v8733_v58, 0.0 }
 0x46f   :  { %6709 = vadd.xlane.f32.xlu0 %v6708_v59 }
 0x4f8   :  { %v6710_v60 = vpop.xlane.xlu0 %6709 }
 0x4f9   :  { %8734 = vlog2.f32 %v6710_v60 }
 0x506   :  { %v8735_v61 = vpop.eup %8734 }
 0x507   :  { %v6712_v62 = vmul.f32 0.6931472, %v8735_v61 }
 0x509   :  { %v6713_v63 = vadd.f32 %v6712_v62, %v6704_v55 }
 0x50b   :  { %v6714_v0 = vsub.f32 %v6695_v50, %v6713_v63 }
 0x50d   :  { %6715 = vst.msk [vmem:[#allocation2] sm:$0x3] %vm6701_vm1, %v6714_v0 }
 0x50e   :  { %8747 = shalt.err (!%p8744_p4)
}
 0x50f   :  { %6725 = dma.vmem_to_hbm [thread:$0]  %s6723_s6, 32, %s10701_s3, [#allocation3]  }
 0x510   :  { %8756 = dma.done.wait [#allocation3], 32  }
 0x511   :  { %8757 = vsyncadd [#allocation3], 4294967264 }
 0x512   :  { %6729 = vsyncpa [#allocation3], 1 }

</bundles_post_ra>
